<compile_context>
chip_gen: v5e
topology: v5e:2x2
jax: 0.10.0
libtpu: 0.0.40
codegen_flags: <defaults>
</compile_context>

<pallas_src>
import functools

import jax
import jax.numpy as jnp
from jax import lax
from jax.experimental import pallas as pl
from jax.experimental.pallas import tpu as pltpu


# ---------------------------------------------------------------------------
# Kernel helpers
# ---------------------------------------------------------------------------
def _gru_layer(x_flat, T, TB, H, wih_ref, whh_ref, bi_ref, bnh_ref, ys_ref):
    """One GRU layer over T steps (PyTorch gate order r, z, n).

    x_flat : (T*TB, in) time-major flattened layer input (value).
    wih_ref: (3, in, H) per-gate input weights  [r, z, n].
    whh_ref: (3, H, H)  per-gate hidden weights [r, z, n].
    bi_ref : (3, 1, H)  per-gate input-side biases; the r/z rows already have
             the hidden-side bias folded in (wrapper), the n row is b_ih_n.
    bnh_ref: (1, H)     hidden-side bias of the n gate (stays inside r*(...)).
    ys_ref : optional (T, TB, H) VMEM scratch; if given, every step's h is
             stored (it becomes the next layer's input).
    Returns h_T of shape (TB, H).
    """
    # Hoisted input projections: one batched matmul per gate, M = T*TB.
    gi_r = (jnp.dot(x_flat, wih_ref[0], preferred_element_type=jnp.float32)
            + bi_ref[0]).reshape(T, TB, H)
    gi_z = (jnp.dot(x_flat, wih_ref[1], preferred_element_type=jnp.float32)
            + bi_ref[1]).reshape(T, TB, H)
    gi_n = (jnp.dot(x_flat, wih_ref[2], preferred_element_type=jnp.float32)
            + bi_ref[2]).reshape(T, TB, H)
    bnh = bnh_ref[...]

    h = jnp.zeros((TB, H), jnp.float32)
    # T is small and static: fully unrolled loop, all indices static.
    for t in range(T):
        gh_r = jnp.dot(h, whh_ref[0], preferred_element_type=jnp.float32)
        gh_z = jnp.dot(h, whh_ref[1], preferred_element_type=jnp.float32)
        gh_n = jnp.dot(h, whh_ref[2], preferred_element_type=jnp.float32) + bnh
        r = jax.nn.sigmoid(gi_r[t] + gh_r)
        z = jax.nn.sigmoid(gi_z[t] + gh_z)
        n = jnp.tanh(gi_n[t] + r * gh_n)
        h = (1.0 - z) * n + z * h
        if ys_ref is not None:
            ys_ref[t] = h
    return h


# ---------------------------------------------------------------------------
# Kernel
# ---------------------------------------------------------------------------
def recurrent_dueling_bypass_kernel(
    x_ref,                                       # (T, TB, obs) time-major block
    wih0_ref, whh0_ref, bi0_ref, bnh0_ref,       # GRU layer 0 (per-gate stacked)
    wih1_ref, whh1_ref, bi1_ref, bnh1_ref,       # GRU layer 1
    wih2_ref, whh2_ref, bi2_ref, bnh2_ref,       # GRU layer 2
    wb_ref, bb_ref,                              # linear_bypass
    wm_gru_ref, wm_byp_ref, bm_ref,              # linear_middle (concat split)
    wa1_ref, ba1_ref, wa2_ref, ba2_ref,          # linear_advantage
    wv1_ref, bv1_ref, wv2_ref, bv2_ref,          # linear_value
    out_ref,                                     # (TB, act): Q or softmax(A)
    ys0_ref, ys1_ref,                            # scratch (T, TB, H) each
    *, compute_softmax: bool,
):
    T, TB, obs = x_ref.shape
    H = whh0_ref.shape[1]

    # Layer 0: input is the raw observation sequence.
    x_flat = x_ref[...].reshape(T * TB, obs)
    _gru_layer(x_flat, T, TB, H, wih0_ref, whh0_ref, bi0_ref, bnh0_ref, ys0_ref)

    # Layer 1: input is layer-0's full hidden sequence.
    _gru_layer(ys0_ref[...].reshape(T * TB, H), T, TB, H,
               wih1_ref, whh1_ref, bi1_ref, bnh1_ref, ys1_ref)

    # Layer 2: only the last hidden state is needed downstream.
    h_last = _gru_layer(ys1_ref[...].reshape(T * TB, H), T, TB, H,
                        wih2_ref, whh2_ref, bi2_ref, bnh2_ref, None)

    # Bypass branch on the last-timestep raw observation.
    x_last = x_ref[T - 1]                        # (TB, obs)
    bypass = jnp.maximum(
        jnp.dot(x_last, wb_ref[...], preferred_element_type=jnp.float32)
        + bb_ref[...], 0.0)

    # linear_middle on concat([h_last, bypass]) -- concat folded into a split
    # weight: concat([h, byp]) @ Wm == h @ Wm[:H] + byp @ Wm[H:]
    mid = jnp.maximum(
        jnp.dot(h_last, wm_gru_ref[...], preferred_element_type=jnp.float32)
        + jnp.dot(bypass, wm_byp_ref[...], preferred_element_type=jnp.float32)
        + bm_ref[...], 0.0)

    # Advantage head (needed on both paths).
    a_hid = jnp.maximum(
        jnp.dot(mid, wa1_ref[...], preferred_element_type=jnp.float32)
        + ba1_ref[...], 0.0)
    A = jnp.dot(a_hid, wa2_ref[...], preferred_element_type=jnp.float32) + ba2_ref[...]

    if compute_softmax:
        # return_advantage=True path: softmax over actions; value head skipped.
        a_max = jnp.max(A, axis=1, keepdims=True)
        e = jnp.exp(A - a_max)
        out_ref[...] = e / jnp.sum(e, axis=1, keepdims=True)
    else:
        # default path: dueling combination; softmax skipped.
        v_hid = jnp.maximum(
            jnp.dot(mid, wv1_ref[...], preferred_element_type=jnp.float32)
            + bv1_ref[...], 0.0)
        V = jnp.dot(v_hid, wv2_ref[...], preferred_element_type=jnp.float32) + bv2_ref[...]
        out_ref[...] = V + A - jnp.mean(A, axis=1, keepdims=True)


# ---------------------------------------------------------------------------
# Wrapper
# ---------------------------------------------------------------------------
def recurrent_dueling_bypass(x_bto, kp, return_advantage=False):
    """x_bto: (B, T, obs) float32 (batch_first, like the PyTorch module).

    `kp` holds kernel-ready params (see prepare_kernel_params)."""
    B, T, obs = x_bto.shape
    H = kp["whh_g0"].shape[1]
    act = kp["wa2"].shape[1]

    # Batch tile of up to 8 rows per program; extra programs shard across
    # TensorCores (v7x has 2) via "parallel" semantics. Harmless on v5e/v6e.
    TB = 8 if (B % 8 == 0) else B
    grid = (B // TB,)

    # Tiny one-off XLA copy to time-major so every per-step access in the
    # kernel is a static leading-dim index (no per-step lane/sublane extracts).
    x_tbo = jnp.transpose(x_bto, (1, 0, 2))     # (T, B, obs)

    weights = (
        kp["wih_g0"], kp["whh_g0"], kp["bi_g0"], kp["bnh0"],
        kp["wih_g1"], kp["whh_g1"], kp["bi_g1"], kp["bnh1"],
        kp["wih_g2"], kp["whh_g2"], kp["bi_g2"], kp["bnh2"],
        kp["wb"], kp["bb"],
        kp["wm_gru"], kp["wm_byp"], kp["bm"],
        kp["wa1"], kp["ba1"], kp["wa2"], kp["ba2"],
        kp["wv1"], kp["bv1"], kp["wv2"], kp["bv2"],
    )

    def full_spec(w):
        nd = w.ndim
        return pl.BlockSpec(w.shape, lambda b, _nd=nd: (0,) * _nd)

    in_specs = ([pl.BlockSpec((T, TB, obs), lambda b: (0, b, 0))]
                + [full_spec(w) for w in weights])
    out_spec = pl.BlockSpec((TB, act), lambda b: (b, 0))

    kernel = functools.partial(recurrent_dueling_bypass_kernel,
                               compute_softmax=bool(return_advantage))

    return pl.pallas_call(
        kernel,
        out_shape=jax.ShapeDtypeStruct((B, act), jnp.float32),
        grid_spec=pltpu.PrefetchScalarGridSpec(
            num_scalar_prefetch=0,
            grid=grid,
            in_specs=in_specs,
            out_specs=out_spec,
            scratch_shapes=[pltpu.VMEM((T, TB, H), jnp.float32),
                            pltpu.VMEM((T, TB, H), jnp.float32)]),
        compiler_params=pltpu.CompilerParams(
            dimension_semantics=("parallel",)),
    )(x_tbo, *weights)


# ---------------------------------------------------------------------------
# Deterministic parameter construction (synthetic init, PyTorch shapes)
# ---------------------------------------------------------------------------
def init_params(key, obs, hidden, actions):
    H = hidden
    half = hidden // 2

    def unif(k, shape, scale=0.1):
        return jax.random.uniform(k, shape, jnp.float32, -scale, scale)

    keys = iter(jax.random.split(key, 32))
    p = {}
    # GRU layer 0: weight_ih (3H, obs), weight_hh (3H, H) -> stored transposed.
    p["wih0"] = unif(next(keys), (3 * H, obs)).T
    p["whh0"] = unif(next(keys), (3 * H, H)).T
    p["bih0"] = unif(next(keys), (1, 3 * H))
    p["bhh0"] = unif(next(keys), (1, 3 * H))
    for l in (1, 2):
        p[f"wih{l}"] = unif(next(keys), (3 * H, H)).T
        p[f"whh{l}"] = unif(next(keys), (3 * H, H)).T
        p[f"bih{l}"] = unif(next(keys), (1, 3 * H))
        p[f"bhh{l}"] = unif(next(keys), (1, 3 * H))
    # linear_bypass: (half, obs)
    p["wb"] = unif(next(keys), (half, obs)).T
    p["bb"] = unif(next(keys), (1, half))
    # linear_middle: (H, H + half) -> split into gru-part and bypass-part.
    wm = unif(next(keys), (H, H + half)).T           # (H+half, H)
    p["wm_gru"] = wm[:H]
    p["wm_byp"] = wm[H:]
    p["bm"] = unif(next(keys), (1, H))
    # advantage head
    p["wa1"] = unif(next(keys), (H, H)).T
    p["ba1"] = unif(next(keys), (1, H))
    p["wa2"] = unif(next(keys), (actions, H)).T
    p["ba2"] = unif(next(keys), (1, actions))
    # value head
    p["wv1"] = unif(next(keys), (H, H)).T
    p["bv1"] = unif(next(keys), (1, H))
    p["wv2"] = unif(next(keys), (1, H)).T
    p["bv2"] = unif(next(keys), (1, 1))
    return p


def prepare_kernel_params(p, hidden):
    """Split GRU weights per gate (r, z, n) and fold r/z biases (free, in XLA)."""
    H = hidden
    kp = dict(p)
    for l in range(3):
        wih, whh = p[f"wih{l}"], p[f"whh{l}"]           # (in, 3H), (H, 3H)
        bih, bhh = p[f"bih{l}"], p[f"bhh{l}"]           # (1, 3H)
        kp[f"wih_g{l}"] = jnp.stack(
            [wih[:, :H], wih[:, H:2 * H], wih[:, 2 * H:]], axis=0)   # (3, in, H)
        kp[f"whh_g{l}"] = jnp.stack(
            [whh[:, :H], whh[:, H:2 * H], whh[:, 2 * H:]], axis=0)   # (3, H, H)
        kp[f"bi_g{l}"] = jnp.stack(
            [bih[:, :H] + bhh[:, :H],
             bih[:, H:2 * H] + bhh[:, H:2 * H],
             bih[:, 2 * H:]], axis=0)                                # (3, 1, H)
        kp[f"bnh{l}"] = bhh[:, 2 * H:]                               # (1, H)
    return kp


# ---------------------------------------------------------------------------
# Pure-JAX reference (same math, plain jnp) for correctness check
# ---------------------------------------------------------------------------
def ref_forward(x_bto, p, return_advantage=False):
    B, T, _ = x_bto.shape
    H = p["whh0"].shape[0]

    def gru_layer(xs, wih, whh, bih, bhh):
        def cell(h, xt):
            gi = xt @ wih + bih
            gh = h @ whh + bhh
            r = jax.nn.sigmoid(gi[:, :H] + gh[:, :H])
            z = jax.nn.sigmoid(gi[:, H:2 * H] + gh[:, H:2 * H])
            n = jnp.tanh(gi[:, 2 * H:] + r * gh[:, 2 * H:])
            h_new = (1.0 - z) * n + z * h
            return h_new, h_new
        h0 = jnp.zeros((B, H), jnp.float32)
        _, ys = lax.scan(cell, h0, xs)
        return ys

    xs = jnp.transpose(x_bto, (1, 0, 2))   # (T, B, obs)
    y0 = gru_layer(xs, p["wih0"], p["whh0"], p["bih0"], p["bhh0"])
    y1 = gru_layer(y0, p["wih1"], p["whh1"], p["bih1"], p["bhh1"])
    y2 = gru_layer(y1, p["wih2"], p["whh2"], p["bih2"], p["bhh2"])
    h_last = y2[-1]

    bypass = jax.nn.relu(x_bto[:, -1, :] @ p["wb"] + p["bb"])
    mid = jax.nn.relu(h_last @ p["wm_gru"] + bypass @ p["wm_byp"] + p["bm"])
    A = jax.nn.relu(mid @ p["wa1"] + p["ba1"]) @ p["wa2"] + p["ba2"]
    if return_advantage:
        return jax.nn.softmax(A, axis=1)
    V = jax.nn.relu(mid @ p["wv1"] + p["bv1"]) @ p["wv2"] + p["bv2"]
    return V + A - A.mean(axis=1, keepdims=True)


# ---------------------------------------------------------------------------
if __name__ == "__main__":
    OBS, HIDDEN, ACTIONS = 32, 32, 8
    B, T = 16, 8   # B=16 -> grid=(2,) so multi-TC chips get both programs

    key = jax.random.PRNGKey(0)
    k_param, k_x = jax.random.split(key)
    params = init_params(k_param, OBS, HIDDEN, ACTIONS)
    kparams = prepare_kernel_params(params, HIDDEN)
    x = jax.random.normal(k_x, (B, T, OBS), jnp.float32)

    q = recurrent_dueling_bypass(x, kparams, return_advantage=False)
    p_adv = recurrent_dueling_bypass(x, kparams, return_advantage=True)
    jax.block_until_ready((q, p_adv))

    q_ref = ref_forward(x, params, return_advantage=False)
    p_ref = ref_forward(x, params, return_advantage=True)

    assert q.shape == (B, ACTIONS) and p_adv.shape == (B, ACTIONS)
    assert jnp.allclose(q, q_ref, rtol=1e-5, atol=1e-5), "Q mismatch vs reference"
    assert jnp.allclose(p_adv, p_ref, rtol=1e-5, atol=1e-5), "softmax(A) mismatch vs reference"

    print("KERNEL_OK")
</pallas_src>

<mosaic_0001>
module attributes {stable_mosaic.version = 11 : i64} {
  func.func @recurrent_dueling_bypass_kernel(%arg0: i32, %arg1: memref<8x8x32xf32, #tpu.memory_space<vmem>>, %arg2: memref<3x32x32xf32, #tpu.memory_space<vmem>>, %arg3: memref<3x32x32xf32, #tpu.memory_space<vmem>>, %arg4: memref<3x1x32xf32, #tpu.memory_space<vmem>>, %arg5: memref<1x32xf32, #tpu.memory_space<vmem>>, %arg6: memref<3x32x32xf32, #tpu.memory_space<vmem>>, %arg7: memref<3x32x32xf32, #tpu.memory_space<vmem>>, %arg8: memref<3x1x32xf32, #tpu.memory_space<vmem>>, %arg9: memref<1x32xf32, #tpu.memory_space<vmem>>, %arg10: memref<3x32x32xf32, #tpu.memory_space<vmem>>, %arg11: memref<3x32x32xf32, #tpu.memory_space<vmem>>, %arg12: memref<3x1x32xf32, #tpu.memory_space<vmem>>, %arg13: memref<1x32xf32, #tpu.memory_space<vmem>>, %arg14: memref<32x16xf32, #tpu.memory_space<vmem>>, %arg15: memref<1x16xf32, #tpu.memory_space<vmem>>, %arg16: memref<32x32xf32, #tpu.memory_space<vmem>>, %arg17: memref<16x32xf32, #tpu.memory_space<vmem>>, %arg18: memref<1x32xf32, #tpu.memory_space<vmem>>, %arg19: memref<32x32xf32, #tpu.memory_space<vmem>>, %arg20: memref<1x32xf32, #tpu.memory_space<vmem>>, %arg21: memref<32x8xf32, #tpu.memory_space<vmem>>, %arg22: memref<1x8xf32, #tpu.memory_space<vmem>>, %arg23: memref<32x32xf32, #tpu.memory_space<vmem>>, %arg24: memref<1x32xf32, #tpu.memory_space<vmem>>, %arg25: memref<32x1xf32, #tpu.memory_space<vmem>>, %arg26: memref<1x1xf32, #tpu.memory_space<vmem>>, %arg27: memref<8x8xf32, #tpu.memory_space<vmem>>, %arg28: memref<8x8x32xf32, #tpu.memory_space<vmem>>, %arg29: memref<8x8x32xf32, #tpu.memory_space<vmem>>) attributes {dimension_semantics = [#tpu.dimension_semantics<parallel>], iteration_bounds = array<i64: 2>, scalar_prefetch = 0 : i64, scratch_operands = 2 : i64, tpu.core_type = #tpu.core_type<tc>, window_params = [{transform_indices = @transform_0, window_bounds = array<i64: 8, 8, 32>}, {pipeline_mode = #tpu.pipeline_mode<synchronous>, transform_indices = @transform_1, window_bounds = array<i64: 3, 32, 32>}, {pipeline_mode = #tpu.pipeline_mode<synchronous>, transform_indices = @transform_2, window_bounds = array<i64: 3, 32, 32>}, {pipeline_mode = #tpu.pipeline_mode<synchronous>, transform_indices = @transform_3, window_bounds = array<i64: 3, 1, 32>}, {pipeline_mode = #tpu.pipeline_mode<synchronous>, transform_indices = @transform_4, window_bounds = array<i64: 1, 32>}, {pipeline_mode = #tpu.pipeline_mode<synchronous>, transform_indices = @transform_5, window_bounds = array<i64: 3, 32, 32>}, {pipeline_mode = #tpu.pipeline_mode<synchronous>, transform_indices = @transform_6, window_bounds = array<i64: 3, 32, 32>}, {pipeline_mode = #tpu.pipeline_mode<synchronous>, transform_indices = @transform_7, window_bounds = array<i64: 3, 1, 32>}, {pipeline_mode = #tpu.pipeline_mode<synchronous>, transform_indices = @transform_8, window_bounds = array<i64: 1, 32>}, {pipeline_mode = #tpu.pipeline_mode<synchronous>, transform_indices = @transform_9, window_bounds = array<i64: 3, 32, 32>}, {pipeline_mode = #tpu.pipeline_mode<synchronous>, transform_indices = @transform_10, window_bounds = array<i64: 3, 32, 32>}, {pipeline_mode = #tpu.pipeline_mode<synchronous>, transform_indices = @transform_11, window_bounds = array<i64: 3, 1, 32>}, {pipeline_mode = #tpu.pipeline_mode<synchronous>, transform_indices = @transform_12, window_bounds = array<i64: 1, 32>}, {pipeline_mode = #tpu.pipeline_mode<synchronous>, transform_indices = @transform_13, window_bounds = array<i64: 32, 16>}, {pipeline_mode = #tpu.pipeline_mode<synchronous>, transform_indices = @transform_14, window_bounds = array<i64: 1, 16>}, {pipeline_mode = #tpu.pipeline_mode<synchronous>, transform_indices = @transform_15, window_bounds = array<i64: 32, 32>}, {pipeline_mode = #tpu.pipeline_mode<synchronous>, transform_indices = @transform_16, window_bounds = array<i64: 16, 32>}, {pipeline_mode = #tpu.pipeline_mode<synchronous>, transform_indices = @transform_17, window_bounds = array<i64: 1, 32>}, {pipeline_mode = #tpu.pipeline_mode<synchronous>, transform_indices = @transform_18, window_bounds = array<i64: 32, 32>}, {pipeline_mode = #tpu.pipeline_mode<synchronous>, transform_indices = @transform_19, window_bounds = array<i64: 1, 32>}, {pipeline_mode = #tpu.pipeline_mode<synchronous>, transform_indices = @transform_20, window_bounds = array<i64: 32, 8>}, {pipeline_mode = #tpu.pipeline_mode<synchronous>, transform_indices = @transform_21, window_bounds = array<i64: 1, 8>}, {pipeline_mode = #tpu.pipeline_mode<synchronous>, transform_indices = @transform_22, window_bounds = array<i64: 32, 32>}, {pipeline_mode = #tpu.pipeline_mode<synchronous>, transform_indices = @transform_23, window_bounds = array<i64: 1, 32>}, {pipeline_mode = #tpu.pipeline_mode<synchronous>, transform_indices = @transform_24, window_bounds = array<i64: 32, 1>}, {pipeline_mode = #tpu.pipeline_mode<synchronous>, transform_indices = @transform_25, window_bounds = array<i64: 1, 1>}, {transform_indices = @transform_26, window_bounds = array<i64: 8, 8>}]} {
    %c0 = arith.constant 0 : index
    %c0_0 = arith.constant 0 : index
    %c0_1 = arith.constant 0 : index
    %0 = vector.load %arg1[%c0, %c0_0, %c0_1] : memref<8x8x32xf32, #tpu.memory_space<vmem>>, vector<8x8x32xf32>
    %1 = vector.shape_cast %0 : vector<8x8x32xf32> to vector<64x32xf32>
    %c0_2 = arith.constant 0 : index
    %c0_3 = arith.constant 0 : index
    %c0_4 = arith.constant 0 : index
    %2 = vector.load %arg2[%c0_2, %c0_3, %c0_4] : memref<3x32x32xf32, #tpu.memory_space<vmem>>, vector<1x32x32xf32>
    %3 = vector.shape_cast %2 : vector<1x32x32xf32> to vector<32x32xf32>
    %cst = arith.constant dense<0.000000e+00> : vector<64x32xf32>
    %4 = tpu.matmul %1, %3, %cst {dimension_numbers = #tpu.dot_dimension_numbers<[1], [0], [0], [1], [0, 0, 1, 1], [], []>} : vector<64x32xf32>, vector<32x32xf32>, vector<64x32xf32> -> vector<64x32xf32>
    %c0_5 = arith.constant 0 : index
    %c0_6 = arith.constant 0 : index
    %c0_7 = arith.constant 0 : index
    %5 = vector.load %arg4[%c0_5, %c0_6, %c0_7] : memref<3x1x32xf32, #tpu.memory_space<vmem>>, vector<1x1x32xf32>
    %6 = vector.shape_cast %5 : vector<1x1x32xf32> to vector<1x32xf32>
    %7 = vector.broadcast %6 : vector<1x32xf32> to vector<64x32xf32>
    %8 = arith.addf %4, %7 : vector<64x32xf32>
    %9 = vector.shape_cast %8 : vector<64x32xf32> to vector<8x8x32xf32>
    %c1 = arith.constant 1 : index
    %c0_8 = arith.constant 0 : index
    %c0_9 = arith.constant 0 : index
    %10 = vector.load %arg2[%c1, %c0_8, %c0_9] : memref<3x32x32xf32, #tpu.memory_space<vmem>>, vector<1x32x32xf32>
    %11 = vector.shape_cast %10 : vector<1x32x32xf32> to vector<32x32xf32>
    %cst_10 = arith.constant dense<0.000000e+00> : vector<64x32xf32>
    %12 = tpu.matmul %1, %11, %cst_10 {dimension_numbers = #tpu.dot_dimension_numbers<[1], [0], [0], [1], [0, 0, 1, 1], [], []>} : vector<64x32xf32>, vector<32x32xf32>, vector<64x32xf32> -> vector<64x32xf32>
    %c1_11 = arith.constant 1 : index
    %c0_12 = arith.constant 0 : index
    %c0_13 = arith.constant 0 : index
    %13 = vector.load %arg4[%c1_11, %c0_12, %c0_13] : memref<3x1x32xf32, #tpu.memory_space<vmem>>, vector<1x1x32xf32>
    %14 = vector.shape_cast %13 : vector<1x1x32xf32> to vector<1x32xf32>
    %15 = vector.broadcast %14 : vector<1x32xf32> to vector<64x32xf32>
    %16 = arith.addf %12, %15 : vector<64x32xf32>
    %17 = vector.shape_cast %16 : vector<64x32xf32> to vector<8x8x32xf32>
    %c2 = arith.constant 2 : index
    %c0_14 = arith.constant 0 : index
    %c0_15 = arith.constant 0 : index
    %18 = vector.load %arg2[%c2, %c0_14, %c0_15] : memref<3x32x32xf32, #tpu.memory_space<vmem>>, vector<1x32x32xf32>
    %19 = vector.shape_cast %18 : vector<1x32x32xf32> to vector<32x32xf32>
    %cst_16 = arith.constant dense<0.000000e+00> : vector<64x32xf32>
    %20 = tpu.matmul %1, %19, %cst_16 {dimension_numbers = #tpu.dot_dimension_numbers<[1], [0], [0], [1], [0, 0, 1, 1], [], []>} : vector<64x32xf32>, vector<32x32xf32>, vector<64x32xf32> -> vector<64x32xf32>
    %c2_17 = arith.constant 2 : index
    %c0_18 = arith.constant 0 : index
    %c0_19 = arith.constant 0 : index
    %21 = vector.load %arg4[%c2_17, %c0_18, %c0_19] : memref<3x1x32xf32, #tpu.memory_space<vmem>>, vector<1x1x32xf32>
    %22 = vector.shape_cast %21 : vector<1x1x32xf32> to vector<1x32xf32>
    %23 = vector.broadcast %22 : vector<1x32xf32> to vector<64x32xf32>
    %24 = arith.addf %20, %23 : vector<64x32xf32>
    %25 = vector.shape_cast %24 : vector<64x32xf32> to vector<8x8x32xf32>
    %c0_20 = arith.constant 0 : index
    %c0_21 = arith.constant 0 : index
    %26 = vector.load %arg5[%c0_20, %c0_21] : memref<1x32xf32, #tpu.memory_space<vmem>>, vector<1x32xf32>
    %cst_22 = arith.constant 0.000000e+00 : f32
    %27 = vector.broadcast %cst_22 : f32 to vector<8x32xf32>
    %c0_23 = arith.constant 0 : index
    %c0_24 = arith.constant 0 : index
    %c0_25 = arith.constant 0 : index
    %28 = vector.load %arg3[%c0_23, %c0_24, %c0_25] : memref<3x32x32xf32, #tpu.memory_space<vmem>>, vector<1x32x32xf32>
    %29 = vector.shape_cast %28 : vector<1x32x32xf32> to vector<32x32xf32>
    %cst_26 = arith.constant dense<0.000000e+00> : vector<8x32xf32>
    %30 = tpu.matmul %27, %29, %cst_26 {dimension_numbers = #tpu.dot_dimension_numbers<[1], [0], [0], [1], [0, 0, 1, 1], [], []>} : vector<8x32xf32>, vector<32x32xf32>, vector<8x32xf32> -> vector<8x32xf32>
    %c1_27 = arith.constant 1 : index
    %c0_28 = arith.constant 0 : index
    %c0_29 = arith.constant 0 : index
    %31 = vector.load %arg3[%c1_27, %c0_28, %c0_29] : memref<3x32x32xf32, #tpu.memory_space<vmem>>, vector<1x32x32xf32>
    %32 = vector.shape_cast %31 : vector<1x32x32xf32> to vector<32x32xf32>
    %cst_30 = arith.constant dense<0.000000e+00> : vector<8x32xf32>
    %33 = tpu.matmul %27, %32, %cst_30 {dimension_numbers = #tpu.dot_dimension_numbers<[1], [0], [0], [1], [0, 0, 1, 1], [], []>} : vector<8x32xf32>, vector<32x32xf32>, vector<8x32xf32> -> vector<8x32xf32>
    %c2_31 = arith.constant 2 : index
    %c0_32 = arith.constant 0 : index
    %c0_33 = arith.constant 0 : index
    %34 = vector.load %arg3[%c2_31, %c0_32, %c0_33] : memref<3x32x32xf32, #tpu.memory_space<vmem>>, vector<1x32x32xf32>
    %35 = vector.shape_cast %34 : vector<1x32x32xf32> to vector<32x32xf32>
    %cst_34 = arith.constant dense<0.000000e+00> : vector<8x32xf32>
    %36 = tpu.matmul %27, %35, %cst_34 {dimension_numbers = #tpu.dot_dimension_numbers<[1], [0], [0], [1], [0, 0, 1, 1], [], []>} : vector<8x32xf32>, vector<32x32xf32>, vector<8x32xf32> -> vector<8x32xf32>
    %37 = vector.broadcast %26 : vector<1x32xf32> to vector<8x32xf32>
    %38 = arith.addf %36, %37 : vector<8x32xf32>
    %39 = vector.extract_strided_slice %9 {offsets = [0, 0, 0], sizes = [1, 8, 32], strides = [1, 1, 1]} : vector<8x8x32xf32> to vector<1x8x32xf32>
    %40 = vector.shape_cast %39 : vector<1x8x32xf32> to vector<8x32xf32>
    %41 = arith.addf %40, %30 : vector<8x32xf32>
    %42 = arith.negf %41 : vector<8x32xf32>
    %43 = math.exp %42 : vector<8x32xf32>
    %cst_35 = arith.constant 1.000000e+00 : f32
    %44 = vector.broadcast %cst_35 : f32 to vector<8x32xf32>
    %45 = arith.addf %44, %43 : vector<8x32xf32>
    %46 = arith.divf %44, %45 : vector<8x32xf32>
    %47 = vector.extract_strided_slice %17 {offsets = [0, 0, 0], sizes = [1, 8, 32], strides = [1, 1, 1]} : vector<8x8x32xf32> to vector<1x8x32xf32>
    %48 = vector.shape_cast %47 : vector<1x8x32xf32> to vector<8x32xf32>
    %49 = arith.addf %48, %33 : vector<8x32xf32>
    %50 = arith.negf %49 : vector<8x32xf32>
    %51 = math.exp %50 : vector<8x32xf32>
    %cst_36 = arith.constant 1.000000e+00 : f32
    %52 = vector.broadcast %cst_36 : f32 to vector<8x32xf32>
    %53 = arith.addf %52, %51 : vector<8x32xf32>
    %54 = arith.divf %52, %53 : vector<8x32xf32>
    %55 = vector.extract_strided_slice %25 {offsets = [0, 0, 0], sizes = [1, 8, 32], strides = [1, 1, 1]} : vector<8x8x32xf32> to vector<1x8x32xf32>
    %56 = vector.shape_cast %55 : vector<1x8x32xf32> to vector<8x32xf32>
    %57 = arith.mulf %46, %38 : vector<8x32xf32>
    %58 = arith.addf %56, %57 : vector<8x32xf32>
    %59 = math.tanh %58 : vector<8x32xf32>
    %cst_37 = arith.constant 1.000000e+00 : f32
    %60 = vector.broadcast %cst_37 : f32 to vector<8x32xf32>
    %61 = arith.subf %60, %54 : vector<8x32xf32>
    %62 = arith.mulf %61, %59 : vector<8x32xf32>
    %63 = arith.mulf %54, %27 : vector<8x32xf32>
    %64 = arith.addf %62, %63 : vector<8x32xf32>
    %c0_38 = arith.constant 0 : index
    %c0_39 = arith.constant 0 : index
    %c0_40 = arith.constant 0 : index
    %65 = vector.load %arg28[%c0_38, %c0_39, %c0_40] : memref<8x8x32xf32, #tpu.memory_space<vmem>>, vector<1x8x32xf32>
    %66 = vector.shape_cast %65 : vector<1x8x32xf32> to vector<8x32xf32>
    %67 = vector.shape_cast %64 : vector<8x32xf32> to vector<1x8x32xf32>
    tpu.vector_store %arg28[%c0_38, %c0_39, %c0_40], %67 {strides = array<i32>} : memref<8x8x32xf32, #tpu.memory_space<vmem>>, vector<1x8x32xf32>,
    %c0_41 = arith.constant 0 : index
    %c0_42 = arith.constant 0 : index
    %c0_43 = arith.constant 0 : index
    %68 = vector.load %arg3[%c0_41, %c0_42, %c0_43] : memref<3x32x32xf32, #tpu.memory_space<vmem>>, vector<1x32x32xf32>
    %69 = vector.shape_cast %68 : vector<1x32x32xf32> to vector<32x32xf32>
    %cst_44 = arith.constant dense<0.000000e+00> : vector<8x32xf32>
    %70 = tpu.matmul %64, %69, %cst_44 {dimension_numbers = #tpu.dot_dimension_numbers<[1], [0], [0], [1], [0, 0, 1, 1], [], []>} : vector<8x32xf32>, vector<32x32xf32>, vector<8x32xf32> -> vector<8x32xf32>
    %c1_45 = arith.constant 1 : index
    %c0_46 = arith.constant 0 : index
    %c0_47 = arith.constant 0 : index
    %71 = vector.load %arg3[%c1_45, %c0_46, %c0_47] : memref<3x32x32xf32, #tpu.memory_space<vmem>>, vector<1x32x32xf32>
    %72 = vector.shape_cast %71 : vector<1x32x32xf32> to vector<32x32xf32>
    %cst_48 = arith.constant dense<0.000000e+00> : vector<8x32xf32>
    %73 = tpu.matmul %64, %72, %cst_48 {dimension_numbers = #tpu.dot_dimension_numbers<[1], [0], [0], [1], [0, 0, 1, 1], [], []>} : vector<8x32xf32>, vector<32x32xf32>, vector<8x32xf32> -> vector<8x32xf32>
    %c2_49 = arith.constant 2 : index
    %c0_50 = arith.constant 0 : index
    %c0_51 = arith.constant 0 : index
    %74 = vector.load %arg3[%c2_49, %c0_50, %c0_51] : memref<3x32x32xf32, #tpu.memory_space<vmem>>, vector<1x32x32xf32>
    %75 = vector.shape_cast %74 : vector<1x32x32xf32> to vector<32x32xf32>
    %cst_52 = arith.constant dense<0.000000e+00> : vector<8x32xf32>
    %76 = tpu.matmul %64, %75, %cst_52 {dimension_numbers = #tpu.dot_dimension_numbers<[1], [0], [0], [1], [0, 0, 1, 1], [], []>} : vector<8x32xf32>, vector<32x32xf32>, vector<8x32xf32> -> vector<8x32xf32>
    %77 = vector.broadcast %26 : vector<1x32xf32> to vector<8x32xf32>
    %78 = arith.addf %76, %77 : vector<8x32xf32>
    %79 = vector.extract_strided_slice %9 {offsets = [1, 0, 0], sizes = [1, 8, 32], strides = [1, 1, 1]} : vector<8x8x32xf32> to vector<1x8x32xf32>
    %80 = vector.shape_cast %79 : vector<1x8x32xf32> to vector<8x32xf32>
    %81 = arith.addf %80, %70 : vector<8x32xf32>
    %82 = arith.negf %81 : vector<8x32xf32>
    %83 = math.exp %82 : vector<8x32xf32>
    %cst_53 = arith.constant 1.000000e+00 : f32
    %84 = vector.broadcast %cst_53 : f32 to vector<8x32xf32>
    %85 = arith.addf %84, %83 : vector<8x32xf32>
    %86 = arith.divf %84, %85 : vector<8x32xf32>
    %87 = vector.extract_strided_slice %17 {offsets = [1, 0, 0], sizes = [1, 8, 32], strides = [1, 1, 1]} : vector<8x8x32xf32> to vector<1x8x32xf32>
    %88 = vector.shape_cast %87 : vector<1x8x32xf32> to vector<8x32xf32>
    %89 = arith.addf %88, %73 : vector<8x32xf32>
    %90 = arith.negf %89 : vector<8x32xf32>
    %91 = math.exp %90 : vector<8x32xf32>
    %cst_54 = arith.constant 1.000000e+00 : f32
    %92 = vector.broadcast %cst_54 : f32 to vector<8x32xf32>
    %93 = arith.addf %92, %91 : vector<8x32xf32>
    %94 = arith.divf %92, %93 : vector<8x32xf32>
    %95 = vector.extract_strided_slice %25 {offsets = [1, 0, 0], sizes = [1, 8, 32], strides = [1, 1, 1]} : vector<8x8x32xf32> to vector<1x8x32xf32>
    %96 = vector.shape_cast %95 : vector<1x8x32xf32> to vector<8x32xf32>
    %97 = arith.mulf %86, %78 : vector<8x32xf32>
    %98 = arith.addf %96, %97 : vector<8x32xf32>
    %99 = math.tanh %98 : vector<8x32xf32>
    %cst_55 = arith.constant 1.000000e+00 : f32
    %100 = vector.broadcast %cst_55 : f32 to vector<8x32xf32>
    %101 = arith.subf %100, %94 : vector<8x32xf32>
    %102 = arith.mulf %101, %99 : vector<8x32xf32>
    %103 = arith.mulf %94, %64 : vector<8x32xf32>
    %104 = arith.addf %102, %103 : vector<8x32xf32>
    %c1_56 = arith.constant 1 : index
    %c0_57 = arith.constant 0 : index
    %c0_58 = arith.constant 0 : index
    %105 = vector.load %arg28[%c1_56, %c0_57, %c0_58] : memref<8x8x32xf32, #tpu.memory_space<vmem>>, vector<1x8x32xf32>
    %106 = vector.shape_cast %105 : vector<1x8x32xf32> to vector<8x32xf32>
    %107 = vector.shape_cast %104 : vector<8x32xf32> to vector<1x8x32xf32>
    tpu.vector_store %arg28[%c1_56, %c0_57, %c0_58], %107 {strides = array<i32>} : memref<8x8x32xf32, #tpu.memory_space<vmem>>, vector<1x8x32xf32>,
    %c0_59 = arith.constant 0 : index
    %c0_60 = arith.constant 0 : index
    %c0_61 = arith.constant 0 : index
    %108 = vector.load %arg3[%c0_59, %c0_60, %c0_61] : memref<3x32x32xf32, #tpu.memory_space<vmem>>, vector<1x32x32xf32>
    %109 = vector.shape_cast %108 : vector<1x32x32xf32> to vector<32x32xf32>
    %cst_62 = arith.constant dense<0.000000e+00> : vector<8x32xf32>
    %110 = tpu.matmul %104, %109, %cst_62 {dimension_numbers = #tpu.dot_dimension_numbers<[1], [0], [0], [1], [0, 0, 1, 1], [], []>} : vector<8x32xf32>, vector<32x32xf32>, vector<8x32xf32> -> vector<8x32xf32>
    %c1_63 = arith.constant 1 : index
    %c0_64 = arith.constant 0 : index
    %c0_65 = arith.constant 0 : index
    %111 = vector.load %arg3[%c1_63, %c0_64, %c0_65] : memref<3x32x32xf32, #tpu.memory_space<vmem>>, vector<1x32x32xf32>
    %112 = vector.shape_cast %111 : vector<1x32x32xf32> to vector<32x32xf32>
    %cst_66 = arith.constant dense<0.000000e+00> : vector<8x32xf32>
    %113 = tpu.matmul %104, %112, %cst_66 {dimension_numbers = #tpu.dot_dimension_numbers<[1], [0], [0], [1], [0, 0, 1, 1], [], []>} : vector<8x32xf32>, vector<32x32xf32>, vector<8x32xf32> -> vector<8x32xf32>
    %c2_67 = arith.constant 2 : index
    %c0_68 = arith.constant 0 : index
    %c0_69 = arith.constant 0 : index
    %114 = vector.load %arg3[%c2_67, %c0_68, %c0_69] : memref<3x32x32xf32, #tpu.memory_space<vmem>>, vector<1x32x32xf32>
    %115 = vector.shape_cast %114 : vector<1x32x32xf32> to vector<32x32xf32>
    %cst_70 = arith.constant dense<0.000000e+00> : vector<8x32xf32>
    %116 = tpu.matmul %104, %115, %cst_70 {dimension_numbers = #tpu.dot_dimension_numbers<[1], [0], [0], [1], [0, 0, 1, 1], [], []>} : vector<8x32xf32>, vector<32x32xf32>, vector<8x32xf32> -> vector<8x32xf32>
    %117 = vector.broadcast %26 : vector<1x32xf32> to vector<8x32xf32>
    %118 = arith.addf %116, %117 : vector<8x32xf32>
    %119 = vector.extract_strided_slice %9 {offsets = [2, 0, 0], sizes = [1, 8, 32], strides = [1, 1, 1]} : vector<8x8x32xf32> to vector<1x8x32xf32>
    %120 = vector.shape_cast %119 : vector<1x8x32xf32> to vector<8x32xf32>
    %121 = arith.addf %120, %110 : vector<8x32xf32>
    %122 = arith.negf %121 : vector<8x32xf32>
    %123 = math.exp %122 : vector<8x32xf32>
    %cst_71 = arith.constant 1.000000e+00 : f32
    %124 = vector.broadcast %cst_71 : f32 to vector<8x32xf32>
    %125 = arith.addf %124, %123 : vector<8x32xf32>
    %126 = arith.divf %124, %125 : vector<8x32xf32>
    %127 = vector.extract_strided_slice %17 {offsets = [2, 0, 0], sizes = [1, 8, 32], strides = [1, 1, 1]} : vector<8x8x32xf32> to vector<1x8x32xf32>
    %128 = vector.shape_cast %127 : vector<1x8x32xf32> to vector<8x32xf32>
    %129 = arith.addf %128, %113 : vector<8x32xf32>
    %130 = arith.negf %129 : vector<8x32xf32>
    %131 = math.exp %130 : vector<8x32xf32>
    %cst_72 = arith.constant 1.000000e+00 : f32
    %132 = vector.broadcast %cst_72 : f32 to vector<8x32xf32>
    %133 = arith.addf %132, %131 : vector<8x32xf32>
    %134 = arith.divf %132, %133 : vector<8x32xf32>
    %135 = vector.extract_strided_slice %25 {offsets = [2, 0, 0], sizes = [1, 8, 32], strides = [1, 1, 1]} : vector<8x8x32xf32> to vector<1x8x32xf32>
    %136 = vector.shape_cast %135 : vector<1x8x32xf32> to vector<8x32xf32>
    %137 = arith.mulf %126, %118 : vector<8x32xf32>
    %138 = arith.addf %136, %137 : vector<8x32xf32>
    %139 = math.tanh %138 : vector<8x32xf32>
    %cst_73 = arith.constant 1.000000e+00 : f32
    %140 = vector.broadcast %cst_73 : f32 to vector<8x32xf32>
    %141 = arith.subf %140, %134 : vector<8x32xf32>
    %142 = arith.mulf %141, %139 : vector<8x32xf32>
    %143 = arith.mulf %134, %104 : vector<8x32xf32>
    %144 = arith.addf %142, %143 : vector<8x32xf32>
    %c2_74 = arith.constant 2 : index
    %c0_75 = arith.constant 0 : index
    %c0_76 = arith.constant 0 : index
    %145 = vector.load %arg28[%c2_74, %c0_75, %c0_76] : memref<8x8x32xf32, #tpu.memory_space<vmem>>, vector<1x8x32xf32>
    %146 = vector.shape_cast %145 : vector<1x8x32xf32> to vector<8x32xf32>
    %147 = vector.shape_cast %144 : vector<8x32xf32> to vector<1x8x32xf32>
    tpu.vector_store %arg28[%c2_74, %c0_75, %c0_76], %147 {strides = array<i32>} : memref<8x8x32xf32, #tpu.memory_space<vmem>>, vector<1x8x32xf32>,
    %c0_77 = arith.constant 0 : index
    %c0_78 = arith.constant 0 : index
    %c0_79 = arith.constant 0 : index
    %148 = vector.load %arg3[%c0_77, %c0_78, %c0_79] : memref<3x32x32xf32, #tpu.memory_space<vmem>>, vector<1x32x32xf32>
    %149 = vector.shape_cast %148 : vector<1x32x32xf32> to vector<32x32xf32>
    %cst_80 = arith.constant dense<0.000000e+00> : vector<8x32xf32>
    %150 = tpu.matmul %144, %149, %cst_80 {dimension_numbers = #tpu.dot_dimension_numbers<[1], [0], [0], [1], [0, 0, 1, 1], [], []>} : vector<8x32xf32>, vector<32x32xf32>, vector<8x32xf32> -> vector<8x32xf32>
    %c1_81 = arith.constant 1 : index
    %c0_82 = arith.constant 0 : index
    %c0_83 = arith.constant 0 : index
    %151 = vector.load %arg3[%c1_81, %c0_82, %c0_83] : memref<3x32x32xf32, #tpu.memory_space<vmem>>, vector<1x32x32xf32>
    %152 = vector.shape_cast %151 : vector<1x32x32xf32> to vector<32x32xf32>
    %cst_84 = arith.constant dense<0.000000e+00> : vector<8x32xf32>
    %153 = tpu.matmul %144, %152, %cst_84 {dimension_numbers = #tpu.dot_dimension_numbers<[1], [0], [0], [1], [0, 0, 1, 1], [], []>} : vector<8x32xf32>, vector<32x32xf32>, vector<8x32xf32> -> vector<8x32xf32>
    %c2_85 = arith.constant 2 : index
    %c0_86 = arith.constant 0 : index
    %c0_87 = arith.constant 0 : index
    %154 = vector.load %arg3[%c2_85, %c0_86, %c0_87] : memref<3x32x32xf32, #tpu.memory_space<vmem>>, vector<1x32x32xf32>
    %155 = vector.shape_cast %154 : vector<1x32x32xf32> to vector<32x32xf32>
    %cst_88 = arith.constant dense<0.000000e+00> : vector<8x32xf32>
    %156 = tpu.matmul %144, %155, %cst_88 {dimension_numbers = #tpu.dot_dimension_numbers<[1], [0], [0], [1], [0, 0, 1, 1], [], []>} : vector<8x32xf32>, vector<32x32xf32>, vector<8x32xf32> -> vector<8x32xf32>
    %157 = vector.broadcast %26 : vector<1x32xf32> to vector<8x32xf32>
    %158 = arith.addf %156, %157 : vector<8x32xf32>
    %159 = vector.extract_strided_slice %9 {offsets = [3, 0, 0], sizes = [1, 8, 32], strides = [1, 1, 1]} : vector<8x8x32xf32> to vector<1x8x32xf32>
    %160 = vector.shape_cast %159 : vector<1x8x32xf32> to vector<8x32xf32>
    %161 = arith.addf %160, %150 : vector<8x32xf32>
    %162 = arith.negf %161 : vector<8x32xf32>
    %163 = math.exp %162 : vector<8x32xf32>
    %cst_89 = arith.constant 1.000000e+00 : f32
    %164 = vector.broadcast %cst_89 : f32 to vector<8x32xf32>
    %165 = arith.addf %164, %163 : vector<8x32xf32>
    %166 = arith.divf %164, %165 : vector<8x32xf32>
    %167 = vector.extract_strided_slice %17 {offsets = [3, 0, 0], sizes = [1, 8, 32], strides = [1, 1, 1]} : vector<8x8x32xf32> to vector<1x8x32xf32>
    %168 = vector.shape_cast %167 : vector<1x8x32xf32> to vector<8x32xf32>
    %169 = arith.addf %168, %153 : vector<8x32xf32>
    %170 = arith.negf %169 : vector<8x32xf32>
    %171 = math.exp %170 : vector<8x32xf32>
    %cst_90 = arith.constant 1.000000e+00 : f32
    %172 = vector.broadcast %cst_90 : f32 to vector<8x32xf32>
    %173 = arith.addf %172, %171 : vector<8x32xf32>
    %174 = arith.divf %172, %173 : vector<8x32xf32>
    %175 = vector.extract_strided_slice %25 {offsets = [3, 0, 0], sizes = [1, 8, 32], strides = [1, 1, 1]} : vector<8x8x32xf32> to vector<1x8x32xf32>
    %176 = vector.shape_cast %175 : vector<1x8x32xf32> to vector<8x32xf32>
    %177 = arith.mulf %166, %158 : vector<8x32xf32>
    %178 = arith.addf %176, %177 : vector<8x32xf32>
    %179 = math.tanh %178 : vector<8x32xf32>
    %cst_91 = arith.constant 1.000000e+00 : f32
    %180 = vector.broadcast %cst_91 : f32 to vector<8x32xf32>
    %181 = arith.subf %180, %174 : vector<8x32xf32>
    %182 = arith.mulf %181, %179 : vector<8x32xf32>
    %183 = arith.mulf %174, %144 : vector<8x32xf32>
    %184 = arith.addf %182, %183 : vector<8x32xf32>
    %c3 = arith.constant 3 : index
    %c0_92 = arith.constant 0 : index
    %c0_93 = arith.constant 0 : index
    %185 = vector.load %arg28[%c3, %c0_92, %c0_93] : memref<8x8x32xf32, #tpu.memory_space<vmem>>, vector<1x8x32xf32>
    %186 = vector.shape_cast %185 : vector<1x8x32xf32> to vector<8x32xf32>
    %187 = vector.shape_cast %184 : vector<8x32xf32> to vector<1x8x32xf32>
    tpu.vector_store %arg28[%c3, %c0_92, %c0_93], %187 {strides = array<i32>} : memref<8x8x32xf32, #tpu.memory_space<vmem>>, vector<1x8x32xf32>,
    %c0_94 = arith.constant 0 : index
    %c0_95 = arith.constant 0 : index
    %c0_96 = arith.constant 0 : index
    %188 = vector.load %arg3[%c0_94, %c0_95, %c0_96] : memref<3x32x32xf32, #tpu.memory_space<vmem>>, vector<1x32x32xf32>
    %189 = vector.shape_cast %188 : vector<1x32x32xf32> to vector<32x32xf32>
    %cst_97 = arith.constant dense<0.000000e+00> : vector<8x32xf32>
    %190 = tpu.matmul %184, %189, %cst_97 {dimension_numbers = #tpu.dot_dimension_numbers<[1], [0], [0], [1], [0, 0, 1, 1], [], []>} : vector<8x32xf32>, vector<32x32xf32>, vector<8x32xf32> -> vector<8x32xf32>
    %c1_98 = arith.constant 1 : index
    %c0_99 = arith.constant 0 : index
    %c0_100 = arith.constant 0 : index
    %191 = vector.load %arg3[%c1_98, %c0_99, %c0_100] : memref<3x32x32xf32, #tpu.memory_space<vmem>>, vector<1x32x32xf32>
    %192 = vector.shape_cast %191 : vector<1x32x32xf32> to vector<32x32xf32>
    %cst_101 = arith.constant dense<0.000000e+00> : vector<8x32xf32>
    %193 = tpu.matmul %184, %192, %cst_101 {dimension_numbers = #tpu.dot_dimension_numbers<[1], [0], [0], [1], [0, 0, 1, 1], [], []>} : vector<8x32xf32>, vector<32x32xf32>, vector<8x32xf32> -> vector<8x32xf32>
    %c2_102 = arith.constant 2 : index
    %c0_103 = arith.constant 0 : index
    %c0_104 = arith.constant 0 : index
    %194 = vector.load %arg3[%c2_102, %c0_103, %c0_104] : memref<3x32x32xf32, #tpu.memory_space<vmem>>, vector<1x32x32xf32>
    %195 = vector.shape_cast %194 : vector<1x32x32xf32> to vector<32x32xf32>
    %cst_105 = arith.constant dense<0.000000e+00> : vector<8x32xf32>
    %196 = tpu.matmul %184, %195, %cst_105 {dimension_numbers = #tpu.dot_dimension_numbers<[1], [0], [0], [1], [0, 0, 1, 1], [], []>} : vector<8x32xf32>, vector<32x32xf32>, vector<8x32xf32> -> vector<8x32xf32>
    %197 = vector.broadcast %26 : vector<1x32xf32> to vector<8x32xf32>
    %198 = arith.addf %196, %197 : vector<8x32xf32>
    %199 = vector.extract_strided_slice %9 {offsets = [4, 0, 0], sizes = [1, 8, 32], strides = [1, 1, 1]} : vector<8x8x32xf32> to vector<1x8x32xf32>
    %200 = vector.shape_cast %199 : vector<1x8x32xf32> to vector<8x32xf32>
    %201 = arith.addf %200, %190 : vector<8x32xf32>
    %202 = arith.negf %201 : vector<8x32xf32>
    %203 = math.exp %202 : vector<8x32xf32>
    %cst_106 = arith.constant 1.000000e+00 : f32
    %204 = vector.broadcast %cst_106 : f32 to vector<8x32xf32>
    %205 = arith.addf %204, %203 : vector<8x32xf32>
    %206 = arith.divf %204, %205 : vector<8x32xf32>
    %207 = vector.extract_strided_slice %17 {offsets = [4, 0, 0], sizes = [1, 8, 32], strides = [1, 1, 1]} : vector<8x8x32xf32> to vector<1x8x32xf32>
    %208 = vector.shape_cast %207 : vector<1x8x32xf32> to vector<8x32xf32>
    %209 = arith.addf %208, %193 : vector<8x32xf32>
    %210 = arith.negf %209 : vector<8x32xf32>
    %211 = math.exp %210 : vector<8x32xf32>
    %cst_107 = arith.constant 1.000000e+00 : f32
    %212 = vector.broadcast %cst_107 : f32 to vector<8x32xf32>
    %213 = arith.addf %212, %211 : vector<8x32xf32>
    %214 = arith.divf %212, %213 : vector<8x32xf32>
    %215 = vector.extract_strided_slice %25 {offsets = [4, 0, 0], sizes = [1, 8, 32], strides = [1, 1, 1]} : vector<8x8x32xf32> to vector<1x8x32xf32>
    %216 = vector.shape_cast %215 : vector<1x8x32xf32> to vector<8x32xf32>
    %217 = arith.mulf %206, %198 : vector<8x32xf32>
    %218 = arith.addf %216, %217 : vector<8x32xf32>
    %219 = math.tanh %218 : vector<8x32xf32>
    %cst_108 = arith.constant 1.000000e+00 : f32
    %220 = vector.broadcast %cst_108 : f32 to vector<8x32xf32>
    %221 = arith.subf %220, %214 : vector<8x32xf32>
    %222 = arith.mulf %221, %219 : vector<8x32xf32>
    %223 = arith.mulf %214, %184 : vector<8x32xf32>
    %224 = arith.addf %222, %223 : vector<8x32xf32>
    %c4 = arith.constant 4 : index
    %c0_109 = arith.constant 0 : index
    %c0_110 = arith.constant 0 : index
    %225 = vector.load %arg28[%c4, %c0_109, %c0_110] : memref<8x8x32xf32, #tpu.memory_space<vmem>>, vector<1x8x32xf32>
    %226 = vector.shape_cast %225 : vector<1x8x32xf32> to vector<8x32xf32>
    %227 = vector.shape_cast %224 : vector<8x32xf32> to vector<1x8x32xf32>
    tpu.vector_store %arg28[%c4, %c0_109, %c0_110], %227 {strides = array<i32>} : memref<8x8x32xf32, #tpu.memory_space<vmem>>, vector<1x8x32xf32>,
    %c0_111 = arith.constant 0 : index
    %c0_112 = arith.constant 0 : index
    %c0_113 = arith.constant 0 : index
    %228 = vector.load %arg3[%c0_111, %c0_112, %c0_113] : memref<3x32x32xf32, #tpu.memory_space<vmem>>, vector<1x32x32xf32>
    %229 = vector.shape_cast %228 : vector<1x32x32xf32> to vector<32x32xf32>
    %cst_114 = arith.constant dense<0.000000e+00> : vector<8x32xf32>
    %230 = tpu.matmul %224, %229, %cst_114 {dimension_numbers = #tpu.dot_dimension_numbers<[1], [0], [0], [1], [0, 0, 1, 1], [], []>} : vector<8x32xf32>, vector<32x32xf32>, vector<8x32xf32> -> vector<8x32xf32>
    %c1_115 = arith.constant 1 : index
    %c0_116 = arith.constant 0 : index
    %c0_117 = arith.constant 0 : index
    %231 = vector.load %arg3[%c1_115, %c0_116, %c0_117] : memref<3x32x32xf32, #tpu.memory_space<vmem>>, vector<1x32x32xf32>
    %232 = vector.shape_cast %231 : vector<1x32x32xf32> to vector<32x32xf32>
    %cst_118 = arith.constant dense<0.000000e+00> : vector<8x32xf32>
    %233 = tpu.matmul %224, %232, %cst_118 {dimension_numbers = #tpu.dot_dimension_numbers<[1], [0], [0], [1], [0, 0, 1, 1], [], []>} : vector<8x32xf32>, vector<32x32xf32>, vector<8x32xf32> -> vector<8x32xf32>
    %c2_119 = arith.constant 2 : index
    %c0_120 = arith.constant 0 : index
    %c0_121 = arith.constant 0 : index
    %234 = vector.load %arg3[%c2_119, %c0_120, %c0_121] : memref<3x32x32xf32, #tpu.memory_space<vmem>>, vector<1x32x32xf32>
    %235 = vector.shape_cast %234 : vector<1x32x32xf32> to vector<32x32xf32>
    %cst_122 = arith.constant dense<0.000000e+00> : vector<8x32xf32>
    %236 = tpu.matmul %224, %235, %cst_122 {dimension_numbers = #tpu.dot_dimension_numbers<[1], [0], [0], [1], [0, 0, 1, 1], [], []>} : vector<8x32xf32>, vector<32x32xf32>, vector<8x32xf32> -> vector<8x32xf32>
    %237 = vector.broadcast %26 : vector<1x32xf32> to vector<8x32xf32>
    %238 = arith.addf %236, %237 : vector<8x32xf32>
    %239 = vector.extract_strided_slice %9 {offsets = [5, 0, 0], sizes = [1, 8, 32], strides = [1, 1, 1]} : vector<8x8x32xf32> to vector<1x8x32xf32>
    %240 = vector.shape_cast %239 : vector<1x8x32xf32> to vector<8x32xf32>
    %241 = arith.addf %240, %230 : vector<8x32xf32>
    %242 = arith.negf %241 : vector<8x32xf32>
    %243 = math.exp %242 : vector<8x32xf32>
    %cst_123 = arith.constant 1.000000e+00 : f32
    %244 = vector.broadcast %cst_123 : f32 to vector<8x32xf32>
    %245 = arith.addf %244, %243 : vector<8x32xf32>
    %246 = arith.divf %244, %245 : vector<8x32xf32>
    %247 = vector.extract_strided_slice %17 {offsets = [5, 0, 0], sizes = [1, 8, 32], strides = [1, 1, 1]} : vector<8x8x32xf32> to vector<1x8x32xf32>
    %248 = vector.shape_cast %247 : vector<1x8x32xf32> to vector<8x32xf32>
    %249 = arith.addf %248, %233 : vector<8x32xf32>
    %250 = arith.negf %249 : vector<8x32xf32>
    %251 = math.exp %250 : vector<8x32xf32>
    %cst_124 = arith.constant 1.000000e+00 : f32
    %252 = vector.broadcast %cst_124 : f32 to vector<8x32xf32>
    %253 = arith.addf %252, %251 : vector<8x32xf32>
    %254 = arith.divf %252, %253 : vector<8x32xf32>
    %255 = vector.extract_strided_slice %25 {offsets = [5, 0, 0], sizes = [1, 8, 32], strides = [1, 1, 1]} : vector<8x8x32xf32> to vector<1x8x32xf32>
    %256 = vector.shape_cast %255 : vector<1x8x32xf32> to vector<8x32xf32>
    %257 = arith.mulf %246, %238 : vector<8x32xf32>
    %258 = arith.addf %256, %257 : vector<8x32xf32>
    %259 = math.tanh %258 : vector<8x32xf32>
    %cst_125 = arith.constant 1.000000e+00 : f32
    %260 = vector.broadcast %cst_125 : f32 to vector<8x32xf32>
    %261 = arith.subf %260, %254 : vector<8x32xf32>
    %262 = arith.mulf %261, %259 : vector<8x32xf32>
    %263 = arith.mulf %254, %224 : vector<8x32xf32>
    %264 = arith.addf %262, %263 : vector<8x32xf32>
    %c5 = arith.constant 5 : index
    %c0_126 = arith.constant 0 : index
    %c0_127 = arith.constant 0 : index
    %265 = vector.load %arg28[%c5, %c0_126, %c0_127] : memref<8x8x32xf32, #tpu.memory_space<vmem>>, vector<1x8x32xf32>
    %266 = vector.shape_cast %265 : vector<1x8x32xf32> to vector<8x32xf32>
    %267 = vector.shape_cast %264 : vector<8x32xf32> to vector<1x8x32xf32>
    tpu.vector_store %arg28[%c5, %c0_126, %c0_127], %267 {strides = array<i32>} : memref<8x8x32xf32, #tpu.memory_space<vmem>>, vector<1x8x32xf32>,
    %c0_128 = arith.constant 0 : index
    %c0_129 = arith.constant 0 : index
    %c0_130 = arith.constant 0 : index
    %268 = vector.load %arg3[%c0_128, %c0_129, %c0_130] : memref<3x32x32xf32, #tpu.memory_space<vmem>>, vector<1x32x32xf32>
    %269 = vector.shape_cast %268 : vector<1x32x32xf32> to vector<32x32xf32>
    %cst_131 = arith.constant dense<0.000000e+00> : vector<8x32xf32>
    %270 = tpu.matmul %264, %269, %cst_131 {dimension_numbers = #tpu.dot_dimension_numbers<[1], [0], [0], [1], [0, 0, 1, 1], [], []>} : vector<8x32xf32>, vector<32x32xf32>, vector<8x32xf32> -> vector<8x32xf32>
    %c1_132 = arith.constant 1 : index
    %c0_133 = arith.constant 0 : index
    %c0_134 = arith.constant 0 : index
    %271 = vector.load %arg3[%c1_132, %c0_133, %c0_134] : memref<3x32x32xf32, #tpu.memory_space<vmem>>, vector<1x32x32xf32>
    %272 = vector.shape_cast %271 : vector<1x32x32xf32> to vector<32x32xf32>
    %cst_135 = arith.constant dense<0.000000e+00> : vector<8x32xf32>
    %273 = tpu.matmul %264, %272, %cst_135 {dimension_numbers = #tpu.dot_dimension_numbers<[1], [0], [0], [1], [0, 0, 1, 1], [], []>} : vector<8x32xf32>, vector<32x32xf32>, vector<8x32xf32> -> vector<8x32xf32>
    %c2_136 = arith.constant 2 : index
    %c0_137 = arith.constant 0 : index
    %c0_138 = arith.constant 0 : index
    %274 = vector.load %arg3[%c2_136, %c0_137, %c0_138] : memref<3x32x32xf32, #tpu.memory_space<vmem>>, vector<1x32x32xf32>
    %275 = vector.shape_cast %274 : vector<1x32x32xf32> to vector<32x32xf32>
    %cst_139 = arith.constant dense<0.000000e+00> : vector<8x32xf32>
    %276 = tpu.matmul %264, %275, %cst_139 {dimension_numbers = #tpu.dot_dimension_numbers<[1], [0], [0], [1], [0, 0, 1, 1], [], []>} : vector<8x32xf32>, vector<32x32xf32>, vector<8x32xf32> -> vector<8x32xf32>
    %277 = vector.broadcast %26 : vector<1x32xf32> to vector<8x32xf32>
    %278 = arith.addf %276, %277 : vector<8x32xf32>
    %279 = vector.extract_strided_slice %9 {offsets = [6, 0, 0], sizes = [1, 8, 32], strides = [1, 1, 1]} : vector<8x8x32xf32> to vector<1x8x32xf32>
    %280 = vector.shape_cast %279 : vector<1x8x32xf32> to vector<8x32xf32>
    %281 = arith.addf %280, %270 : vector<8x32xf32>
    %282 = arith.negf %281 : vector<8x32xf32>
    %283 = math.exp %282 : vector<8x32xf32>
    %cst_140 = arith.constant 1.000000e+00 : f32
    %284 = vector.broadcast %cst_140 : f32 to vector<8x32xf32>
    %285 = arith.addf %284, %283 : vector<8x32xf32>
    %286 = arith.divf %284, %285 : vector<8x32xf32>
    %287 = vector.extract_strided_slice %17 {offsets = [6, 0, 0], sizes = [1, 8, 32], strides = [1, 1, 1]} : vector<8x8x32xf32> to vector<1x8x32xf32>
    %288 = vector.shape_cast %287 : vector<1x8x32xf32> to vector<8x32xf32>
    %289 = arith.addf %288, %273 : vector<8x32xf32>
    %290 = arith.negf %289 : vector<8x32xf32>
    %291 = math.exp %290 : vector<8x32xf32>
    %cst_141 = arith.constant 1.000000e+00 : f32
    %292 = vector.broadcast %cst_141 : f32 to vector<8x32xf32>
    %293 = arith.addf %292, %291 : vector<8x32xf32>
    %294 = arith.divf %292, %293 : vector<8x32xf32>
    %295 = vector.extract_strided_slice %25 {offsets = [6, 0, 0], sizes = [1, 8, 32], strides = [1, 1, 1]} : vector<8x8x32xf32> to vector<1x8x32xf32>
    %296 = vector.shape_cast %295 : vector<1x8x32xf32> to vector<8x32xf32>
    %297 = arith.mulf %286, %278 : vector<8x32xf32>
    %298 = arith.addf %296, %297 : vector<8x32xf32>
    %299 = math.tanh %298 : vector<8x32xf32>
    %cst_142 = arith.constant 1.000000e+00 : f32
    %300 = vector.broadcast %cst_142 : f32 to vector<8x32xf32>
    %301 = arith.subf %300, %294 : vector<8x32xf32>
    %302 = arith.mulf %301, %299 : vector<8x32xf32>
    %303 = arith.mulf %294, %264 : vector<8x32xf32>
    %304 = arith.addf %302, %303 : vector<8x32xf32>
    %c6 = arith.constant 6 : index
    %c0_143 = arith.constant 0 : index
    %c0_144 = arith.constant 0 : index
    %305 = vector.load %arg28[%c6, %c0_143, %c0_144] : memref<8x8x32xf32, #tpu.memory_space<vmem>>, vector<1x8x32xf32>
    %306 = vector.shape_cast %305 : vector<1x8x32xf32> to vector<8x32xf32>
    %307 = vector.shape_cast %304 : vector<8x32xf32> to vector<1x8x32xf32>
    tpu.vector_store %arg28[%c6, %c0_143, %c0_144], %307 {strides = array<i32>} : memref<8x8x32xf32, #tpu.memory_space<vmem>>, vector<1x8x32xf32>,
    %c0_145 = arith.constant 0 : index
    %c0_146 = arith.constant 0 : index
    %c0_147 = arith.constant 0 : index
    %308 = vector.load %arg3[%c0_145, %c0_146, %c0_147] : memref<3x32x32xf32, #tpu.memory_space<vmem>>, vector<1x32x32xf32>
    %309 = vector.shape_cast %308 : vector<1x32x32xf32> to vector<32x32xf32>
    %cst_148 = arith.constant dense<0.000000e+00> : vector<8x32xf32>
    %310 = tpu.matmul %304, %309, %cst_148 {dimension_numbers = #tpu.dot_dimension_numbers<[1], [0], [0], [1], [0, 0, 1, 1], [], []>} : vector<8x32xf32>, vector<32x32xf32>, vector<8x32xf32> -> vector<8x32xf32>
    %c1_149 = arith.constant 1 : index
    %c0_150 = arith.constant 0 : index
    %c0_151 = arith.constant 0 : index
    %311 = vector.load %arg3[%c1_149, %c0_150, %c0_151] : memref<3x32x32xf32, #tpu.memory_space<vmem>>, vector<1x32x32xf32>
    %312 = vector.shape_cast %311 : vector<1x32x32xf32> to vector<32x32xf32>
    %cst_152 = arith.constant dense<0.000000e+00> : vector<8x32xf32>
    %313 = tpu.matmul %304, %312, %cst_152 {dimension_numbers = #tpu.dot_dimension_numbers<[1], [0], [0], [1], [0, 0, 1, 1], [], []>} : vector<8x32xf32>, vector<32x32xf32>, vector<8x32xf32> -> vector<8x32xf32>
    %c2_153 = arith.constant 2 : index
    %c0_154 = arith.constant 0 : index
    %c0_155 = arith.constant 0 : index
    %314 = vector.load %arg3[%c2_153, %c0_154, %c0_155] : memref<3x32x32xf32, #tpu.memory_space<vmem>>, vector<1x32x32xf32>
    %315 = vector.shape_cast %314 : vector<1x32x32xf32> to vector<32x32xf32>
    %cst_156 = arith.constant dense<0.000000e+00> : vector<8x32xf32>
    %316 = tpu.matmul %304, %315, %cst_156 {dimension_numbers = #tpu.dot_dimension_numbers<[1], [0], [0], [1], [0, 0, 1, 1], [], []>} : vector<8x32xf32>, vector<32x32xf32>, vector<8x32xf32> -> vector<8x32xf32>
    %317 = vector.broadcast %26 : vector<1x32xf32> to vector<8x32xf32>
    %318 = arith.addf %316, %317 : vector<8x32xf32>
    %319 = vector.extract_strided_slice %9 {offsets = [7, 0, 0], sizes = [1, 8, 32], strides = [1, 1, 1]} : vector<8x8x32xf32> to vector<1x8x32xf32>
    %320 = vector.shape_cast %319 : vector<1x8x32xf32> to vector<8x32xf32>
    %321 = arith.addf %320, %310 : vector<8x32xf32>
    %322 = arith.negf %321 : vector<8x32xf32>
    %323 = math.exp %322 : vector<8x32xf32>
    %cst_157 = arith.constant 1.000000e+00 : f32
    %324 = vector.broadcast %cst_157 : f32 to vector<8x32xf32>
    %325 = arith.addf %324, %323 : vector<8x32xf32>
    %326 = arith.divf %324, %325 : vector<8x32xf32>
    %327 = vector.extract_strided_slice %17 {offsets = [7, 0, 0], sizes = [1, 8, 32], strides = [1, 1, 1]} : vector<8x8x32xf32> to vector<1x8x32xf32>
    %328 = vector.shape_cast %327 : vector<1x8x32xf32> to vector<8x32xf32>
    %329 = arith.addf %328, %313 : vector<8x32xf32>
    %330 = arith.negf %329 : vector<8x32xf32>
    %331 = math.exp %330 : vector<8x32xf32>
    %cst_158 = arith.constant 1.000000e+00 : f32
    %332 = vector.broadcast %cst_158 : f32 to vector<8x32xf32>
    %333 = arith.addf %332, %331 : vector<8x32xf32>
    %334 = arith.divf %332, %333 : vector<8x32xf32>
    %335 = vector.extract_strided_slice %25 {offsets = [7, 0, 0], sizes = [1, 8, 32], strides = [1, 1, 1]} : vector<8x8x32xf32> to vector<1x8x32xf32>
    %336 = vector.shape_cast %335 : vector<1x8x32xf32> to vector<8x32xf32>
    %337 = arith.mulf %326, %318 : vector<8x32xf32>
    %338 = arith.addf %336, %337 : vector<8x32xf32>
    %339 = math.tanh %338 : vector<8x32xf32>
    %cst_159 = arith.constant 1.000000e+00 : f32
    %340 = vector.broadcast %cst_159 : f32 to vector<8x32xf32>
    %341 = arith.subf %340, %334 : vector<8x32xf32>
    %342 = arith.mulf %341, %339 : vector<8x32xf32>
    %343 = arith.mulf %334, %304 : vector<8x32xf32>
    %344 = arith.addf %342, %343 : vector<8x32xf32>
    %c7 = arith.constant 7 : index
    %c0_160 = arith.constant 0 : index
    %c0_161 = arith.constant 0 : index
    %345 = vector.load %arg28[%c7, %c0_160, %c0_161] : memref<8x8x32xf32, #tpu.memory_space<vmem>>, vector<1x8x32xf32>
    %346 = vector.shape_cast %345 : vector<1x8x32xf32> to vector<8x32xf32>
    %347 = vector.shape_cast %344 : vector<8x32xf32> to vector<1x8x32xf32>
    tpu.vector_store %arg28[%c7, %c0_160, %c0_161], %347 {strides = array<i32>} : memref<8x8x32xf32, #tpu.memory_space<vmem>>, vector<1x8x32xf32>,
    %c0_162 = arith.constant 0 : index
    %c0_163 = arith.constant 0 : index
    %c0_164 = arith.constant 0 : index
    %348 = vector.load %arg28[%c0_162, %c0_163, %c0_164] : memref<8x8x32xf32, #tpu.memory_space<vmem>>, vector<8x8x32xf32>
    %349 = vector.shape_cast %348 : vector<8x8x32xf32> to vector<64x32xf32>
    %c0_165 = arith.constant 0 : index
    %c0_166 = arith.constant 0 : index
    %c0_167 = arith.constant 0 : index
    %350 = vector.load %arg6[%c0_165, %c0_166, %c0_167] : memref<3x32x32xf32, #tpu.memory_space<vmem>>, vector<1x32x32xf32>
    %351 = vector.shape_cast %350 : vector<1x32x32xf32> to vector<32x32xf32>
    %cst_168 = arith.constant dense<0.000000e+00> : vector<64x32xf32>
    %352 = tpu.matmul %349, %351, %cst_168 {dimension_numbers = #tpu.dot_dimension_numbers<[1], [0], [0], [1], [0, 0, 1, 1], [], []>} : vector<64x32xf32>, vector<32x32xf32>, vector<64x32xf32> -> vector<64x32xf32>
    %c0_169 = arith.constant 0 : index
    %c0_170 = arith.constant 0 : index
    %c0_171 = arith.constant 0 : index
    %353 = vector.load %arg8[%c0_169, %c0_170, %c0_171] : memref<3x1x32xf32, #tpu.memory_space<vmem>>, vector<1x1x32xf32>
    %354 = vector.shape_cast %353 : vector<1x1x32xf32> to vector<1x32xf32>
    %355 = vector.broadcast %354 : vector<1x32xf32> to vector<64x32xf32>
    %356 = arith.addf %352, %355 : vector<64x32xf32>
    %357 = vector.shape_cast %356 : vector<64x32xf32> to vector<8x8x32xf32>
    %c1_172 = arith.constant 1 : index
    %c0_173 = arith.constant 0 : index
    %c0_174 = arith.constant 0 : index
    %358 = vector.load %arg6[%c1_172, %c0_173, %c0_174] : memref<3x32x32xf32, #tpu.memory_space<vmem>>, vector<1x32x32xf32>
    %359 = vector.shape_cast %358 : vector<1x32x32xf32> to vector<32x32xf32>
    %cst_175 = arith.constant dense<0.000000e+00> : vector<64x32xf32>
    %360 = tpu.matmul %349, %359, %cst_175 {dimension_numbers = #tpu.dot_dimension_numbers<[1], [0], [0], [1], [0, 0, 1, 1], [], []>} : vector<64x32xf32>, vector<32x32xf32>, vector<64x32xf32> -> vector<64x32xf32>
    %c1_176 = arith.constant 1 : index
    %c0_177 = arith.constant 0 : index
    %c0_178 = arith.constant 0 : index
    %361 = vector.load %arg8[%c1_176, %c0_177, %c0_178] : memref<3x1x32xf32, #tpu.memory_space<vmem>>, vector<1x1x32xf32>
    %362 = vector.shape_cast %361 : vector<1x1x32xf32> to vector<1x32xf32>
    %363 = vector.broadcast %362 : vector<1x32xf32> to vector<64x32xf32>
    %364 = arith.addf %360, %363 : vector<64x32xf32>
    %365 = vector.shape_cast %364 : vector<64x32xf32> to vector<8x8x32xf32>
    %c2_179 = arith.constant 2 : index
    %c0_180 = arith.constant 0 : index
    %c0_181 = arith.constant 0 : index
    %366 = vector.load %arg6[%c2_179, %c0_180, %c0_181] : memref<3x32x32xf32, #tpu.memory_space<vmem>>, vector<1x32x32xf32>
    %367 = vector.shape_cast %366 : vector<1x32x32xf32> to vector<32x32xf32>
    %cst_182 = arith.constant dense<0.000000e+00> : vector<64x32xf32>
    %368 = tpu.matmul %349, %367, %cst_182 {dimension_numbers = #tpu.dot_dimension_numbers<[1], [0], [0], [1], [0, 0, 1, 1], [], []>} : vector<64x32xf32>, vector<32x32xf32>, vector<64x32xf32> -> vector<64x32xf32>
    %c2_183 = arith.constant 2 : index
    %c0_184 = arith.constant 0 : index
    %c0_185 = arith.constant 0 : index
    %369 = vector.load %arg8[%c2_183, %c0_184, %c0_185] : memref<3x1x32xf32, #tpu.memory_space<vmem>>, vector<1x1x32xf32>
    %370 = vector.shape_cast %369 : vector<1x1x32xf32> to vector<1x32xf32>
    %371 = vector.broadcast %370 : vector<1x32xf32> to vector<64x32xf32>
    %372 = arith.addf %368, %371 : vector<64x32xf32>
    %373 = vector.shape_cast %372 : vector<64x32xf32> to vector<8x8x32xf32>
    %c0_186 = arith.constant 0 : index
    %c0_187 = arith.constant 0 : index
    %374 = vector.load %arg9[%c0_186, %c0_187] : memref<1x32xf32, #tpu.memory_space<vmem>>, vector<1x32xf32>
    %cst_188 = arith.constant 0.000000e+00 : f32
    %375 = vector.broadcast %cst_188 : f32 to vector<8x32xf32>
    %c0_189 = arith.constant 0 : index
    %c0_190 = arith.constant 0 : index
    %c0_191 = arith.constant 0 : index
    %376 = vector.load %arg7[%c0_189, %c0_190, %c0_191] : memref<3x32x32xf32, #tpu.memory_space<vmem>>, vector<1x32x32xf32>
    %377 = vector.shape_cast %376 : vector<1x32x32xf32> to vector<32x32xf32>
    %cst_192 = arith.constant dense<0.000000e+00> : vector<8x32xf32>
    %378 = tpu.matmul %375, %377, %cst_192 {dimension_numbers = #tpu.dot_dimension_numbers<[1], [0], [0], [1], [0, 0, 1, 1], [], []>} : vector<8x32xf32>, vector<32x32xf32>, vector<8x32xf32> -> vector<8x32xf32>
    %c1_193 = arith.constant 1 : index
    %c0_194 = arith.constant 0 : index
    %c0_195 = arith.constant 0 : index
    %379 = vector.load %arg7[%c1_193, %c0_194, %c0_195] : memref<3x32x32xf32, #tpu.memory_space<vmem>>, vector<1x32x32xf32>
    %380 = vector.shape_cast %379 : vector<1x32x32xf32> to vector<32x32xf32>
    %cst_196 = arith.constant dense<0.000000e+00> : vector<8x32xf32>
    %381 = tpu.matmul %375, %380, %cst_196 {dimension_numbers = #tpu.dot_dimension_numbers<[1], [0], [0], [1], [0, 0, 1, 1], [], []>} : vector<8x32xf32>, vector<32x32xf32>, vector<8x32xf32> -> vector<8x32xf32>
    %c2_197 = arith.constant 2 : index
    %c0_198 = arith.constant 0 : index
    %c0_199 = arith.constant 0 : index
    %382 = vector.load %arg7[%c2_197, %c0_198, %c0_199] : memref<3x32x32xf32, #tpu.memory_space<vmem>>, vector<1x32x32xf32>
    %383 = vector.shape_cast %382 : vector<1x32x32xf32> to vector<32x32xf32>
    %cst_200 = arith.constant dense<0.000000e+00> : vector<8x32xf32>
    %384 = tpu.matmul %375, %383, %cst_200 {dimension_numbers = #tpu.dot_dimension_numbers<[1], [0], [0], [1], [0, 0, 1, 1], [], []>} : vector<8x32xf32>, vector<32x32xf32>, vector<8x32xf32> -> vector<8x32xf32>
    %385 = vector.broadcast %374 : vector<1x32xf32> to vector<8x32xf32>
    %386 = arith.addf %384, %385 : vector<8x32xf32>
    %387 = vector.extract_strided_slice %357 {offsets = [0, 0, 0], sizes = [1, 8, 32], strides = [1, 1, 1]} : vector<8x8x32xf32> to vector<1x8x32xf32>
    %388 = vector.shape_cast %387 : vector<1x8x32xf32> to vector<8x32xf32>
    %389 = arith.addf %388, %378 : vector<8x32xf32>
    %390 = arith.negf %389 : vector<8x32xf32>
    %391 = math.exp %390 : vector<8x32xf32>
    %cst_201 = arith.constant 1.000000e+00 : f32
    %392 = vector.broadcast %cst_201 : f32 to vector<8x32xf32>
    %393 = arith.addf %392, %391 : vector<8x32xf32>
    %394 = arith.divf %392, %393 : vector<8x32xf32>
    %395 = vector.extract_strided_slice %365 {offsets = [0, 0, 0], sizes = [1, 8, 32], strides = [1, 1, 1]} : vector<8x8x32xf32> to vector<1x8x32xf32>
    %396 = vector.shape_cast %395 : vector<1x8x32xf32> to vector<8x32xf32>
    %397 = arith.addf %396, %381 : vector<8x32xf32>
    %398 = arith.negf %397 : vector<8x32xf32>
    %399 = math.exp %398 : vector<8x32xf32>
    %cst_202 = arith.constant 1.000000e+00 : f32
    %400 = vector.broadcast %cst_202 : f32 to vector<8x32xf32>
    %401 = arith.addf %400, %399 : vector<8x32xf32>
    %402 = arith.divf %400, %401 : vector<8x32xf32>
    %403 = vector.extract_strided_slice %373 {offsets = [0, 0, 0], sizes = [1, 8, 32], strides = [1, 1, 1]} : vector<8x8x32xf32> to vector<1x8x32xf32>
    %404 = vector.shape_cast %403 : vector<1x8x32xf32> to vector<8x32xf32>
    %405 = arith.mulf %394, %386 : vector<8x32xf32>
    %406 = arith.addf %404, %405 : vector<8x32xf32>
    %407 = math.tanh %406 : vector<8x32xf32>
    %cst_203 = arith.constant 1.000000e+00 : f32
    %408 = vector.broadcast %cst_203 : f32 to vector<8x32xf32>
    %409 = arith.subf %408, %402 : vector<8x32xf32>
    %410 = arith.mulf %409, %407 : vector<8x32xf32>
    %411 = arith.mulf %402, %375 : vector<8x32xf32>
    %412 = arith.addf %410, %411 : vector<8x32xf32>
    %c0_204 = arith.constant 0 : index
    %c0_205 = arith.constant 0 : index
    %c0_206 = arith.constant 0 : index
    %413 = vector.load %arg29[%c0_204, %c0_205, %c0_206] : memref<8x8x32xf32, #tpu.memory_space<vmem>>, vector<1x8x32xf32>
    %414 = vector.shape_cast %413 : vector<1x8x32xf32> to vector<8x32xf32>
    %415 = vector.shape_cast %412 : vector<8x32xf32> to vector<1x8x32xf32>
    tpu.vector_store %arg29[%c0_204, %c0_205, %c0_206], %415 {strides = array<i32>} : memref<8x8x32xf32, #tpu.memory_space<vmem>>, vector<1x8x32xf32>,
    %c0_207 = arith.constant 0 : index
    %c0_208 = arith.constant 0 : index
    %c0_209 = arith.constant 0 : index
    %416 = vector.load %arg7[%c0_207, %c0_208, %c0_209] : memref<3x32x32xf32, #tpu.memory_space<vmem>>, vector<1x32x32xf32>
    %417 = vector.shape_cast %416 : vector<1x32x32xf32> to vector<32x32xf32>
    %cst_210 = arith.constant dense<0.000000e+00> : vector<8x32xf32>
    %418 = tpu.matmul %412, %417, %cst_210 {dimension_numbers = #tpu.dot_dimension_numbers<[1], [0], [0], [1], [0, 0, 1, 1], [], []>} : vector<8x32xf32>, vector<32x32xf32>, vector<8x32xf32> -> vector<8x32xf32>
    %c1_211 = arith.constant 1 : index
    %c0_212 = arith.constant 0 : index
    %c0_213 = arith.constant 0 : index
    %419 = vector.load %arg7[%c1_211, %c0_212, %c0_213] : memref<3x32x32xf32, #tpu.memory_space<vmem>>, vector<1x32x32xf32>
    %420 = vector.shape_cast %419 : vector<1x32x32xf32> to vector<32x32xf32>
    %cst_214 = arith.constant dense<0.000000e+00> : vector<8x32xf32>
    %421 = tpu.matmul %412, %420, %cst_214 {dimension_numbers = #tpu.dot_dimension_numbers<[1], [0], [0], [1], [0, 0, 1, 1], [], []>} : vector<8x32xf32>, vector<32x32xf32>, vector<8x32xf32> -> vector<8x32xf32>
    %c2_215 = arith.constant 2 : index
    %c0_216 = arith.constant 0 : index
    %c0_217 = arith.constant 0 : index
    %422 = vector.load %arg7[%c2_215, %c0_216, %c0_217] : memref<3x32x32xf32, #tpu.memory_space<vmem>>, vector<1x32x32xf32>
    %423 = vector.shape_cast %422 : vector<1x32x32xf32> to vector<32x32xf32>
    %cst_218 = arith.constant dense<0.000000e+00> : vector<8x32xf32>
    %424 = tpu.matmul %412, %423, %cst_218 {dimension_numbers = #tpu.dot_dimension_numbers<[1], [0], [0], [1], [0, 0, 1, 1], [], []>} : vector<8x32xf32>, vector<32x32xf32>, vector<8x32xf32> -> vector<8x32xf32>
    %425 = vector.broadcast %374 : vector<1x32xf32> to vector<8x32xf32>
    %426 = arith.addf %424, %425 : vector<8x32xf32>
    %427 = vector.extract_strided_slice %357 {offsets = [1, 0, 0], sizes = [1, 8, 32], strides = [1, 1, 1]} : vector<8x8x32xf32> to vector<1x8x32xf32>
    %428 = vector.shape_cast %427 : vector<1x8x32xf32> to vector<8x32xf32>
    %429 = arith.addf %428, %418 : vector<8x32xf32>
    %430 = arith.negf %429 : vector<8x32xf32>
    %431 = math.exp %430 : vector<8x32xf32>
    %cst_219 = arith.constant 1.000000e+00 : f32
    %432 = vector.broadcast %cst_219 : f32 to vector<8x32xf32>
    %433 = arith.addf %432, %431 : vector<8x32xf32>
    %434 = arith.divf %432, %433 : vector<8x32xf32>
    %435 = vector.extract_strided_slice %365 {offsets = [1, 0, 0], sizes = [1, 8, 32], strides = [1, 1, 1]} : vector<8x8x32xf32> to vector<1x8x32xf32>
    %436 = vector.shape_cast %435 : vector<1x8x32xf32> to vector<8x32xf32>
    %437 = arith.addf %436, %421 : vector<8x32xf32>
    %438 = arith.negf %437 : vector<8x32xf32>
    %439 = math.exp %438 : vector<8x32xf32>
    %cst_220 = arith.constant 1.000000e+00 : f32
    %440 = vector.broadcast %cst_220 : f32 to vector<8x32xf32>
    %441 = arith.addf %440, %439 : vector<8x32xf32>
    %442 = arith.divf %440, %441 : vector<8x32xf32>
    %443 = vector.extract_strided_slice %373 {offsets = [1, 0, 0], sizes = [1, 8, 32], strides = [1, 1, 1]} : vector<8x8x32xf32> to vector<1x8x32xf32>
    %444 = vector.shape_cast %443 : vector<1x8x32xf32> to vector<8x32xf32>
    %445 = arith.mulf %434, %426 : vector<8x32xf32>
    %446 = arith.addf %444, %445 : vector<8x32xf32>
    %447 = math.tanh %446 : vector<8x32xf32>
    %cst_221 = arith.constant 1.000000e+00 : f32
    %448 = vector.broadcast %cst_221 : f32 to vector<8x32xf32>
    %449 = arith.subf %448, %442 : vector<8x32xf32>
    %450 = arith.mulf %449, %447 : vector<8x32xf32>
    %451 = arith.mulf %442, %412 : vector<8x32xf32>
    %452 = arith.addf %450, %451 : vector<8x32xf32>
    %c1_222 = arith.constant 1 : index
    %c0_223 = arith.constant 0 : index
    %c0_224 = arith.constant 0 : index
    %453 = vector.load %arg29[%c1_222, %c0_223, %c0_224] : memref<8x8x32xf32, #tpu.memory_space<vmem>>, vector<1x8x32xf32>
    %454 = vector.shape_cast %453 : vector<1x8x32xf32> to vector<8x32xf32>
    %455 = vector.shape_cast %452 : vector<8x32xf32> to vector<1x8x32xf32>
    tpu.vector_store %arg29[%c1_222, %c0_223, %c0_224], %455 {strides = array<i32>} : memref<8x8x32xf32, #tpu.memory_space<vmem>>, vector<1x8x32xf32>,
    %c0_225 = arith.constant 0 : index
    %c0_226 = arith.constant 0 : index
    %c0_227 = arith.constant 0 : index
    %456 = vector.load %arg7[%c0_225, %c0_226, %c0_227] : memref<3x32x32xf32, #tpu.memory_space<vmem>>, vector<1x32x32xf32>
    %457 = vector.shape_cast %456 : vector<1x32x32xf32> to vector<32x32xf32>
    %cst_228 = arith.constant dense<0.000000e+00> : vector<8x32xf32>
    %458 = tpu.matmul %452, %457, %cst_228 {dimension_numbers = #tpu.dot_dimension_numbers<[1], [0], [0], [1], [0, 0, 1, 1], [], []>} : vector<8x32xf32>, vector<32x32xf32>, vector<8x32xf32> -> vector<8x32xf32>
    %c1_229 = arith.constant 1 : index
    %c0_230 = arith.constant 0 : index
    %c0_231 = arith.constant 0 : index
    %459 = vector.load %arg7[%c1_229, %c0_230, %c0_231] : memref<3x32x32xf32, #tpu.memory_space<vmem>>, vector<1x32x32xf32>
    %460 = vector.shape_cast %459 : vector<1x32x32xf32> to vector<32x32xf32>
    %cst_232 = arith.constant dense<0.000000e+00> : vector<8x32xf32>
    %461 = tpu.matmul %452, %460, %cst_232 {dimension_numbers = #tpu.dot_dimension_numbers<[1], [0], [0], [1], [0, 0, 1, 1], [], []>} : vector<8x32xf32>, vector<32x32xf32>, vector<8x32xf32> -> vector<8x32xf32>
    %c2_233 = arith.constant 2 : index
    %c0_234 = arith.constant 0 : index
    %c0_235 = arith.constant 0 : index
    %462 = vector.load %arg7[%c2_233, %c0_234, %c0_235] : memref<3x32x32xf32, #tpu.memory_space<vmem>>, vector<1x32x32xf32>
    %463 = vector.shape_cast %462 : vector<1x32x32xf32> to vector<32x32xf32>
    %cst_236 = arith.constant dense<0.000000e+00> : vector<8x32xf32>
    %464 = tpu.matmul %452, %463, %cst_236 {dimension_numbers = #tpu.dot_dimension_numbers<[1], [0], [0], [1], [0, 0, 1, 1], [], []>} : vector<8x32xf32>, vector<32x32xf32>, vector<8x32xf32> -> vector<8x32xf32>
    %465 = vector.broadcast %374 : vector<1x32xf32> to vector<8x32xf32>
    %466 = arith.addf %464, %465 : vector<8x32xf32>
    %467 = vector.extract_strided_slice %357 {offsets = [2, 0, 0], sizes = [1, 8, 32], strides = [1, 1, 1]} : vector<8x8x32xf32> to vector<1x8x32xf32>
    %468 = vector.shape_cast %467 : vector<1x8x32xf32> to vector<8x32xf32>
    %469 = arith.addf %468, %458 : vector<8x32xf32>
    %470 = arith.negf %469 : vector<8x32xf32>
    %471 = math.exp %470 : vector<8x32xf32>
    %cst_237 = arith.constant 1.000000e+00 : f32
    %472 = vector.broadcast %cst_237 : f32 to vector<8x32xf32>
    %473 = arith.addf %472, %471 : vector<8x32xf32>
    %474 = arith.divf %472, %473 : vector<8x32xf32>
    %475 = vector.extract_strided_slice %365 {offsets = [2, 0, 0], sizes = [1, 8, 32], strides = [1, 1, 1]} : vector<8x8x32xf32> to vector<1x8x32xf32>
    %476 = vector.shape_cast %475 : vector<1x8x32xf32> to vector<8x32xf32>
    %477 = arith.addf %476, %461 : vector<8x32xf32>
    %478 = arith.negf %477 : vector<8x32xf32>
    %479 = math.exp %478 : vector<8x32xf32>
    %cst_238 = arith.constant 1.000000e+00 : f32
    %480 = vector.broadcast %cst_238 : f32 to vector<8x32xf32>
    %481 = arith.addf %480, %479 : vector<8x32xf32>
    %482 = arith.divf %480, %481 : vector<8x32xf32>
    %483 = vector.extract_strided_slice %373 {offsets = [2, 0, 0], sizes = [1, 8, 32], strides = [1, 1, 1]} : vector<8x8x32xf32> to vector<1x8x32xf32>
    %484 = vector.shape_cast %483 : vector<1x8x32xf32> to vector<8x32xf32>
    %485 = arith.mulf %474, %466 : vector<8x32xf32>
    %486 = arith.addf %484, %485 : vector<8x32xf32>
    %487 = math.tanh %486 : vector<8x32xf32>
    %cst_239 = arith.constant 1.000000e+00 : f32
    %488 = vector.broadcast %cst_239 : f32 to vector<8x32xf32>
    %489 = arith.subf %488, %482 : vector<8x32xf32>
    %490 = arith.mulf %489, %487 : vector<8x32xf32>
    %491 = arith.mulf %482, %452 : vector<8x32xf32>
    %492 = arith.addf %490, %491 : vector<8x32xf32>
    %c2_240 = arith.constant 2 : index
    %c0_241 = arith.constant 0 : index
    %c0_242 = arith.constant 0 : index
    %493 = vector.load %arg29[%c2_240, %c0_241, %c0_242] : memref<8x8x32xf32, #tpu.memory_space<vmem>>, vector<1x8x32xf32>
    %494 = vector.shape_cast %493 : vector<1x8x32xf32> to vector<8x32xf32>
    %495 = vector.shape_cast %492 : vector<8x32xf32> to vector<1x8x32xf32>
    tpu.vector_store %arg29[%c2_240, %c0_241, %c0_242], %495 {strides = array<i32>} : memref<8x8x32xf32, #tpu.memory_space<vmem>>, vector<1x8x32xf32>,
    %c0_243 = arith.constant 0 : index
    %c0_244 = arith.constant 0 : index
    %c0_245 = arith.constant 0 : index
    %496 = vector.load %arg7[%c0_243, %c0_244, %c0_245] : memref<3x32x32xf32, #tpu.memory_space<vmem>>, vector<1x32x32xf32>
    %497 = vector.shape_cast %496 : vector<1x32x32xf32> to vector<32x32xf32>
    %cst_246 = arith.constant dense<0.000000e+00> : vector<8x32xf32>
    %498 = tpu.matmul %492, %497, %cst_246 {dimension_numbers = #tpu.dot_dimension_numbers<[1], [0], [0], [1], [0, 0, 1, 1], [], []>} : vector<8x32xf32>, vector<32x32xf32>, vector<8x32xf32> -> vector<8x32xf32>
    %c1_247 = arith.constant 1 : index
    %c0_248 = arith.constant 0 : index
    %c0_249 = arith.constant 0 : index
    %499 = vector.load %arg7[%c1_247, %c0_248, %c0_249] : memref<3x32x32xf32, #tpu.memory_space<vmem>>, vector<1x32x32xf32>
    %500 = vector.shape_cast %499 : vector<1x32x32xf32> to vector<32x32xf32>
    %cst_250 = arith.constant dense<0.000000e+00> : vector<8x32xf32>
    %501 = tpu.matmul %492, %500, %cst_250 {dimension_numbers = #tpu.dot_dimension_numbers<[1], [0], [0], [1], [0, 0, 1, 1], [], []>} : vector<8x32xf32>, vector<32x32xf32>, vector<8x32xf32> -> vector<8x32xf32>
    %c2_251 = arith.constant 2 : index
    %c0_252 = arith.constant 0 : index
    %c0_253 = arith.constant 0 : index
    %502 = vector.load %arg7[%c2_251, %c0_252, %c0_253] : memref<3x32x32xf32, #tpu.memory_space<vmem>>, vector<1x32x32xf32>
    %503 = vector.shape_cast %502 : vector<1x32x32xf32> to vector<32x32xf32>
    %cst_254 = arith.constant dense<0.000000e+00> : vector<8x32xf32>
    %504 = tpu.matmul %492, %503, %cst_254 {dimension_numbers = #tpu.dot_dimension_numbers<[1], [0], [0], [1], [0, 0, 1, 1], [], []>} : vector<8x32xf32>, vector<32x32xf32>, vector<8x32xf32> -> vector<8x32xf32>
    %505 = vector.broadcast %374 : vector<1x32xf32> to vector<8x32xf32>
    %506 = arith.addf %504, %505 : vector<8x32xf32>
    %507 = vector.extract_strided_slice %357 {offsets = [3, 0, 0], sizes = [1, 8, 32], strides = [1, 1, 1]} : vector<8x8x32xf32> to vector<1x8x32xf32>
    %508 = vector.shape_cast %507 : vector<1x8x32xf32> to vector<8x32xf32>
    %509 = arith.addf %508, %498 : vector<8x32xf32>
    %510 = arith.negf %509 : vector<8x32xf32>
    %511 = math.exp %510 : vector<8x32xf32>
    %cst_255 = arith.constant 1.000000e+00 : f32
    %512 = vector.broadcast %cst_255 : f32 to vector<8x32xf32>
    %513 = arith.addf %512, %511 : vector<8x32xf32>
    %514 = arith.divf %512, %513 : vector<8x32xf32>
    %515 = vector.extract_strided_slice %365 {offsets = [3, 0, 0], sizes = [1, 8, 32], strides = [1, 1, 1]} : vector<8x8x32xf32> to vector<1x8x32xf32>
    %516 = vector.shape_cast %515 : vector<1x8x32xf32> to vector<8x32xf32>
    %517 = arith.addf %516, %501 : vector<8x32xf32>
    %518 = arith.negf %517 : vector<8x32xf32>
    %519 = math.exp %518 : vector<8x32xf32>
    %cst_256 = arith.constant 1.000000e+00 : f32
    %520 = vector.broadcast %cst_256 : f32 to vector<8x32xf32>
    %521 = arith.addf %520, %519 : vector<8x32xf32>
    %522 = arith.divf %520, %521 : vector<8x32xf32>
    %523 = vector.extract_strided_slice %373 {offsets = [3, 0, 0], sizes = [1, 8, 32], strides = [1, 1, 1]} : vector<8x8x32xf32> to vector<1x8x32xf32>
    %524 = vector.shape_cast %523 : vector<1x8x32xf32> to vector<8x32xf32>
    %525 = arith.mulf %514, %506 : vector<8x32xf32>
    %526 = arith.addf %524, %525 : vector<8x32xf32>
    %527 = math.tanh %526 : vector<8x32xf32>
    %cst_257 = arith.constant 1.000000e+00 : f32
    %528 = vector.broadcast %cst_257 : f32 to vector<8x32xf32>
    %529 = arith.subf %528, %522 : vector<8x32xf32>
    %530 = arith.mulf %529, %527 : vector<8x32xf32>
    %531 = arith.mulf %522, %492 : vector<8x32xf32>
    %532 = arith.addf %530, %531 : vector<8x32xf32>
    %c3_258 = arith.constant 3 : index
    %c0_259 = arith.constant 0 : index
    %c0_260 = arith.constant 0 : index
    %533 = vector.load %arg29[%c3_258, %c0_259, %c0_260] : memref<8x8x32xf32, #tpu.memory_space<vmem>>, vector<1x8x32xf32>
    %534 = vector.shape_cast %533 : vector<1x8x32xf32> to vector<8x32xf32>
    %535 = vector.shape_cast %532 : vector<8x32xf32> to vector<1x8x32xf32>
    tpu.vector_store %arg29[%c3_258, %c0_259, %c0_260], %535 {strides = array<i32>} : memref<8x8x32xf32, #tpu.memory_space<vmem>>, vector<1x8x32xf32>,
    %c0_261 = arith.constant 0 : index
    %c0_262 = arith.constant 0 : index
    %c0_263 = arith.constant 0 : index
    %536 = vector.load %arg7[%c0_261, %c0_262, %c0_263] : memref<3x32x32xf32, #tpu.memory_space<vmem>>, vector<1x32x32xf32>
    %537 = vector.shape_cast %536 : vector<1x32x32xf32> to vector<32x32xf32>
    %cst_264 = arith.constant dense<0.000000e+00> : vector<8x32xf32>
    %538 = tpu.matmul %532, %537, %cst_264 {dimension_numbers = #tpu.dot_dimension_numbers<[1], [0], [0], [1], [0, 0, 1, 1], [], []>} : vector<8x32xf32>, vector<32x32xf32>, vector<8x32xf32> -> vector<8x32xf32>
    %c1_265 = arith.constant 1 : index
    %c0_266 = arith.constant 0 : index
    %c0_267 = arith.constant 0 : index
    %539 = vector.load %arg7[%c1_265, %c0_266, %c0_267] : memref<3x32x32xf32, #tpu.memory_space<vmem>>, vector<1x32x32xf32>
    %540 = vector.shape_cast %539 : vector<1x32x32xf32> to vector<32x32xf32>
    %cst_268 = arith.constant dense<0.000000e+00> : vector<8x32xf32>
    %541 = tpu.matmul %532, %540, %cst_268 {dimension_numbers = #tpu.dot_dimension_numbers<[1], [0], [0], [1], [0, 0, 1, 1], [], []>} : vector<8x32xf32>, vector<32x32xf32>, vector<8x32xf32> -> vector<8x32xf32>
    %c2_269 = arith.constant 2 : index
    %c0_270 = arith.constant 0 : index
    %c0_271 = arith.constant 0 : index
    %542 = vector.load %arg7[%c2_269, %c0_270, %c0_271] : memref<3x32x32xf32, #tpu.memory_space<vmem>>, vector<1x32x32xf32>
    %543 = vector.shape_cast %542 : vector<1x32x32xf32> to vector<32x32xf32>
    %cst_272 = arith.constant dense<0.000000e+00> : vector<8x32xf32>
    %544 = tpu.matmul %532, %543, %cst_272 {dimension_numbers = #tpu.dot_dimension_numbers<[1], [0], [0], [1], [0, 0, 1, 1], [], []>} : vector<8x32xf32>, vector<32x32xf32>, vector<8x32xf32> -> vector<8x32xf32>
    %545 = vector.broadcast %374 : vector<1x32xf32> to vector<8x32xf32>
    %546 = arith.addf %544, %545 : vector<8x32xf32>
    %547 = vector.extract_strided_slice %357 {offsets = [4, 0, 0], sizes = [1, 8, 32], strides = [1, 1, 1]} : vector<8x8x32xf32> to vector<1x8x32xf32>
    %548 = vector.shape_cast %547 : vector<1x8x32xf32> to vector<8x32xf32>
    %549 = arith.addf %548, %538 : vector<8x32xf32>
    %550 = arith.negf %549 : vector<8x32xf32>
    %551 = math.exp %550 : vector<8x32xf32>
    %cst_273 = arith.constant 1.000000e+00 : f32
    %552 = vector.broadcast %cst_273 : f32 to vector<8x32xf32>
    %553 = arith.addf %552, %551 : vector<8x32xf32>
    %554 = arith.divf %552, %553 : vector<8x32xf32>
    %555 = vector.extract_strided_slice %365 {offsets = [4, 0, 0], sizes = [1, 8, 32], strides = [1, 1, 1]} : vector<8x8x32xf32> to vector<1x8x32xf32>
    %556 = vector.shape_cast %555 : vector<1x8x32xf32> to vector<8x32xf32>
    %557 = arith.addf %556, %541 : vector<8x32xf32>
    %558 = arith.negf %557 : vector<8x32xf32>
    %559 = math.exp %558 : vector<8x32xf32>
    %cst_274 = arith.constant 1.000000e+00 : f32
    %560 = vector.broadcast %cst_274 : f32 to vector<8x32xf32>
    %561 = arith.addf %560, %559 : vector<8x32xf32>
    %562 = arith.divf %560, %561 : vector<8x32xf32>
    %563 = vector.extract_strided_slice %373 {offsets = [4, 0, 0], sizes = [1, 8, 32], strides = [1, 1, 1]} : vector<8x8x32xf32> to vector<1x8x32xf32>
    %564 = vector.shape_cast %563 : vector<1x8x32xf32> to vector<8x32xf32>
    %565 = arith.mulf %554, %546 : vector<8x32xf32>
    %566 = arith.addf %564, %565 : vector<8x32xf32>
    %567 = math.tanh %566 : vector<8x32xf32>
    %cst_275 = arith.constant 1.000000e+00 : f32
    %568 = vector.broadcast %cst_275 : f32 to vector<8x32xf32>
    %569 = arith.subf %568, %562 : vector<8x32xf32>
    %570 = arith.mulf %569, %567 : vector<8x32xf32>
    %571 = arith.mulf %562, %532 : vector<8x32xf32>
    %572 = arith.addf %570, %571 : vector<8x32xf32>
    %c4_276 = arith.constant 4 : index
    %c0_277 = arith.constant 0 : index
    %c0_278 = arith.constant 0 : index
    %573 = vector.load %arg29[%c4_276, %c0_277, %c0_278] : memref<8x8x32xf32, #tpu.memory_space<vmem>>, vector<1x8x32xf32>
    %574 = vector.shape_cast %573 : vector<1x8x32xf32> to vector<8x32xf32>
    %575 = vector.shape_cast %572 : vector<8x32xf32> to vector<1x8x32xf32>
    tpu.vector_store %arg29[%c4_276, %c0_277, %c0_278], %575 {strides = array<i32>} : memref<8x8x32xf32, #tpu.memory_space<vmem>>, vector<1x8x32xf32>,
    %c0_279 = arith.constant 0 : index
    %c0_280 = arith.constant 0 : index
    %c0_281 = arith.constant 0 : index
    %576 = vector.load %arg7[%c0_279, %c0_280, %c0_281] : memref<3x32x32xf32, #tpu.memory_space<vmem>>, vector<1x32x32xf32>
    %577 = vector.shape_cast %576 : vector<1x32x32xf32> to vector<32x32xf32>
    %cst_282 = arith.constant dense<0.000000e+00> : vector<8x32xf32>
    %578 = tpu.matmul %572, %577, %cst_282 {dimension_numbers = #tpu.dot_dimension_numbers<[1], [0], [0], [1], [0, 0, 1, 1], [], []>} : vector<8x32xf32>, vector<32x32xf32>, vector<8x32xf32> -> vector<8x32xf32>
    %c1_283 = arith.constant 1 : index
    %c0_284 = arith.constant 0 : index
    %c0_285 = arith.constant 0 : index
    %579 = vector.load %arg7[%c1_283, %c0_284, %c0_285] : memref<3x32x32xf32, #tpu.memory_space<vmem>>, vector<1x32x32xf32>
    %580 = vector.shape_cast %579 : vector<1x32x32xf32> to vector<32x32xf32>
    %cst_286 = arith.constant dense<0.000000e+00> : vector<8x32xf32>
    %581 = tpu.matmul %572, %580, %cst_286 {dimension_numbers = #tpu.dot_dimension_numbers<[1], [0], [0], [1], [0, 0, 1, 1], [], []>} : vector<8x32xf32>, vector<32x32xf32>, vector<8x32xf32> -> vector<8x32xf32>
    %c2_287 = arith.constant 2 : index
    %c0_288 = arith.constant 0 : index
    %c0_289 = arith.constant 0 : index
    %582 = vector.load %arg7[%c2_287, %c0_288, %c0_289] : memref<3x32x32xf32, #tpu.memory_space<vmem>>, vector<1x32x32xf32>
    %583 = vector.shape_cast %582 : vector<1x32x32xf32> to vector<32x32xf32>
    %cst_290 = arith.constant dense<0.000000e+00> : vector<8x32xf32>
    %584 = tpu.matmul %572, %583, %cst_290 {dimension_numbers = #tpu.dot_dimension_numbers<[1], [0], [0], [1], [0, 0, 1, 1], [], []>} : vector<8x32xf32>, vector<32x32xf32>, vector<8x32xf32> -> vector<8x32xf32>
    %585 = vector.broadcast %374 : vector<1x32xf32> to vector<8x32xf32>
    %586 = arith.addf %584, %585 : vector<8x32xf32>
    %587 = vector.extract_strided_slice %357 {offsets = [5, 0, 0], sizes = [1, 8, 32], strides = [1, 1, 1]} : vector<8x8x32xf32> to vector<1x8x32xf32>
    %588 = vector.shape_cast %587 : vector<1x8x32xf32> to vector<8x32xf32>
    %589 = arith.addf %588, %578 : vector<8x32xf32>
    %590 = arith.negf %589 : vector<8x32xf32>
    %591 = math.exp %590 : vector<8x32xf32>
    %cst_291 = arith.constant 1.000000e+00 : f32
    %592 = vector.broadcast %cst_291 : f32 to vector<8x32xf32>
    %593 = arith.addf %592, %591 : vector<8x32xf32>
    %594 = arith.divf %592, %593 : vector<8x32xf32>
    %595 = vector.extract_strided_slice %365 {offsets = [5, 0, 0], sizes = [1, 8, 32], strides = [1, 1, 1]} : vector<8x8x32xf32> to vector<1x8x32xf32>
    %596 = vector.shape_cast %595 : vector<1x8x32xf32> to vector<8x32xf32>
    %597 = arith.addf %596, %581 : vector<8x32xf32>
    %598 = arith.negf %597 : vector<8x32xf32>
    %599 = math.exp %598 : vector<8x32xf32>
    %cst_292 = arith.constant 1.000000e+00 : f32
    %600 = vector.broadcast %cst_292 : f32 to vector<8x32xf32>
    %601 = arith.addf %600, %599 : vector<8x32xf32>
    %602 = arith.divf %600, %601 : vector<8x32xf32>
    %603 = vector.extract_strided_slice %373 {offsets = [5, 0, 0], sizes = [1, 8, 32], strides = [1, 1, 1]} : vector<8x8x32xf32> to vector<1x8x32xf32>
    %604 = vector.shape_cast %603 : vector<1x8x32xf32> to vector<8x32xf32>
    %605 = arith.mulf %594, %586 : vector<8x32xf32>
    %606 = arith.addf %604, %605 : vector<8x32xf32>
    %607 = math.tanh %606 : vector<8x32xf32>
    %cst_293 = arith.constant 1.000000e+00 : f32
    %608 = vector.broadcast %cst_293 : f32 to vector<8x32xf32>
    %609 = arith.subf %608, %602 : vector<8x32xf32>
    %610 = arith.mulf %609, %607 : vector<8x32xf32>
    %611 = arith.mulf %602, %572 : vector<8x32xf32>
    %612 = arith.addf %610, %611 : vector<8x32xf32>
    %c5_294 = arith.constant 5 : index
    %c0_295 = arith.constant 0 : index
    %c0_296 = arith.constant 0 : index
    %613 = vector.load %arg29[%c5_294, %c0_295, %c0_296] : memref<8x8x32xf32, #tpu.memory_space<vmem>>, vector<1x8x32xf32>
    %614 = vector.shape_cast %613 : vector<1x8x32xf32> to vector<8x32xf32>
    %615 = vector.shape_cast %612 : vector<8x32xf32> to vector<1x8x32xf32>
    tpu.vector_store %arg29[%c5_294, %c0_295, %c0_296], %615 {strides = array<i32>} : memref<8x8x32xf32, #tpu.memory_space<vmem>>, vector<1x8x32xf32>,
    %c0_297 = arith.constant 0 : index
    %c0_298 = arith.constant 0 : index
    %c0_299 = arith.constant 0 : index
    %616 = vector.load %arg7[%c0_297, %c0_298, %c0_299] : memref<3x32x32xf32, #tpu.memory_space<vmem>>, vector<1x32x32xf32>
    %617 = vector.shape_cast %616 : vector<1x32x32xf32> to vector<32x32xf32>
    %cst_300 = arith.constant dense<0.000000e+00> : vector<8x32xf32>
    %618 = tpu.matmul %612, %617, %cst_300 {dimension_numbers = #tpu.dot_dimension_numbers<[1], [0], [0], [1], [0, 0, 1, 1], [], []>} : vector<8x32xf32>, vector<32x32xf32>, vector<8x32xf32> -> vector<8x32xf32>
    %c1_301 = arith.constant 1 : index
    %c0_302 = arith.constant 0 : index
    %c0_303 = arith.constant 0 : index
    %619 = vector.load %arg7[%c1_301, %c0_302, %c0_303] : memref<3x32x32xf32, #tpu.memory_space<vmem>>, vector<1x32x32xf32>
    %620 = vector.shape_cast %619 : vector<1x32x32xf32> to vector<32x32xf32>
    %cst_304 = arith.constant dense<0.000000e+00> : vector<8x32xf32>
    %621 = tpu.matmul %612, %620, %cst_304 {dimension_numbers = #tpu.dot_dimension_numbers<[1], [0], [0], [1], [0, 0, 1, 1], [], []>} : vector<8x32xf32>, vector<32x32xf32>, vector<8x32xf32> -> vector<8x32xf32>
    %c2_305 = arith.constant 2 : index
    %c0_306 = arith.constant 0 : index
    %c0_307 = arith.constant 0 : index
    %622 = vector.load %arg7[%c2_305, %c0_306, %c0_307] : memref<3x32x32xf32, #tpu.memory_space<vmem>>, vector<1x32x32xf32>
    %623 = vector.shape_cast %622 : vector<1x32x32xf32> to vector<32x32xf32>
    %cst_308 = arith.constant dense<0.000000e+00> : vector<8x32xf32>
    %624 = tpu.matmul %612, %623, %cst_308 {dimension_numbers = #tpu.dot_dimension_numbers<[1], [0], [0], [1], [0, 0, 1, 1], [], []>} : vector<8x32xf32>, vector<32x32xf32>, vector<8x32xf32> -> vector<8x32xf32>
    %625 = vector.broadcast %374 : vector<1x32xf32> to vector<8x32xf32>
    %626 = arith.addf %624, %625 : vector<8x32xf32>
    %627 = vector.extract_strided_slice %357 {offsets = [6, 0, 0], sizes = [1, 8, 32], strides = [1, 1, 1]} : vector<8x8x32xf32> to vector<1x8x32xf32>
    %628 = vector.shape_cast %627 : vector<1x8x32xf32> to vector<8x32xf32>
    %629 = arith.addf %628, %618 : vector<8x32xf32>
    %630 = arith.negf %629 : vector<8x32xf32>
    %631 = math.exp %630 : vector<8x32xf32>
    %cst_309 = arith.constant 1.000000e+00 : f32
    %632 = vector.broadcast %cst_309 : f32 to vector<8x32xf32>
    %633 = arith.addf %632, %631 : vector<8x32xf32>
    %634 = arith.divf %632, %633 : vector<8x32xf32>
    %635 = vector.extract_strided_slice %365 {offsets = [6, 0, 0], sizes = [1, 8, 32], strides = [1, 1, 1]} : vector<8x8x32xf32> to vector<1x8x32xf32>
    %636 = vector.shape_cast %635 : vector<1x8x32xf32> to vector<8x32xf32>
    %637 = arith.addf %636, %621 : vector<8x32xf32>
    %638 = arith.negf %637 : vector<8x32xf32>
    %639 = math.exp %638 : vector<8x32xf32>
    %cst_310 = arith.constant 1.000000e+00 : f32
    %640 = vector.broadcast %cst_310 : f32 to vector<8x32xf32>
    %641 = arith.addf %640, %639 : vector<8x32xf32>
    %642 = arith.divf %640, %641 : vector<8x32xf32>
    %643 = vector.extract_strided_slice %373 {offsets = [6, 0, 0], sizes = [1, 8, 32], strides = [1, 1, 1]} : vector<8x8x32xf32> to vector<1x8x32xf32>
    %644 = vector.shape_cast %643 : vector<1x8x32xf32> to vector<8x32xf32>
    %645 = arith.mulf %634, %626 : vector<8x32xf32>
    %646 = arith.addf %644, %645 : vector<8x32xf32>
    %647 = math.tanh %646 : vector<8x32xf32>
    %cst_311 = arith.constant 1.000000e+00 : f32
    %648 = vector.broadcast %cst_311 : f32 to vector<8x32xf32>
    %649 = arith.subf %648, %642 : vector<8x32xf32>
    %650 = arith.mulf %649, %647 : vector<8x32xf32>
    %651 = arith.mulf %642, %612 : vector<8x32xf32>
    %652 = arith.addf %650, %651 : vector<8x32xf32>
    %c6_312 = arith.constant 6 : index
    %c0_313 = arith.constant 0 : index
    %c0_314 = arith.constant 0 : index
    %653 = vector.load %arg29[%c6_312, %c0_313, %c0_314] : memref<8x8x32xf32, #tpu.memory_space<vmem>>, vector<1x8x32xf32>
    %654 = vector.shape_cast %653 : vector<1x8x32xf32> to vector<8x32xf32>
    %655 = vector.shape_cast %652 : vector<8x32xf32> to vector<1x8x32xf32>
    tpu.vector_store %arg29[%c6_312, %c0_313, %c0_314], %655 {strides = array<i32>} : memref<8x8x32xf32, #tpu.memory_space<vmem>>, vector<1x8x32xf32>,
    %c0_315 = arith.constant 0 : index
    %c0_316 = arith.constant 0 : index
    %c0_317 = arith.constant 0 : index
    %656 = vector.load %arg7[%c0_315, %c0_316, %c0_317] : memref<3x32x32xf32, #tpu.memory_space<vmem>>, vector<1x32x32xf32>
    %657 = vector.shape_cast %656 : vector<1x32x32xf32> to vector<32x32xf32>
    %cst_318 = arith.constant dense<0.000000e+00> : vector<8x32xf32>
    %658 = tpu.matmul %652, %657, %cst_318 {dimension_numbers = #tpu.dot_dimension_numbers<[1], [0], [0], [1], [0, 0, 1, 1], [], []>} : vector<8x32xf32>, vector<32x32xf32>, vector<8x32xf32> -> vector<8x32xf32>
    %c1_319 = arith.constant 1 : index
    %c0_320 = arith.constant 0 : index
    %c0_321 = arith.constant 0 : index
    %659 = vector.load %arg7[%c1_319, %c0_320, %c0_321] : memref<3x32x32xf32, #tpu.memory_space<vmem>>, vector<1x32x32xf32>
    %660 = vector.shape_cast %659 : vector<1x32x32xf32> to vector<32x32xf32>
    %cst_322 = arith.constant dense<0.000000e+00> : vector<8x32xf32>
    %661 = tpu.matmul %652, %660, %cst_322 {dimension_numbers = #tpu.dot_dimension_numbers<[1], [0], [0], [1], [0, 0, 1, 1], [], []>} : vector<8x32xf32>, vector<32x32xf32>, vector<8x32xf32> -> vector<8x32xf32>
    %c2_323 = arith.constant 2 : index
    %c0_324 = arith.constant 0 : index
    %c0_325 = arith.constant 0 : index
    %662 = vector.load %arg7[%c2_323, %c0_324, %c0_325] : memref<3x32x32xf32, #tpu.memory_space<vmem>>, vector<1x32x32xf32>
    %663 = vector.shape_cast %662 : vector<1x32x32xf32> to vector<32x32xf32>
    %cst_326 = arith.constant dense<0.000000e+00> : vector<8x32xf32>
    %664 = tpu.matmul %652, %663, %cst_326 {dimension_numbers = #tpu.dot_dimension_numbers<[1], [0], [0], [1], [0, 0, 1, 1], [], []>} : vector<8x32xf32>, vector<32x32xf32>, vector<8x32xf32> -> vector<8x32xf32>
    %665 = vector.broadcast %374 : vector<1x32xf32> to vector<8x32xf32>
    %666 = arith.addf %664, %665 : vector<8x32xf32>
    %667 = vector.extract_strided_slice %357 {offsets = [7, 0, 0], sizes = [1, 8, 32], strides = [1, 1, 1]} : vector<8x8x32xf32> to vector<1x8x32xf32>
    %668 = vector.shape_cast %667 : vector<1x8x32xf32> to vector<8x32xf32>
    %669 = arith.addf %668, %658 : vector<8x32xf32>
    %670 = arith.negf %669 : vector<8x32xf32>
    %671 = math.exp %670 : vector<8x32xf32>
    %cst_327 = arith.constant 1.000000e+00 : f32
    %672 = vector.broadcast %cst_327 : f32 to vector<8x32xf32>
    %673 = arith.addf %672, %671 : vector<8x32xf32>
    %674 = arith.divf %672, %673 : vector<8x32xf32>
    %675 = vector.extract_strided_slice %365 {offsets = [7, 0, 0], sizes = [1, 8, 32], strides = [1, 1, 1]} : vector<8x8x32xf32> to vector<1x8x32xf32>
    %676 = vector.shape_cast %675 : vector<1x8x32xf32> to vector<8x32xf32>
    %677 = arith.addf %676, %661 : vector<8x32xf32>
    %678 = arith.negf %677 : vector<8x32xf32>
    %679 = math.exp %678 : vector<8x32xf32>
    %cst_328 = arith.constant 1.000000e+00 : f32
    %680 = vector.broadcast %cst_328 : f32 to vector<8x32xf32>
    %681 = arith.addf %680, %679 : vector<8x32xf32>
    %682 = arith.divf %680, %681 : vector<8x32xf32>
    %683 = vector.extract_strided_slice %373 {offsets = [7, 0, 0], sizes = [1, 8, 32], strides = [1, 1, 1]} : vector<8x8x32xf32> to vector<1x8x32xf32>
    %684 = vector.shape_cast %683 : vector<1x8x32xf32> to vector<8x32xf32>
    %685 = arith.mulf %674, %666 : vector<8x32xf32>
    %686 = arith.addf %684, %685 : vector<8x32xf32>
    %687 = math.tanh %686 : vector<8x32xf32>
    %cst_329 = arith.constant 1.000000e+00 : f32
    %688 = vector.broadcast %cst_329 : f32 to vector<8x32xf32>
    %689 = arith.subf %688, %682 : vector<8x32xf32>
    %690 = arith.mulf %689, %687 : vector<8x32xf32>
    %691 = arith.mulf %682, %652 : vector<8x32xf32>
    %692 = arith.addf %690, %691 : vector<8x32xf32>
    %c7_330 = arith.constant 7 : index
    %c0_331 = arith.constant 0 : index
    %c0_332 = arith.constant 0 : index
    %693 = vector.load %arg29[%c7_330, %c0_331, %c0_332] : memref<8x8x32xf32, #tpu.memory_space<vmem>>, vector<1x8x32xf32>
    %694 = vector.shape_cast %693 : vector<1x8x32xf32> to vector<8x32xf32>
    %695 = vector.shape_cast %692 : vector<8x32xf32> to vector<1x8x32xf32>
    tpu.vector_store %arg29[%c7_330, %c0_331, %c0_332], %695 {strides = array<i32>} : memref<8x8x32xf32, #tpu.memory_space<vmem>>, vector<1x8x32xf32>,
    %c0_333 = arith.constant 0 : index
    %c0_334 = arith.constant 0 : index
    %c0_335 = arith.constant 0 : index
    %696 = vector.load %arg29[%c0_333, %c0_334, %c0_335] : memref<8x8x32xf32, #tpu.memory_space<vmem>>, vector<8x8x32xf32>
    %697 = vector.shape_cast %696 : vector<8x8x32xf32> to vector<64x32xf32>
    %c0_336 = arith.constant 0 : index
    %c0_337 = arith.constant 0 : index
    %c0_338 = arith.constant 0 : index
    %698 = vector.load %arg10[%c0_336, %c0_337, %c0_338] : memref<3x32x32xf32, #tpu.memory_space<vmem>>, vector<1x32x32xf32>
    %699 = vector.shape_cast %698 : vector<1x32x32xf32> to vector<32x32xf32>
    %cst_339 = arith.constant dense<0.000000e+00> : vector<64x32xf32>
    %700 = tpu.matmul %697, %699, %cst_339 {dimension_numbers = #tpu.dot_dimension_numbers<[1], [0], [0], [1], [0, 0, 1, 1], [], []>} : vector<64x32xf32>, vector<32x32xf32>, vector<64x32xf32> -> vector<64x32xf32>
    %c0_340 = arith.constant 0 : index
    %c0_341 = arith.constant 0 : index
    %c0_342 = arith.constant 0 : index
    %701 = vector.load %arg12[%c0_340, %c0_341, %c0_342] : memref<3x1x32xf32, #tpu.memory_space<vmem>>, vector<1x1x32xf32>
    %702 = vector.shape_cast %701 : vector<1x1x32xf32> to vector<1x32xf32>
    %703 = vector.broadcast %702 : vector<1x32xf32> to vector<64x32xf32>
    %704 = arith.addf %700, %703 : vector<64x32xf32>
    %705 = vector.shape_cast %704 : vector<64x32xf32> to vector<8x8x32xf32>
    %c1_343 = arith.constant 1 : index
    %c0_344 = arith.constant 0 : index
    %c0_345 = arith.constant 0 : index
    %706 = vector.load %arg10[%c1_343, %c0_344, %c0_345] : memref<3x32x32xf32, #tpu.memory_space<vmem>>, vector<1x32x32xf32>
    %707 = vector.shape_cast %706 : vector<1x32x32xf32> to vector<32x32xf32>
    %cst_346 = arith.constant dense<0.000000e+00> : vector<64x32xf32>
    %708 = tpu.matmul %697, %707, %cst_346 {dimension_numbers = #tpu.dot_dimension_numbers<[1], [0], [0], [1], [0, 0, 1, 1], [], []>} : vector<64x32xf32>, vector<32x32xf32>, vector<64x32xf32> -> vector<64x32xf32>
    %c1_347 = arith.constant 1 : index
    %c0_348 = arith.constant 0 : index
    %c0_349 = arith.constant 0 : index
    %709 = vector.load %arg12[%c1_347, %c0_348, %c0_349] : memref<3x1x32xf32, #tpu.memory_space<vmem>>, vector<1x1x32xf32>
    %710 = vector.shape_cast %709 : vector<1x1x32xf32> to vector<1x32xf32>
    %711 = vector.broadcast %710 : vector<1x32xf32> to vector<64x32xf32>
    %712 = arith.addf %708, %711 : vector<64x32xf32>
    %713 = vector.shape_cast %712 : vector<64x32xf32> to vector<8x8x32xf32>
    %c2_350 = arith.constant 2 : index
    %c0_351 = arith.constant 0 : index
    %c0_352 = arith.constant 0 : index
    %714 = vector.load %arg10[%c2_350, %c0_351, %c0_352] : memref<3x32x32xf32, #tpu.memory_space<vmem>>, vector<1x32x32xf32>
    %715 = vector.shape_cast %714 : vector<1x32x32xf32> to vector<32x32xf32>
    %cst_353 = arith.constant dense<0.000000e+00> : vector<64x32xf32>
    %716 = tpu.matmul %697, %715, %cst_353 {dimension_numbers = #tpu.dot_dimension_numbers<[1], [0], [0], [1], [0, 0, 1, 1], [], []>} : vector<64x32xf32>, vector<32x32xf32>, vector<64x32xf32> -> vector<64x32xf32>
    %c2_354 = arith.constant 2 : index
    %c0_355 = arith.constant 0 : index
    %c0_356 = arith.constant 0 : index
    %717 = vector.load %arg12[%c2_354, %c0_355, %c0_356] : memref<3x1x32xf32, #tpu.memory_space<vmem>>, vector<1x1x32xf32>
    %718 = vector.shape_cast %717 : vector<1x1x32xf32> to vector<1x32xf32>
    %719 = vector.broadcast %718 : vector<1x32xf32> to vector<64x32xf32>
    %720 = arith.addf %716, %719 : vector<64x32xf32>
    %721 = vector.shape_cast %720 : vector<64x32xf32> to vector<8x8x32xf32>
    %c0_357 = arith.constant 0 : index
    %c0_358 = arith.constant 0 : index
    %722 = vector.load %arg13[%c0_357, %c0_358] : memref<1x32xf32, #tpu.memory_space<vmem>>, vector<1x32xf32>
    %cst_359 = arith.constant 0.000000e+00 : f32
    %723 = vector.broadcast %cst_359 : f32 to vector<8x32xf32>
    %c0_360 = arith.constant 0 : index
    %c0_361 = arith.constant 0 : index
    %c0_362 = arith.constant 0 : index
    %724 = vector.load %arg11[%c0_360, %c0_361, %c0_362] : memref<3x32x32xf32, #tpu.memory_space<vmem>>, vector<1x32x32xf32>
    %725 = vector.shape_cast %724 : vector<1x32x32xf32> to vector<32x32xf32>
    %cst_363 = arith.constant dense<0.000000e+00> : vector<8x32xf32>
    %726 = tpu.matmul %723, %725, %cst_363 {dimension_numbers = #tpu.dot_dimension_numbers<[1], [0], [0], [1], [0, 0, 1, 1], [], []>} : vector<8x32xf32>, vector<32x32xf32>, vector<8x32xf32> -> vector<8x32xf32>
    %c1_364 = arith.constant 1 : index
    %c0_365 = arith.constant 0 : index
    %c0_366 = arith.constant 0 : index
    %727 = vector.load %arg11[%c1_364, %c0_365, %c0_366] : memref<3x32x32xf32, #tpu.memory_space<vmem>>, vector<1x32x32xf32>
    %728 = vector.shape_cast %727 : vector<1x32x32xf32> to vector<32x32xf32>
    %cst_367 = arith.constant dense<0.000000e+00> : vector<8x32xf32>
    %729 = tpu.matmul %723, %728, %cst_367 {dimension_numbers = #tpu.dot_dimension_numbers<[1], [0], [0], [1], [0, 0, 1, 1], [], []>} : vector<8x32xf32>, vector<32x32xf32>, vector<8x32xf32> -> vector<8x32xf32>
    %c2_368 = arith.constant 2 : index
    %c0_369 = arith.constant 0 : index
    %c0_370 = arith.constant 0 : index
    %730 = vector.load %arg11[%c2_368, %c0_369, %c0_370] : memref<3x32x32xf32, #tpu.memory_space<vmem>>, vector<1x32x32xf32>
    %731 = vector.shape_cast %730 : vector<1x32x32xf32> to vector<32x32xf32>
    %cst_371 = arith.constant dense<0.000000e+00> : vector<8x32xf32>
    %732 = tpu.matmul %723, %731, %cst_371 {dimension_numbers = #tpu.dot_dimension_numbers<[1], [0], [0], [1], [0, 0, 1, 1], [], []>} : vector<8x32xf32>, vector<32x32xf32>, vector<8x32xf32> -> vector<8x32xf32>
    %733 = vector.broadcast %722 : vector<1x32xf32> to vector<8x32xf32>
    %734 = arith.addf %732, %733 : vector<8x32xf32>
    %735 = vector.extract_strided_slice %705 {offsets = [0, 0, 0], sizes = [1, 8, 32], strides = [1, 1, 1]} : vector<8x8x32xf32> to vector<1x8x32xf32>
    %736 = vector.shape_cast %735 : vector<1x8x32xf32> to vector<8x32xf32>
    %737 = arith.addf %736, %726 : vector<8x32xf32>
    %738 = arith.negf %737 : vector<8x32xf32>
    %739 = math.exp %738 : vector<8x32xf32>
    %cst_372 = arith.constant 1.000000e+00 : f32
    %740 = vector.broadcast %cst_372 : f32 to vector<8x32xf32>
    %741 = arith.addf %740, %739 : vector<8x32xf32>
    %742 = arith.divf %740, %741 : vector<8x32xf32>
    %743 = vector.extract_strided_slice %713 {offsets = [0, 0, 0], sizes = [1, 8, 32], strides = [1, 1, 1]} : vector<8x8x32xf32> to vector<1x8x32xf32>
    %744 = vector.shape_cast %743 : vector<1x8x32xf32> to vector<8x32xf32>
    %745 = arith.addf %744, %729 : vector<8x32xf32>
    %746 = arith.negf %745 : vector<8x32xf32>
    %747 = math.exp %746 : vector<8x32xf32>
    %cst_373 = arith.constant 1.000000e+00 : f32
    %748 = vector.broadcast %cst_373 : f32 to vector<8x32xf32>
    %749 = arith.addf %748, %747 : vector<8x32xf32>
    %750 = arith.divf %748, %749 : vector<8x32xf32>
    %751 = vector.extract_strided_slice %721 {offsets = [0, 0, 0], sizes = [1, 8, 32], strides = [1, 1, 1]} : vector<8x8x32xf32> to vector<1x8x32xf32>
    %752 = vector.shape_cast %751 : vector<1x8x32xf32> to vector<8x32xf32>
    %753 = arith.mulf %742, %734 : vector<8x32xf32>
    %754 = arith.addf %752, %753 : vector<8x32xf32>
    %755 = math.tanh %754 : vector<8x32xf32>
    %cst_374 = arith.constant 1.000000e+00 : f32
    %756 = vector.broadcast %cst_374 : f32 to vector<8x32xf32>
    %757 = arith.subf %756, %750 : vector<8x32xf32>
    %758 = arith.mulf %757, %755 : vector<8x32xf32>
    %759 = arith.mulf %750, %723 : vector<8x32xf32>
    %760 = arith.addf %758, %759 : vector<8x32xf32>
    %c0_375 = arith.constant 0 : index
    %c0_376 = arith.constant 0 : index
    %c0_377 = arith.constant 0 : index
    %761 = vector.load %arg11[%c0_375, %c0_376, %c0_377] : memref<3x32x32xf32, #tpu.memory_space<vmem>>, vector<1x32x32xf32>
    %762 = vector.shape_cast %761 : vector<1x32x32xf32> to vector<32x32xf32>
    %cst_378 = arith.constant dense<0.000000e+00> : vector<8x32xf32>
    %763 = tpu.matmul %760, %762, %cst_378 {dimension_numbers = #tpu.dot_dimension_numbers<[1], [0], [0], [1], [0, 0, 1, 1], [], []>} : vector<8x32xf32>, vector<32x32xf32>, vector<8x32xf32> -> vector<8x32xf32>
    %c1_379 = arith.constant 1 : index
    %c0_380 = arith.constant 0 : index
    %c0_381 = arith.constant 0 : index
    %764 = vector.load %arg11[%c1_379, %c0_380, %c0_381] : memref<3x32x32xf32, #tpu.memory_space<vmem>>, vector<1x32x32xf32>
    %765 = vector.shape_cast %764 : vector<1x32x32xf32> to vector<32x32xf32>
    %cst_382 = arith.constant dense<0.000000e+00> : vector<8x32xf32>
    %766 = tpu.matmul %760, %765, %cst_382 {dimension_numbers = #tpu.dot_dimension_numbers<[1], [0], [0], [1], [0, 0, 1, 1], [], []>} : vector<8x32xf32>, vector<32x32xf32>, vector<8x32xf32> -> vector<8x32xf32>
    %c2_383 = arith.constant 2 : index
    %c0_384 = arith.constant 0 : index
    %c0_385 = arith.constant 0 : index
    %767 = vector.load %arg11[%c2_383, %c0_384, %c0_385] : memref<3x32x32xf32, #tpu.memory_space<vmem>>, vector<1x32x32xf32>
    %768 = vector.shape_cast %767 : vector<1x32x32xf32> to vector<32x32xf32>
    %cst_386 = arith.constant dense<0.000000e+00> : vector<8x32xf32>
    %769 = tpu.matmul %760, %768, %cst_386 {dimension_numbers = #tpu.dot_dimension_numbers<[1], [0], [0], [1], [0, 0, 1, 1], [], []>} : vector<8x32xf32>, vector<32x32xf32>, vector<8x32xf32> -> vector<8x32xf32>
    %770 = vector.broadcast %722 : vector<1x32xf32> to vector<8x32xf32>
    %771 = arith.addf %769, %770 : vector<8x32xf32>
    %772 = vector.extract_strided_slice %705 {offsets = [1, 0, 0], sizes = [1, 8, 32], strides = [1, 1, 1]} : vector<8x8x32xf32> to vector<1x8x32xf32>
    %773 = vector.shape_cast %772 : vector<1x8x32xf32> to vector<8x32xf32>
    %774 = arith.addf %773, %763 : vector<8x32xf32>
    %775 = arith.negf %774 : vector<8x32xf32>
    %776 = math.exp %775 : vector<8x32xf32>
    %cst_387 = arith.constant 1.000000e+00 : f32
    %777 = vector.broadcast %cst_387 : f32 to vector<8x32xf32>
    %778 = arith.addf %777, %776 : vector<8x32xf32>
    %779 = arith.divf %777, %778 : vector<8x32xf32>
    %780 = vector.extract_strided_slice %713 {offsets = [1, 0, 0], sizes = [1, 8, 32], strides = [1, 1, 1]} : vector<8x8x32xf32> to vector<1x8x32xf32>
    %781 = vector.shape_cast %780 : vector<1x8x32xf32> to vector<8x32xf32>
    %782 = arith.addf %781, %766 : vector<8x32xf32>
    %783 = arith.negf %782 : vector<8x32xf32>
    %784 = math.exp %783 : vector<8x32xf32>
    %cst_388 = arith.constant 1.000000e+00 : f32
    %785 = vector.broadcast %cst_388 : f32 to vector<8x32xf32>
    %786 = arith.addf %785, %784 : vector<8x32xf32>
    %787 = arith.divf %785, %786 : vector<8x32xf32>
    %788 = vector.extract_strided_slice %721 {offsets = [1, 0, 0], sizes = [1, 8, 32], strides = [1, 1, 1]} : vector<8x8x32xf32> to vector<1x8x32xf32>
    %789 = vector.shape_cast %788 : vector<1x8x32xf32> to vector<8x32xf32>
    %790 = arith.mulf %779, %771 : vector<8x32xf32>
    %791 = arith.addf %789, %790 : vector<8x32xf32>
    %792 = math.tanh %791 : vector<8x32xf32>
    %cst_389 = arith.constant 1.000000e+00 : f32
    %793 = vector.broadcast %cst_389 : f32 to vector<8x32xf32>
    %794 = arith.subf %793, %787 : vector<8x32xf32>
    %795 = arith.mulf %794, %792 : vector<8x32xf32>
    %796 = arith.mulf %787, %760 : vector<8x32xf32>
    %797 = arith.addf %795, %796 : vector<8x32xf32>
    %c0_390 = arith.constant 0 : index
    %c0_391 = arith.constant 0 : index
    %c0_392 = arith.constant 0 : index
    %798 = vector.load %arg11[%c0_390, %c0_391, %c0_392] : memref<3x32x32xf32, #tpu.memory_space<vmem>>, vector<1x32x32xf32>
    %799 = vector.shape_cast %798 : vector<1x32x32xf32> to vector<32x32xf32>
    %cst_393 = arith.constant dense<0.000000e+00> : vector<8x32xf32>
    %800 = tpu.matmul %797, %799, %cst_393 {dimension_numbers = #tpu.dot_dimension_numbers<[1], [0], [0], [1], [0, 0, 1, 1], [], []>} : vector<8x32xf32>, vector<32x32xf32>, vector<8x32xf32> -> vector<8x32xf32>
    %c1_394 = arith.constant 1 : index
    %c0_395 = arith.constant 0 : index
    %c0_396 = arith.constant 0 : index
    %801 = vector.load %arg11[%c1_394, %c0_395, %c0_396] : memref<3x32x32xf32, #tpu.memory_space<vmem>>, vector<1x32x32xf32>
    %802 = vector.shape_cast %801 : vector<1x32x32xf32> to vector<32x32xf32>
    %cst_397 = arith.constant dense<0.000000e+00> : vector<8x32xf32>
    %803 = tpu.matmul %797, %802, %cst_397 {dimension_numbers = #tpu.dot_dimension_numbers<[1], [0], [0], [1], [0, 0, 1, 1], [], []>} : vector<8x32xf32>, vector<32x32xf32>, vector<8x32xf32> -> vector<8x32xf32>
    %c2_398 = arith.constant 2 : index
    %c0_399 = arith.constant 0 : index
    %c0_400 = arith.constant 0 : index
    %804 = vector.load %arg11[%c2_398, %c0_399, %c0_400] : memref<3x32x32xf32, #tpu.memory_space<vmem>>, vector<1x32x32xf32>
    %805 = vector.shape_cast %804 : vector<1x32x32xf32> to vector<32x32xf32>
    %cst_401 = arith.constant dense<0.000000e+00> : vector<8x32xf32>
    %806 = tpu.matmul %797, %805, %cst_401 {dimension_numbers = #tpu.dot_dimension_numbers<[1], [0], [0], [1], [0, 0, 1, 1], [], []>} : vector<8x32xf32>, vector<32x32xf32>, vector<8x32xf32> -> vector<8x32xf32>
    %807 = vector.broadcast %722 : vector<1x32xf32> to vector<8x32xf32>
    %808 = arith.addf %806, %807 : vector<8x32xf32>
    %809 = vector.extract_strided_slice %705 {offsets = [2, 0, 0], sizes = [1, 8, 32], strides = [1, 1, 1]} : vector<8x8x32xf32> to vector<1x8x32xf32>
    %810 = vector.shape_cast %809 : vector<1x8x32xf32> to vector<8x32xf32>
    %811 = arith.addf %810, %800 : vector<8x32xf32>
    %812 = arith.negf %811 : vector<8x32xf32>
    %813 = math.exp %812 : vector<8x32xf32>
    %cst_402 = arith.constant 1.000000e+00 : f32
    %814 = vector.broadcast %cst_402 : f32 to vector<8x32xf32>
    %815 = arith.addf %814, %813 : vector<8x32xf32>
    %816 = arith.divf %814, %815 : vector<8x32xf32>
    %817 = vector.extract_strided_slice %713 {offsets = [2, 0, 0], sizes = [1, 8, 32], strides = [1, 1, 1]} : vector<8x8x32xf32> to vector<1x8x32xf32>
    %818 = vector.shape_cast %817 : vector<1x8x32xf32> to vector<8x32xf32>
    %819 = arith.addf %818, %803 : vector<8x32xf32>
    %820 = arith.negf %819 : vector<8x32xf32>
    %821 = math.exp %820 : vector<8x32xf32>
    %cst_403 = arith.constant 1.000000e+00 : f32
    %822 = vector.broadcast %cst_403 : f32 to vector<8x32xf32>
    %823 = arith.addf %822, %821 : vector<8x32xf32>
    %824 = arith.divf %822, %823 : vector<8x32xf32>
    %825 = vector.extract_strided_slice %721 {offsets = [2, 0, 0], sizes = [1, 8, 32], strides = [1, 1, 1]} : vector<8x8x32xf32> to vector<1x8x32xf32>
    %826 = vector.shape_cast %825 : vector<1x8x32xf32> to vector<8x32xf32>
    %827 = arith.mulf %816, %808 : vector<8x32xf32>
    %828 = arith.addf %826, %827 : vector<8x32xf32>
    %829 = math.tanh %828 : vector<8x32xf32>
    %cst_404 = arith.constant 1.000000e+00 : f32
    %830 = vector.broadcast %cst_404 : f32 to vector<8x32xf32>
    %831 = arith.subf %830, %824 : vector<8x32xf32>
    %832 = arith.mulf %831, %829 : vector<8x32xf32>
    %833 = arith.mulf %824, %797 : vector<8x32xf32>
    %834 = arith.addf %832, %833 : vector<8x32xf32>
    %c0_405 = arith.constant 0 : index
    %c0_406 = arith.constant 0 : index
    %c0_407 = arith.constant 0 : index
    %835 = vector.load %arg11[%c0_405, %c0_406, %c0_407] : memref<3x32x32xf32, #tpu.memory_space<vmem>>, vector<1x32x32xf32>
    %836 = vector.shape_cast %835 : vector<1x32x32xf32> to vector<32x32xf32>
    %cst_408 = arith.constant dense<0.000000e+00> : vector<8x32xf32>
    %837 = tpu.matmul %834, %836, %cst_408 {dimension_numbers = #tpu.dot_dimension_numbers<[1], [0], [0], [1], [0, 0, 1, 1], [], []>} : vector<8x32xf32>, vector<32x32xf32>, vector<8x32xf32> -> vector<8x32xf32>
    %c1_409 = arith.constant 1 : index
    %c0_410 = arith.constant 0 : index
    %c0_411 = arith.constant 0 : index
    %838 = vector.load %arg11[%c1_409, %c0_410, %c0_411] : memref<3x32x32xf32, #tpu.memory_space<vmem>>, vector<1x32x32xf32>
    %839 = vector.shape_cast %838 : vector<1x32x32xf32> to vector<32x32xf32>
    %cst_412 = arith.constant dense<0.000000e+00> : vector<8x32xf32>
    %840 = tpu.matmul %834, %839, %cst_412 {dimension_numbers = #tpu.dot_dimension_numbers<[1], [0], [0], [1], [0, 0, 1, 1], [], []>} : vector<8x32xf32>, vector<32x32xf32>, vector<8x32xf32> -> vector<8x32xf32>
    %c2_413 = arith.constant 2 : index
    %c0_414 = arith.constant 0 : index
    %c0_415 = arith.constant 0 : index
    %841 = vector.load %arg11[%c2_413, %c0_414, %c0_415] : memref<3x32x32xf32, #tpu.memory_space<vmem>>, vector<1x32x32xf32>
    %842 = vector.shape_cast %841 : vector<1x32x32xf32> to vector<32x32xf32>
    %cst_416 = arith.constant dense<0.000000e+00> : vector<8x32xf32>
    %843 = tpu.matmul %834, %842, %cst_416 {dimension_numbers = #tpu.dot_dimension_numbers<[1], [0], [0], [1], [0, 0, 1, 1], [], []>} : vector<8x32xf32>, vector<32x32xf32>, vector<8x32xf32> -> vector<8x32xf32>
    %844 = vector.broadcast %722 : vector<1x32xf32> to vector<8x32xf32>
    %845 = arith.addf %843, %844 : vector<8x32xf32>
    %846 = vector.extract_strided_slice %705 {offsets = [3, 0, 0], sizes = [1, 8, 32], strides = [1, 1, 1]} : vector<8x8x32xf32> to vector<1x8x32xf32>
    %847 = vector.shape_cast %846 : vector<1x8x32xf32> to vector<8x32xf32>
    %848 = arith.addf %847, %837 : vector<8x32xf32>
    %849 = arith.negf %848 : vector<8x32xf32>
    %850 = math.exp %849 : vector<8x32xf32>
    %cst_417 = arith.constant 1.000000e+00 : f32
    %851 = vector.broadcast %cst_417 : f32 to vector<8x32xf32>
    %852 = arith.addf %851, %850 : vector<8x32xf32>
    %853 = arith.divf %851, %852 : vector<8x32xf32>
    %854 = vector.extract_strided_slice %713 {offsets = [3, 0, 0], sizes = [1, 8, 32], strides = [1, 1, 1]} : vector<8x8x32xf32> to vector<1x8x32xf32>
    %855 = vector.shape_cast %854 : vector<1x8x32xf32> to vector<8x32xf32>
    %856 = arith.addf %855, %840 : vector<8x32xf32>
    %857 = arith.negf %856 : vector<8x32xf32>
    %858 = math.exp %857 : vector<8x32xf32>
    %cst_418 = arith.constant 1.000000e+00 : f32
    %859 = vector.broadcast %cst_418 : f32 to vector<8x32xf32>
    %860 = arith.addf %859, %858 : vector<8x32xf32>
    %861 = arith.divf %859, %860 : vector<8x32xf32>
    %862 = vector.extract_strided_slice %721 {offsets = [3, 0, 0], sizes = [1, 8, 32], strides = [1, 1, 1]} : vector<8x8x32xf32> to vector<1x8x32xf32>
    %863 = vector.shape_cast %862 : vector<1x8x32xf32> to vector<8x32xf32>
    %864 = arith.mulf %853, %845 : vector<8x32xf32>
    %865 = arith.addf %863, %864 : vector<8x32xf32>
    %866 = math.tanh %865 : vector<8x32xf32>
    %cst_419 = arith.constant 1.000000e+00 : f32
    %867 = vector.broadcast %cst_419 : f32 to vector<8x32xf32>
    %868 = arith.subf %867, %861 : vector<8x32xf32>
    %869 = arith.mulf %868, %866 : vector<8x32xf32>
    %870 = arith.mulf %861, %834 : vector<8x32xf32>
    %871 = arith.addf %869, %870 : vector<8x32xf32>
    %c0_420 = arith.constant 0 : index
    %c0_421 = arith.constant 0 : index
    %c0_422 = arith.constant 0 : index
    %872 = vector.load %arg11[%c0_420, %c0_421, %c0_422] : memref<3x32x32xf32, #tpu.memory_space<vmem>>, vector<1x32x32xf32>
    %873 = vector.shape_cast %872 : vector<1x32x32xf32> to vector<32x32xf32>
    %cst_423 = arith.constant dense<0.000000e+00> : vector<8x32xf32>
    %874 = tpu.matmul %871, %873, %cst_423 {dimension_numbers = #tpu.dot_dimension_numbers<[1], [0], [0], [1], [0, 0, 1, 1], [], []>} : vector<8x32xf32>, vector<32x32xf32>, vector<8x32xf32> -> vector<8x32xf32>
    %c1_424 = arith.constant 1 : index
    %c0_425 = arith.constant 0 : index
    %c0_426 = arith.constant 0 : index
    %875 = vector.load %arg11[%c1_424, %c0_425, %c0_426] : memref<3x32x32xf32, #tpu.memory_space<vmem>>, vector<1x32x32xf32>
    %876 = vector.shape_cast %875 : vector<1x32x32xf32> to vector<32x32xf32>
    %cst_427 = arith.constant dense<0.000000e+00> : vector<8x32xf32>
    %877 = tpu.matmul %871, %876, %cst_427 {dimension_numbers = #tpu.dot_dimension_numbers<[1], [0], [0], [1], [0, 0, 1, 1], [], []>} : vector<8x32xf32>, vector<32x32xf32>, vector<8x32xf32> -> vector<8x32xf32>
    %c2_428 = arith.constant 2 : index
    %c0_429 = arith.constant 0 : index
    %c0_430 = arith.constant 0 : index
    %878 = vector.load %arg11[%c2_428, %c0_429, %c0_430] : memref<3x32x32xf32, #tpu.memory_space<vmem>>, vector<1x32x32xf32>
    %879 = vector.shape_cast %878 : vector<1x32x32xf32> to vector<32x32xf32>
    %cst_431 = arith.constant dense<0.000000e+00> : vector<8x32xf32>
    %880 = tpu.matmul %871, %879, %cst_431 {dimension_numbers = #tpu.dot_dimension_numbers<[1], [0], [0], [1], [0, 0, 1, 1], [], []>} : vector<8x32xf32>, vector<32x32xf32>, vector<8x32xf32> -> vector<8x32xf32>
    %881 = vector.broadcast %722 : vector<1x32xf32> to vector<8x32xf32>
    %882 = arith.addf %880, %881 : vector<8x32xf32>
    %883 = vector.extract_strided_slice %705 {offsets = [4, 0, 0], sizes = [1, 8, 32], strides = [1, 1, 1]} : vector<8x8x32xf32> to vector<1x8x32xf32>
    %884 = vector.shape_cast %883 : vector<1x8x32xf32> to vector<8x32xf32>
    %885 = arith.addf %884, %874 : vector<8x32xf32>
    %886 = arith.negf %885 : vector<8x32xf32>
    %887 = math.exp %886 : vector<8x32xf32>
    %cst_432 = arith.constant 1.000000e+00 : f32
    %888 = vector.broadcast %cst_432 : f32 to vector<8x32xf32>
    %889 = arith.addf %888, %887 : vector<8x32xf32>
    %890 = arith.divf %888, %889 : vector<8x32xf32>
    %891 = vector.extract_strided_slice %713 {offsets = [4, 0, 0], sizes = [1, 8, 32], strides = [1, 1, 1]} : vector<8x8x32xf32> to vector<1x8x32xf32>
    %892 = vector.shape_cast %891 : vector<1x8x32xf32> to vector<8x32xf32>
    %893 = arith.addf %892, %877 : vector<8x32xf32>
    %894 = arith.negf %893 : vector<8x32xf32>
    %895 = math.exp %894 : vector<8x32xf32>
    %cst_433 = arith.constant 1.000000e+00 : f32
    %896 = vector.broadcast %cst_433 : f32 to vector<8x32xf32>
    %897 = arith.addf %896, %895 : vector<8x32xf32>
    %898 = arith.divf %896, %897 : vector<8x32xf32>
    %899 = vector.extract_strided_slice %721 {offsets = [4, 0, 0], sizes = [1, 8, 32], strides = [1, 1, 1]} : vector<8x8x32xf32> to vector<1x8x32xf32>
    %900 = vector.shape_cast %899 : vector<1x8x32xf32> to vector<8x32xf32>
    %901 = arith.mulf %890, %882 : vector<8x32xf32>
    %902 = arith.addf %900, %901 : vector<8x32xf32>
    %903 = math.tanh %902 : vector<8x32xf32>
    %cst_434 = arith.constant 1.000000e+00 : f32
    %904 = vector.broadcast %cst_434 : f32 to vector<8x32xf32>
    %905 = arith.subf %904, %898 : vector<8x32xf32>
    %906 = arith.mulf %905, %903 : vector<8x32xf32>
    %907 = arith.mulf %898, %871 : vector<8x32xf32>
    %908 = arith.addf %906, %907 : vector<8x32xf32>
    %c0_435 = arith.constant 0 : index
    %c0_436 = arith.constant 0 : index
    %c0_437 = arith.constant 0 : index
    %909 = vector.load %arg11[%c0_435, %c0_436, %c0_437] : memref<3x32x32xf32, #tpu.memory_space<vmem>>, vector<1x32x32xf32>
    %910 = vector.shape_cast %909 : vector<1x32x32xf32> to vector<32x32xf32>
    %cst_438 = arith.constant dense<0.000000e+00> : vector<8x32xf32>
    %911 = tpu.matmul %908, %910, %cst_438 {dimension_numbers = #tpu.dot_dimension_numbers<[1], [0], [0], [1], [0, 0, 1, 1], [], []>} : vector<8x32xf32>, vector<32x32xf32>, vector<8x32xf32> -> vector<8x32xf32>
    %c1_439 = arith.constant 1 : index
    %c0_440 = arith.constant 0 : index
    %c0_441 = arith.constant 0 : index
    %912 = vector.load %arg11[%c1_439, %c0_440, %c0_441] : memref<3x32x32xf32, #tpu.memory_space<vmem>>, vector<1x32x32xf32>
    %913 = vector.shape_cast %912 : vector<1x32x32xf32> to vector<32x32xf32>
    %cst_442 = arith.constant dense<0.000000e+00> : vector<8x32xf32>
    %914 = tpu.matmul %908, %913, %cst_442 {dimension_numbers = #tpu.dot_dimension_numbers<[1], [0], [0], [1], [0, 0, 1, 1], [], []>} : vector<8x32xf32>, vector<32x32xf32>, vector<8x32xf32> -> vector<8x32xf32>
    %c2_443 = arith.constant 2 : index
    %c0_444 = arith.constant 0 : index
    %c0_445 = arith.constant 0 : index
    %915 = vector.load %arg11[%c2_443, %c0_444, %c0_445] : memref<3x32x32xf32, #tpu.memory_space<vmem>>, vector<1x32x32xf32>
    %916 = vector.shape_cast %915 : vector<1x32x32xf32> to vector<32x32xf32>
    %cst_446 = arith.constant dense<0.000000e+00> : vector<8x32xf32>
    %917 = tpu.matmul %908, %916, %cst_446 {dimension_numbers = #tpu.dot_dimension_numbers<[1], [0], [0], [1], [0, 0, 1, 1], [], []>} : vector<8x32xf32>, vector<32x32xf32>, vector<8x32xf32> -> vector<8x32xf32>
    %918 = vector.broadcast %722 : vector<1x32xf32> to vector<8x32xf32>
    %919 = arith.addf %917, %918 : vector<8x32xf32>
    %920 = vector.extract_strided_slice %705 {offsets = [5, 0, 0], sizes = [1, 8, 32], strides = [1, 1, 1]} : vector<8x8x32xf32> to vector<1x8x32xf32>
    %921 = vector.shape_cast %920 : vector<1x8x32xf32> to vector<8x32xf32>
    %922 = arith.addf %921, %911 : vector<8x32xf32>
    %923 = arith.negf %922 : vector<8x32xf32>
    %924 = math.exp %923 : vector<8x32xf32>
    %cst_447 = arith.constant 1.000000e+00 : f32
    %925 = vector.broadcast %cst_447 : f32 to vector<8x32xf32>
    %926 = arith.addf %925, %924 : vector<8x32xf32>
    %927 = arith.divf %925, %926 : vector<8x32xf32>
    %928 = vector.extract_strided_slice %713 {offsets = [5, 0, 0], sizes = [1, 8, 32], strides = [1, 1, 1]} : vector<8x8x32xf32> to vector<1x8x32xf32>
    %929 = vector.shape_cast %928 : vector<1x8x32xf32> to vector<8x32xf32>
    %930 = arith.addf %929, %914 : vector<8x32xf32>
    %931 = arith.negf %930 : vector<8x32xf32>
    %932 = math.exp %931 : vector<8x32xf32>
    %cst_448 = arith.constant 1.000000e+00 : f32
    %933 = vector.broadcast %cst_448 : f32 to vector<8x32xf32>
    %934 = arith.addf %933, %932 : vector<8x32xf32>
    %935 = arith.divf %933, %934 : vector<8x32xf32>
    %936 = vector.extract_strided_slice %721 {offsets = [5, 0, 0], sizes = [1, 8, 32], strides = [1, 1, 1]} : vector<8x8x32xf32> to vector<1x8x32xf32>
    %937 = vector.shape_cast %936 : vector<1x8x32xf32> to vector<8x32xf32>
    %938 = arith.mulf %927, %919 : vector<8x32xf32>
    %939 = arith.addf %937, %938 : vector<8x32xf32>
    %940 = math.tanh %939 : vector<8x32xf32>
    %cst_449 = arith.constant 1.000000e+00 : f32
    %941 = vector.broadcast %cst_449 : f32 to vector<8x32xf32>
    %942 = arith.subf %941, %935 : vector<8x32xf32>
    %943 = arith.mulf %942, %940 : vector<8x32xf32>
    %944 = arith.mulf %935, %908 : vector<8x32xf32>
    %945 = arith.addf %943, %944 : vector<8x32xf32>
    %c0_450 = arith.constant 0 : index
    %c0_451 = arith.constant 0 : index
    %c0_452 = arith.constant 0 : index
    %946 = vector.load %arg11[%c0_450, %c0_451, %c0_452] : memref<3x32x32xf32, #tpu.memory_space<vmem>>, vector<1x32x32xf32>
    %947 = vector.shape_cast %946 : vector<1x32x32xf32> to vector<32x32xf32>
    %cst_453 = arith.constant dense<0.000000e+00> : vector<8x32xf32>
    %948 = tpu.matmul %945, %947, %cst_453 {dimension_numbers = #tpu.dot_dimension_numbers<[1], [0], [0], [1], [0, 0, 1, 1], [], []>} : vector<8x32xf32>, vector<32x32xf32>, vector<8x32xf32> -> vector<8x32xf32>
    %c1_454 = arith.constant 1 : index
    %c0_455 = arith.constant 0 : index
    %c0_456 = arith.constant 0 : index
    %949 = vector.load %arg11[%c1_454, %c0_455, %c0_456] : memref<3x32x32xf32, #tpu.memory_space<vmem>>, vector<1x32x32xf32>
    %950 = vector.shape_cast %949 : vector<1x32x32xf32> to vector<32x32xf32>
    %cst_457 = arith.constant dense<0.000000e+00> : vector<8x32xf32>
    %951 = tpu.matmul %945, %950, %cst_457 {dimension_numbers = #tpu.dot_dimension_numbers<[1], [0], [0], [1], [0, 0, 1, 1], [], []>} : vector<8x32xf32>, vector<32x32xf32>, vector<8x32xf32> -> vector<8x32xf32>
    %c2_458 = arith.constant 2 : index
    %c0_459 = arith.constant 0 : index
    %c0_460 = arith.constant 0 : index
    %952 = vector.load %arg11[%c2_458, %c0_459, %c0_460] : memref<3x32x32xf32, #tpu.memory_space<vmem>>, vector<1x32x32xf32>
    %953 = vector.shape_cast %952 : vector<1x32x32xf32> to vector<32x32xf32>
    %cst_461 = arith.constant dense<0.000000e+00> : vector<8x32xf32>
    %954 = tpu.matmul %945, %953, %cst_461 {dimension_numbers = #tpu.dot_dimension_numbers<[1], [0], [0], [1], [0, 0, 1, 1], [], []>} : vector<8x32xf32>, vector<32x32xf32>, vector<8x32xf32> -> vector<8x32xf32>
    %955 = vector.broadcast %722 : vector<1x32xf32> to vector<8x32xf32>
    %956 = arith.addf %954, %955 : vector<8x32xf32>
    %957 = vector.extract_strided_slice %705 {offsets = [6, 0, 0], sizes = [1, 8, 32], strides = [1, 1, 1]} : vector<8x8x32xf32> to vector<1x8x32xf32>
    %958 = vector.shape_cast %957 : vector<1x8x32xf32> to vector<8x32xf32>
    %959 = arith.addf %958, %948 : vector<8x32xf32>
    %960 = arith.negf %959 : vector<8x32xf32>
    %961 = math.exp %960 : vector<8x32xf32>
    %cst_462 = arith.constant 1.000000e+00 : f32
    %962 = vector.broadcast %cst_462 : f32 to vector<8x32xf32>
    %963 = arith.addf %962, %961 : vector<8x32xf32>
    %964 = arith.divf %962, %963 : vector<8x32xf32>
    %965 = vector.extract_strided_slice %713 {offsets = [6, 0, 0], sizes = [1, 8, 32], strides = [1, 1, 1]} : vector<8x8x32xf32> to vector<1x8x32xf32>
    %966 = vector.shape_cast %965 : vector<1x8x32xf32> to vector<8x32xf32>
    %967 = arith.addf %966, %951 : vector<8x32xf32>
    %968 = arith.negf %967 : vector<8x32xf32>
    %969 = math.exp %968 : vector<8x32xf32>
    %cst_463 = arith.constant 1.000000e+00 : f32
    %970 = vector.broadcast %cst_463 : f32 to vector<8x32xf32>
    %971 = arith.addf %970, %969 : vector<8x32xf32>
    %972 = arith.divf %970, %971 : vector<8x32xf32>
    %973 = vector.extract_strided_slice %721 {offsets = [6, 0, 0], sizes = [1, 8, 32], strides = [1, 1, 1]} : vector<8x8x32xf32> to vector<1x8x32xf32>
    %974 = vector.shape_cast %973 : vector<1x8x32xf32> to vector<8x32xf32>
    %975 = arith.mulf %964, %956 : vector<8x32xf32>
    %976 = arith.addf %974, %975 : vector<8x32xf32>
    %977 = math.tanh %976 : vector<8x32xf32>
    %cst_464 = arith.constant 1.000000e+00 : f32
    %978 = vector.broadcast %cst_464 : f32 to vector<8x32xf32>
    %979 = arith.subf %978, %972 : vector<8x32xf32>
    %980 = arith.mulf %979, %977 : vector<8x32xf32>
    %981 = arith.mulf %972, %945 : vector<8x32xf32>
    %982 = arith.addf %980, %981 : vector<8x32xf32>
    %c0_465 = arith.constant 0 : index
    %c0_466 = arith.constant 0 : index
    %c0_467 = arith.constant 0 : index
    %983 = vector.load %arg11[%c0_465, %c0_466, %c0_467] : memref<3x32x32xf32, #tpu.memory_space<vmem>>, vector<1x32x32xf32>
    %984 = vector.shape_cast %983 : vector<1x32x32xf32> to vector<32x32xf32>
    %cst_468 = arith.constant dense<0.000000e+00> : vector<8x32xf32>
    %985 = tpu.matmul %982, %984, %cst_468 {dimension_numbers = #tpu.dot_dimension_numbers<[1], [0], [0], [1], [0, 0, 1, 1], [], []>} : vector<8x32xf32>, vector<32x32xf32>, vector<8x32xf32> -> vector<8x32xf32>
    %c1_469 = arith.constant 1 : index
    %c0_470 = arith.constant 0 : index
    %c0_471 = arith.constant 0 : index
    %986 = vector.load %arg11[%c1_469, %c0_470, %c0_471] : memref<3x32x32xf32, #tpu.memory_space<vmem>>, vector<1x32x32xf32>
    %987 = vector.shape_cast %986 : vector<1x32x32xf32> to vector<32x32xf32>
    %cst_472 = arith.constant dense<0.000000e+00> : vector<8x32xf32>
    %988 = tpu.matmul %982, %987, %cst_472 {dimension_numbers = #tpu.dot_dimension_numbers<[1], [0], [0], [1], [0, 0, 1, 1], [], []>} : vector<8x32xf32>, vector<32x32xf32>, vector<8x32xf32> -> vector<8x32xf32>
    %c2_473 = arith.constant 2 : index
    %c0_474 = arith.constant 0 : index
    %c0_475 = arith.constant 0 : index
    %989 = vector.load %arg11[%c2_473, %c0_474, %c0_475] : memref<3x32x32xf32, #tpu.memory_space<vmem>>, vector<1x32x32xf32>
    %990 = vector.shape_cast %989 : vector<1x32x32xf32> to vector<32x32xf32>
    %cst_476 = arith.constant dense<0.000000e+00> : vector<8x32xf32>
    %991 = tpu.matmul %982, %990, %cst_476 {dimension_numbers = #tpu.dot_dimension_numbers<[1], [0], [0], [1], [0, 0, 1, 1], [], []>} : vector<8x32xf32>, vector<32x32xf32>, vector<8x32xf32> -> vector<8x32xf32>
    %992 = vector.broadcast %722 : vector<1x32xf32> to vector<8x32xf32>
    %993 = arith.addf %991, %992 : vector<8x32xf32>
    %994 = vector.extract_strided_slice %705 {offsets = [7, 0, 0], sizes = [1, 8, 32], strides = [1, 1, 1]} : vector<8x8x32xf32> to vector<1x8x32xf32>
    %995 = vector.shape_cast %994 : vector<1x8x32xf32> to vector<8x32xf32>
    %996 = arith.addf %995, %985 : vector<8x32xf32>
    %997 = arith.negf %996 : vector<8x32xf32>
    %998 = math.exp %997 : vector<8x32xf32>
    %cst_477 = arith.constant 1.000000e+00 : f32
    %999 = vector.broadcast %cst_477 : f32 to vector<8x32xf32>
    %1000 = arith.addf %999, %998 : vector<8x32xf32>
    %1001 = arith.divf %999, %1000 : vector<8x32xf32>
    %1002 = vector.extract_strided_slice %713 {offsets = [7, 0, 0], sizes = [1, 8, 32], strides = [1, 1, 1]} : vector<8x8x32xf32> to vector<1x8x32xf32>
    %1003 = vector.shape_cast %1002 : vector<1x8x32xf32> to vector<8x32xf32>
    %1004 = arith.addf %1003, %988 : vector<8x32xf32>
    %1005 = arith.negf %1004 : vector<8x32xf32>
    %1006 = math.exp %1005 : vector<8x32xf32>
    %cst_478 = arith.constant 1.000000e+00 : f32
    %1007 = vector.broadcast %cst_478 : f32 to vector<8x32xf32>
    %1008 = arith.addf %1007, %1006 : vector<8x32xf32>
    %1009 = arith.divf %1007, %1008 : vector<8x32xf32>
    %1010 = vector.extract_strided_slice %721 {offsets = [7, 0, 0], sizes = [1, 8, 32], strides = [1, 1, 1]} : vector<8x8x32xf32> to vector<1x8x32xf32>
    %1011 = vector.shape_cast %1010 : vector<1x8x32xf32> to vector<8x32xf32>
    %1012 = arith.mulf %1001, %993 : vector<8x32xf32>
    %1013 = arith.addf %1011, %1012 : vector<8x32xf32>
    %1014 = math.tanh %1013 : vector<8x32xf32>
    %cst_479 = arith.constant 1.000000e+00 : f32
    %1015 = vector.broadcast %cst_479 : f32 to vector<8x32xf32>
    %1016 = arith.subf %1015, %1009 : vector<8x32xf32>
    %1017 = arith.mulf %1016, %1014 : vector<8x32xf32>
    %1018 = arith.mulf %1009, %982 : vector<8x32xf32>
    %1019 = arith.addf %1017, %1018 : vector<8x32xf32>
    %c7_480 = arith.constant 7 : index
    %c0_481 = arith.constant 0 : index
    %c0_482 = arith.constant 0 : index
    %1020 = vector.load %arg1[%c7_480, %c0_481, %c0_482] : memref<8x8x32xf32, #tpu.memory_space<vmem>>, vector<1x8x32xf32>
    %1021 = vector.shape_cast %1020 : vector<1x8x32xf32> to vector<8x32xf32>
    %c0_483 = arith.constant 0 : index
    %c0_484 = arith.constant 0 : index
    %1022 = vector.load %arg14[%c0_483, %c0_484] : memref<32x16xf32, #tpu.memory_space<vmem>>, vector<32x16xf32>
    %cst_485 = arith.constant dense<0.000000e+00> : vector<8x16xf32>
    %1023 = tpu.matmul %1021, %1022, %cst_485 {dimension_numbers = #tpu.dot_dimension_numbers<[1], [0], [0], [1], [0, 0, 1, 1], [], []>} : vector<8x32xf32>, vector<32x16xf32>, vector<8x16xf32> -> vector<8x16xf32>
    %c0_486 = arith.constant 0 : index
    %c0_487 = arith.constant 0 : index
    %1024 = vector.load %arg15[%c0_486, %c0_487] : memref<1x16xf32, #tpu.memory_space<vmem>>, vector<1x16xf32>
    %1025 = vector.broadcast %1024 : vector<1x16xf32> to vector<8x16xf32>
    %1026 = arith.addf %1023, %1025 : vector<8x16xf32>
    %cst_488 = arith.constant 0.000000e+00 : f32
    %1027 = vector.broadcast %cst_488 : f32 to vector<8x16xf32>
    %1028 = arith.maximumf %1026, %1027 : vector<8x16xf32>
    %c0_489 = arith.constant 0 : index
    %c0_490 = arith.constant 0 : index
    %1029 = vector.load %arg16[%c0_489, %c0_490] : memref<32x32xf32, #tpu.memory_space<vmem>>, vector<32x32xf32>
    %cst_491 = arith.constant dense<0.000000e+00> : vector<8x32xf32>
    %1030 = tpu.matmul %1019, %1029, %cst_491 {dimension_numbers = #tpu.dot_dimension_numbers<[1], [0], [0], [1], [0, 0, 1, 1], [], []>} : vector<8x32xf32>, vector<32x32xf32>, vector<8x32xf32> -> vector<8x32xf32>
    %c0_492 = arith.constant 0 : index
    %c0_493 = arith.constant 0 : index
    %1031 = vector.load %arg17[%c0_492, %c0_493] : memref<16x32xf32, #tpu.memory_space<vmem>>, vector<16x32xf32>
    %cst_494 = arith.constant dense<0.000000e+00> : vector<8x32xf32>
    %1032 = tpu.matmul %1028, %1031, %cst_494 {dimension_numbers = #tpu.dot_dimension_numbers<[1], [0], [0], [1], [0, 0, 1, 1], [], []>} : vector<8x16xf32>, vector<16x32xf32>, vector<8x32xf32> -> vector<8x32xf32>
    %1033 = arith.addf %1030, %1032 : vector<8x32xf32>
    %c0_495 = arith.constant 0 : index
    %c0_496 = arith.constant 0 : index
    %1034 = vector.load %arg18[%c0_495, %c0_496] : memref<1x32xf32, #tpu.memory_space<vmem>>, vector<1x32xf32>
    %1035 = vector.broadcast %1034 : vector<1x32xf32> to vector<8x32xf32>
    %1036 = arith.addf %1033, %1035 : vector<8x32xf32>
    %cst_497 = arith.constant 0.000000e+00 : f32
    %1037 = vector.broadcast %cst_497 : f32 to vector<8x32xf32>
    %1038 = arith.maximumf %1036, %1037 : vector<8x32xf32>
    %c0_498 = arith.constant 0 : index
    %c0_499 = arith.constant 0 : index
    %1039 = vector.load %arg19[%c0_498, %c0_499] : memref<32x32xf32, #tpu.memory_space<vmem>>, vector<32x32xf32>
    %cst_500 = arith.constant dense<0.000000e+00> : vector<8x32xf32>
    %1040 = tpu.matmul %1038, %1039, %cst_500 {dimension_numbers = #tpu.dot_dimension_numbers<[1], [0], [0], [1], [0, 0, 1, 1], [], []>} : vector<8x32xf32>, vector<32x32xf32>, vector<8x32xf32> -> vector<8x32xf32>
    %c0_501 = arith.constant 0 : index
    %c0_502 = arith.constant 0 : index
    %1041 = vector.load %arg20[%c0_501, %c0_502] : memref<1x32xf32, #tpu.memory_space<vmem>>, vector<1x32xf32>
    %1042 = vector.broadcast %1041 : vector<1x32xf32> to vector<8x32xf32>
    %1043 = arith.addf %1040, %1042 : vector<8x32xf32>
    %cst_503 = arith.constant 0.000000e+00 : f32
    %1044 = vector.broadcast %cst_503 : f32 to vector<8x32xf32>
    %1045 = arith.maximumf %1043, %1044 : vector<8x32xf32>
    %c0_504 = arith.constant 0 : index
    %c0_505 = arith.constant 0 : index
    %1046 = vector.load %arg21[%c0_504, %c0_505] : memref<32x8xf32, #tpu.memory_space<vmem>>, vector<32x8xf32>
    %cst_506 = arith.constant dense<0.000000e+00> : vector<8x8xf32>
    %1047 = tpu.matmul %1045, %1046, %cst_506 {dimension_numbers = #tpu.dot_dimension_numbers<[1], [0], [0], [1], [0, 0, 1, 1], [], []>} : vector<8x32xf32>, vector<32x8xf32>, vector<8x8xf32> -> vector<8x8xf32>
    %c0_507 = arith.constant 0 : index
    %c0_508 = arith.constant 0 : index
    %1048 = vector.load %arg22[%c0_507, %c0_508] : memref<1x8xf32, #tpu.memory_space<vmem>>, vector<1x8xf32>
    %1049 = vector.broadcast %1048 : vector<1x8xf32> to vector<8x8xf32>
    %1050 = arith.addf %1047, %1049 : vector<8x8xf32>
    %c0_509 = arith.constant 0 : index
    %c0_510 = arith.constant 0 : index
    %1051 = vector.load %arg23[%c0_509, %c0_510] : memref<32x32xf32, #tpu.memory_space<vmem>>, vector<32x32xf32>
    %cst_511 = arith.constant dense<0.000000e+00> : vector<8x32xf32>
    %1052 = tpu.matmul %1038, %1051, %cst_511 {dimension_numbers = #tpu.dot_dimension_numbers<[1], [0], [0], [1], [0, 0, 1, 1], [], []>} : vector<8x32xf32>, vector<32x32xf32>, vector<8x32xf32> -> vector<8x32xf32>
    %c0_512 = arith.constant 0 : index
    %c0_513 = arith.constant 0 : index
    %1053 = vector.load %arg24[%c0_512, %c0_513] : memref<1x32xf32, #tpu.memory_space<vmem>>, vector<1x32xf32>
    %1054 = vector.broadcast %1053 : vector<1x32xf32> to vector<8x32xf32>
    %1055 = arith.addf %1052, %1054 : vector<8x32xf32>
    %cst_514 = arith.constant 0.000000e+00 : f32
    %1056 = vector.broadcast %cst_514 : f32 to vector<8x32xf32>
    %1057 = arith.maximumf %1055, %1056 : vector<8x32xf32>
    %c0_515 = arith.constant 0 : index
    %c0_516 = arith.constant 0 : index
    %1058 = vector.load %arg25[%c0_515, %c0_516] : memref<32x1xf32, #tpu.memory_space<vmem>>, vector<32x1xf32>
    %cst_517 = arith.constant dense<0.000000e+00> : vector<8x1xf32>
    %1059 = tpu.matmul %1057, %1058, %cst_517 {dimension_numbers = #tpu.dot_dimension_numbers<[1], [0], [0], [1], [0, 0, 1, 1], [], []>} : vector<8x32xf32>, vector<32x1xf32>, vector<8x1xf32> -> vector<8x1xf32>
    %c0_518 = arith.constant 0 : index
    %c0_519 = arith.constant 0 : index
    %1060 = vector.load %arg26[%c0_518, %c0_519] : memref<1x1xf32, #tpu.memory_space<vmem>>, vector<1x1xf32>
    %1061 = vector.broadcast %1060 : vector<1x1xf32> to vector<8x1xf32>
    %1062 = arith.addf %1059, %1061 : vector<8x1xf32>
    %1063 = vector.broadcast %1062 : vector<8x1xf32> to vector<8x8xf32>
    %1064 = arith.addf %1063, %1050 : vector<8x8xf32>
    %cst_520 = arith.constant dense<0.000000e+00> : vector<8xf32>
    %1065 = vector.multi_reduction <add>, %1050, %cst_520 [1] : vector<8x8xf32> to vector<8xf32>
    %1066 = vector.shape_cast %1065 : vector<8xf32> to vector<8x1xf32>
    %cst_521 = arith.constant 8.000000e+00 : f32
    %1067 = vector.broadcast %cst_521 : f32 to vector<8x1xf32>
    %1068 = arith.divf %1066, %1067 : vector<8x1xf32>
    %1069 = vector.broadcast %1068 : vector<8x1xf32> to vector<8x8xf32>
    %1070 = arith.subf %1064, %1069 : vector<8x8xf32>
    %c0_522 = arith.constant 0 : index
    %c0_523 = arith.constant 0 : index
    %1071 = vector.load %arg27[%c0_522, %c0_523] : memref<8x8xf32, #tpu.memory_space<vmem>>, vector<8x8xf32>
    tpu.vector_store %arg27[%c0_522, %c0_523], %1070 {strides = array<i32>} : memref<8x8xf32, #tpu.memory_space<vmem>>, vector<8x8xf32>,
    return
  }
  func.func @transform_0(%arg0: i32) -> (i32, i32, i32) {
    %c0_i32 = arith.constant 0 : i32
    %c0_i32_0 = arith.constant 0 : i32
    %c0_i32_1 = arith.constant 0 : i32
    return %c0_i32, %arg0, %c0_i32_0 : i32, i32, i32
  }
  func.func @transform_1(%arg0: i32) -> (i32, i32, i32) {
    %c0_i32 = arith.constant 0 : i32
    %c0_i32_0 = arith.constant 0 : i32
    %c0_i32_1 = arith.constant 0 : i32
    %c0_i32_2 = arith.constant 0 : i32
    return %c0_i32, %c0_i32_0, %c0_i32_1 : i32, i32, i32
  }
  func.func @transform_2(%arg0: i32) -> (i32, i32, i32) {
    %c0_i32 = arith.constant 0 : i32
    %c0_i32_0 = arith.constant 0 : i32
    %c0_i32_1 = arith.constant 0 : i32
    %c0_i32_2 = arith.constant 0 : i32
    return %c0_i32, %c0_i32_0, %c0_i32_1 : i32, i32, i32
  }
  func.func @transform_3(%arg0: i32) -> (i32, i32, i32) {
    %c0_i32 = arith.constant 0 : i32
    %c0_i32_0 = arith.constant 0 : i32
    %c0_i32_1 = arith.constant 0 : i32
    %c0_i32_2 = arith.constant 0 : i32
    return %c0_i32, %c0_i32_0, %c0_i32_1 : i32, i32, i32
  }
  func.func @transform_4(%arg0: i32) -> (i32, i32) {
    %c0_i32 = arith.constant 0 : i32
    %c0_i32_0 = arith.constant 0 : i32
    %c0_i32_1 = arith.constant 0 : i32
    return %c0_i32, %c0_i32_0 : i32, i32
  }
  func.func @transform_5(%arg0: i32) -> (i32, i32, i32) {
    %c0_i32 = arith.constant 0 : i32
    %c0_i32_0 = arith.constant 0 : i32
    %c0_i32_1 = arith.constant 0 : i32
    %c0_i32_2 = arith.constant 0 : i32
    return %c0_i32, %c0_i32_0, %c0_i32_1 : i32, i32, i32
  }
  func.func @transform_6(%arg0: i32) -> (i32, i32, i32) {
    %c0_i32 = arith.constant 0 : i32
    %c0_i32_0 = arith.constant 0 : i32
    %c0_i32_1 = arith.constant 0 : i32
    %c0_i32_2 = arith.constant 0 : i32
    return %c0_i32, %c0_i32_0, %c0_i32_1 : i32, i32, i32
  }
  func.func @transform_7(%arg0: i32) -> (i32, i32, i32) {
    %c0_i32 = arith.constant 0 : i32
    %c0_i32_0 = arith.constant 0 : i32
    %c0_i32_1 = arith.constant 0 : i32
    %c0_i32_2 = arith.constant 0 : i32
    return %c0_i32, %c0_i32_0, %c0_i32_1 : i32, i32, i32
  }
  func.func @transform_8(%arg0: i32) -> (i32, i32) {
    %c0_i32 = arith.constant 0 : i32
    %c0_i32_0 = arith.constant 0 : i32
    %c0_i32_1 = arith.constant 0 : i32
    return %c0_i32, %c0_i32_0 : i32, i32
  }
  func.func @transform_9(%arg0: i32) -> (i32, i32, i32) {
    %c0_i32 = arith.constant 0 : i32
    %c0_i32_0 = arith.constant 0 : i32
    %c0_i32_1 = arith.constant 0 : i32
    %c0_i32_2 = arith.constant 0 : i32
    return %c0_i32, %c0_i32_0, %c0_i32_1 : i32, i32, i32
  }
  func.func @transform_10(%arg0: i32) -> (i32, i32, i32) {
    %c0_i32 = arith.constant 0 : i32
    %c0_i32_0 = arith.constant 0 : i32
    %c0_i32_1 = arith.constant 0 : i32
    %c0_i32_2 = arith.constant 0 : i32
    return %c0_i32, %c0_i32_0, %c0_i32_1 : i32, i32, i32
  }
  func.func @transform_11(%arg0: i32) -> (i32, i32, i32) {
    %c0_i32 = arith.constant 0 : i32
    %c0_i32_0 = arith.constant 0 : i32
    %c0_i32_1 = arith.constant 0 : i32
    %c0_i32_2 = arith.constant 0 : i32
    return %c0_i32, %c0_i32_0, %c0_i32_1 : i32, i32, i32
  }
  func.func @transform_12(%arg0: i32) -> (i32, i32) {
    %c0_i32 = arith.constant 0 : i32
    %c0_i32_0 = arith.constant 0 : i32
    %c0_i32_1 = arith.constant 0 : i32
    return %c0_i32, %c0_i32_0 : i32, i32
  }
  func.func @transform_13(%arg0: i32) -> (i32, i32) {
    %c0_i32 = arith.constant 0 : i32
    %c0_i32_0 = arith.constant 0 : i32
    %c0_i32_1 = arith.constant 0 : i32
    return %c0_i32, %c0_i32_0 : i32, i32
  }
  func.func @transform_14(%arg0: i32) -> (i32, i32) {
    %c0_i32 = arith.constant 0 : i32
    %c0_i32_0 = arith.constant 0 : i32
    %c0_i32_1 = arith.constant 0 : i32
    return %c0_i32, %c0_i32_0 : i32, i32
  }
  func.func @transform_15(%arg0: i32) -> (i32, i32) {
    %c0_i32 = arith.constant 0 : i32
    %c0_i32_0 = arith.constant 0 : i32
    %c0_i32_1 = arith.constant 0 : i32
    return %c0_i32, %c0_i32_0 : i32, i32
  }
  func.func @transform_16(%arg0: i32) -> (i32, i32) {
    %c0_i32 = arith.constant 0 : i32
    %c0_i32_0 = arith.constant 0 : i32
    %c0_i32_1 = arith.constant 0 : i32
    return %c0_i32, %c0_i32_0 : i32, i32
  }
  func.func @transform_17(%arg0: i32) -> (i32, i32) {
    %c0_i32 = arith.constant 0 : i32
    %c0_i32_0 = arith.constant 0 : i32
    %c0_i32_1 = arith.constant 0 : i32
    return %c0_i32, %c0_i32_0 : i32, i32
  }
  func.func @transform_18(%arg0: i32) -> (i32, i32) {
    %c0_i32 = arith.constant 0 : i32
    %c0_i32_0 = arith.constant 0 : i32
    %c0_i32_1 = arith.constant 0 : i32
    return %c0_i32, %c0_i32_0 : i32, i32
  }
  func.func @transform_19(%arg0: i32) -> (i32, i32) {
    %c0_i32 = arith.constant 0 : i32
    %c0_i32_0 = arith.constant 0 : i32
    %c0_i32_1 = arith.constant 0 : i32
    return %c0_i32, %c0_i32_0 : i32, i32
  }
  func.func @transform_20(%arg0: i32) -> (i32, i32) {
    %c0_i32 = arith.constant 0 : i32
    %c0_i32_0 = arith.constant 0 : i32
    %c0_i32_1 = arith.constant 0 : i32
    return %c0_i32, %c0_i32_0 : i32, i32
  }
  func.func @transform_21(%arg0: i32) -> (i32, i32) {
    %c0_i32 = arith.constant 0 : i32
    %c0_i32_0 = arith.constant 0 : i32
    %c0_i32_1 = arith.constant 0 : i32
    return %c0_i32, %c0_i32_0 : i32, i32
  }
  func.func @transform_22(%arg0: i32) -> (i32, i32) {
    %c0_i32 = arith.constant 0 : i32
    %c0_i32_0 = arith.constant 0 : i32
    %c0_i32_1 = arith.constant 0 : i32
    return %c0_i32, %c0_i32_0 : i32, i32
  }
  func.func @transform_23(%arg0: i32) -> (i32, i32) {
    %c0_i32 = arith.constant 0 : i32
    %c0_i32_0 = arith.constant 0 : i32
    %c0_i32_1 = arith.constant 0 : i32
    return %c0_i32, %c0_i32_0 : i32, i32
  }
  func.func @transform_24(%arg0: i32) -> (i32, i32) {
    %c0_i32 = arith.constant 0 : i32
    %c0_i32_0 = arith.constant 0 : i32
    %c0_i32_1 = arith.constant 0 : i32
    return %c0_i32, %c0_i32_0 : i32, i32
  }
  func.func @transform_25(%arg0: i32) -> (i32, i32) {
    %c0_i32 = arith.constant 0 : i32
    %c0_i32_0 = arith.constant 0 : i32
    %c0_i32_1 = arith.constant 0 : i32
    return %c0_i32, %c0_i32_0 : i32, i32
  }
  func.func @transform_26(%arg0: i32) -> (i32, i32) {
    %c0_i32 = arith.constant 0 : i32
    %c0_i32_0 = arith.constant 0 : i32
    return %arg0, %c0_i32 : i32, i32
  }
}

</mosaic_0001>

<bundles_post_ra>
// kernel: tpu_custom_call.1
= control target key start
LH: loop header
LB: loop body
LE: loop exit
PB: predicated region body
PF: predicated region fallthrough
CT: control target
= control target key end

     0   :  { %s7089_s0 = inlined_call_operand.hbm [shape: f32[8,16,32], index: 0, kind: input, shape index: {}]   ;;  %s7090_s1 = inlined_call_operand.hbm [shape: f32[3,32,32], index: 1, kind: input, shape index: {}]   ;;  %s7091_s2 = inlined_call_operand.hbm [shape: f32[3,32,32], index: 2, kind: input, shape index: {}]   ;;  %s7092_s3 = inlined_call_operand.vmem [shape: f32[3,1,32], index: 3, kind: input, shape index: {}]   ;;  %s7093_s4 = inlined_call_operand.hbm [shape: f32[1,32], index: 4, kind: input, shape index: {}]   ;;  %s7094_s5 = inlined_call_operand.hbm [shape: f32[3,32,32], index: 5, kind: input, shape index: {}]   ;;  %s7095_s6 = inlined_call_operand.hbm [shape: f32[3,32,32], index: 6, kind: input, shape index: {}]   ;;  %s7096_s7 = inlined_call_operand.vmem [shape: f32[3,1,32], index: 7, kind: input, shape index: {}]   ;;  %s7097_s8 = inlined_call_operand.hbm [shape: f32[1,32], index: 8, kind: input, shape index: {}]   ;;  %s7098_s9 = inlined_call_operand.hbm [shape: f32[3,32,32], index: 9, kind: input, shape index: {}]   ;;  %s7099_s10 = inlined_call_operand.hbm [shape: f32[3,32,32], index: 10, kind: input, shape index: {}]   ;;  %s7100_s11 = inlined_call_operand.vmem [shape: f32[3,1,32], index: 11, kind: input, shape index: {}]   ;;  %s7101_s12 = inlined_call_operand.vmem [shape: f32[1,32], index: 12, kind: input, shape index: {}]   ;;  %s7102_s13 = inlined_call_operand.vmem [shape: f32[32,16], index: 13, kind: input, shape index: {}]   ;;  %s7103_s14 = inlined_call_operand.vmem [shape: f32[1,16], index: 14, kind: input, shape index: {}]   ;;  %s7104_s15 = inlined_call_operand.vmem [shape: f32[32,32], index: 15, kind: input, shape index: {}]   ;;  %s7105_s16 = inlined_call_operand.vmem [shape: f32[16,32], index: 16, kind: input, shape index: {}]   ;;  %s7106_s17 = inlined_call_operand.vmem [shape: f32[1,32], index: 17, kind: input, shape index: {}]   ;;  %s7107_s18 = inlined_call_operand.vmem [shape: f32[32,32], index: 18, kind: input, shape index: {}]   ;;  %s7108_s19 = inlined_call_operand.vmem [shape: f32[1,32], index: 19, kind: input, shape index: {}]   ;;  %s7109_s20 = inlined_call_operand.vmem [shape: f32[32,8], index: 20, kind: input, shape index: {}]   ;;  %s7110_s21 = inlined_call_operand.vmem [shape: f32[1,8], index: 21, kind: input, shape index: {}]   ;;  %s7111_s22 = inlined_call_operand.vmem [shape: f32[32,32], index: 22, kind: input, shape index: {}]   ;;  %s7112_s23 = inlined_call_operand.vmem [shape: f32[1,32], index: 23, kind: input, shape index: {}]   ;;  %s7113_s24 = inlined_call_operand.vmem [shape: f32[32,1], index: 24, kind: input, shape index: {}]   ;;  %s7114_s25 = inlined_call_operand.<no memory space> [shape: f32[1,1], index: 25, kind: input, shape index: {}]   ;;  %s7115_s26 = inlined_call_operand.vmem [shape: f32[16,8], index: 26, kind: output, shape index: {}]  }
   0x1   :  { %7122 = sst [smem:[#allocation24_spill]] %s7089_s0  ;;  %v31_v0 = vstv %s7114_s25 }
   0x2   :  { %7123 = sst [smem:[#allocation25_spill]] %s7090_s1  ;;  %32 = vst [vmem:[#allocation4] sm:$0x1] %v31_v0 }
   0x3   :  { %7124 = sst [smem:[#allocation26_spill]] %s7091_s2 }
   0x4   :  { %7125 = sst [smem:[#allocation27_spill]] %s7092_s3 }
   0x5   :  { %7126 = sst [smem:[#allocation28_spill]] %s7093_s4 }
   0x6   :  { %7127 = sst [smem:[#allocation29_spill]] %s7094_s5 }
   0x7   :  { %7128 = sst [smem:[#allocation30_spill]] %s7095_s6 }
   0x8   :  { %7129 = sst [smem:[#allocation31_spill]] %s7096_s7 }
   0x9   :  { %7130 = sst [smem:[#allocation32_spill]] %s7097_s8 }
   0xa   :  { %7131 = sst [smem:[#allocation33_spill]] %s7098_s9 }
   0xb   :  { %7132 = sst [smem:[#allocation34_spill]] %s7099_s10 }
   0xc   :  { %7133 = sst [smem:[#allocation35_spill]] %s7106_s17 }
   0xd   :  { %7134 = sst [smem:[#allocation36_spill]] %s7108_s19 }
   0xe   :  { %7135 = sst [smem:[#allocation37_spill]] %s7109_s20 }
   0xf   :  { %7136 = sst [smem:[#allocation38_spill]] %s7110_s21 }
  0x10   :  { %7137 = sst [smem:[#allocation39_spill]] %s7112_s23 }
  0x11   :  { %7138 = sst [smem:[#allocation40_spill]] %s7113_s24 }
  0x12   :  { %7139 = sst [smem:[#allocation41_spill]] %s7115_s26 }
  0x13   :  { %33 = vsyncpa [#allocation6], 0 }
  0x14   :  { %35 = vsyncpa [#allocation6 + $0x1], 0 }
  0x15   :  { %36 = vsyncpa [#allocation8], 0 }
  0x16   :  { %37 = vsyncpa [#allocation11], 0 }
  0x17   :  { %38 = vsyncpa [#allocation14], 0 }
  0x18   :  { %39 = vsyncpa [#allocation17], 0  ;;  %s5850_s7 = smov 0   ;;  %s5852_s28 = smov 0  }
  0x19   :  { %s5854_s8 = smov 0   ;;  %s5856_s4 = smov 0  }
  0x1a LB: > { %s7140_s0 = sld [smem:[#allocation25_spill]]  ;;  %s5874_s30 = sadd.s32 4294967295, %s5696_s4   ;;  %s5696_s4 = sphi %s5856_s4, %s7166_s4   ;;  %s5692_s8 = sphi %s5854_s8, %s7165_s8   ;;  %s5688_s28 = sphi %s5852_s28, %s7164_s28   ;;  %s5684_s7 = sphi %s5850_s7, %s7163_s7  }
  0x1b   : > { %p4755_p0 = scmp.ge.s32.totalorder %s5696_s4, 1  ;;  %p66_p1 = scmp.eq.s32.totalorder %s5874_s30, 0 }
  0x1c   : > { %p627_p2 = scmp.lt.s32.totalorder %s5696_s4, 3  ;;  %s5698_s5 = smov [#allocation7]  }
  0x1d   : > { %s640_s10 = sshll.u32 %s5698_s5, 4  ;;  %s7142_s27 = sld [smem:[#allocation28_spill]]  ;;  %s641_s10 = int_to_ptr.vmem [resolvable:$true] %s640_s10 }
  0x1e   : > { %p5879_p3 = pnand %p4755_p0, %p627_p2  ;;  %s7144_s26 = sld [smem:[#allocation30_spill]] }
  0x1f   : > { %s5699_s21 = smov [#allocation10]   ;;  %s7121_s23 = smov 128  }
  0x20   : > { %s638_s9 = sshll.u32 %s7140_s0, 4  ;;  %p5011_p4 = pneg %p5879_p3  ;;  %s639_s9 = int_to_ptr.hbm [resolvable:$true] %s638_s9 }
  0x21   : > { %s672_s19 = sshll.u32 %s5699_s21, 4  ;;  %s5701_s20 = smov 8   ;;  %s673_s19 = int_to_ptr.vmem [resolvable:$true] %s672_s19 }
  0x22   : > { %p5890_p5 = pnand %p5011_p4, %p66_p1  ;;  %s5702_s29 = smov [#allocation13]  }
  0x23   : > { %s670_s3 = sshll.u32 %s7142_s27, 4  ;;  %s7145_s27 = sld [smem:[#allocation33_spill]]  ;;  %s671_s3 = int_to_ptr.hbm [resolvable:$true] %s670_s3 }
  0x24   : > { %s695_s5 = sshll.u32 %s7144_s26, 4  ;;  %s697_s26 = sshll.u32 %s5702_s29, 4  ;;  %s696_s5 = int_to_ptr.hbm [resolvable:$true] %s695_s5  ;;  %s698_s26 = int_to_ptr.vmem [resolvable:$true] %s697_s26 }
  0x25   : > { %5014 = dma.hbm_to_vmem [thread:$0]  (!%p5890_p5), %s639_s9, 1536, %s641_s10, [#allocation8], %s7121_s23, %s7121_s23, %s5701_s20  }
  0x26   : > { %5020 = dma.hbm_to_vmem [thread:$0]  (!%p5890_p5), %s671_s3, 16, %s673_s19, [#allocation11]  }
  0x27   : > { %5026 = dma.hbm_to_vmem [thread:$0]  (!%p5890_p5), %s696_s5, 1536, %s698_s26, [#allocation14], %s7121_s23, %s7121_s23, %s5701_s20  }
  0x28   : > { %s5703_s21 = smov [#allocation16]   ;;  %s7146_s24 = sld [smem:[#allocation26_spill]] }
  0x29   : > { %s724_s17 = sshll.u32 %s7145_s27, 4  ;;  %s726_s9 = sshll.u32 %s5703_s21, 4  ;;  %s725_s17 = int_to_ptr.hbm [resolvable:$true] %s724_s17  ;;  %s727_s9 = int_to_ptr.vmem [resolvable:$true] %s726_s9 }
  0x2a   : > { %5032 = dma.hbm_to_vmem [thread:$0]  (!%p5890_p5), %s725_s17, 1536, %s727_s9, [#allocation17], %s7121_s23, %s7121_s23, %s5701_s20  }
  0x2b   : > { %s7147_s1 = sld [smem:[#allocation29_spill]]  ;;  %s5704_s29 = smov [#allocation9]  }
  0x2c   : > { %s654_s5 = sshll.u32 %s5704_s29, 4  ;;  %s7148_s9 = sld [smem:[#allocation32_spill]]  ;;  %s655_s5 = int_to_ptr.vmem [resolvable:$true] %s654_s5 }
  0x2d   : > { %s7149_s3 = sld [smem:[#allocation34_spill]]  ;;  %p59_p6 = scmp.ne.s32.totalorder %s5692_s8, %s5688_s28 }
  0x2e   : > { %s652_s19 = sshll.u32 %s7146_s24, 4  ;;  %s5705_s24 = smov [#allocation12]   ;;  %s653_s19 = int_to_ptr.hbm [resolvable:$true] %s652_s19 }
  0x2f   : > { %5017 = dma.hbm_to_vmem [thread:$0]  (!%p5890_p5), %s653_s19, 1536, %s655_s5, [#allocation8], %s7121_s23, %s7121_s23, %s5701_s20  }
  0x30   : > { %s683_s26 = sshll.u32 %s5705_s24, 4  ;;  %s5707_s5 = smov [#allocation18]   ;;  %s684_s26 = int_to_ptr.vmem [resolvable:$true] %s683_s26 }
  0x31   : > { %s681_s27 = sshll.u32 %s7147_s1, 4  ;;  %s5706_s1 = smov [#allocation15]   ;;  %s682_s27 = int_to_ptr.hbm [resolvable:$true] %s681_s27 }
  0x32   : > { %s713_s10 = sshll.u32 %s7148_s9, 4  ;;  %s715_s29 = sshll.u32 %s5706_s1, 4  ;;  %s714_s10 = int_to_ptr.hbm [resolvable:$true] %s713_s10  ;;  %s716_s29 = int_to_ptr.vmem [resolvable:$true] %s715_s29 }
  0x33   : > { %5023 = dma.hbm_to_vmem [thread:$0]  (!%p5890_p5), %s682_s27, 1536, %s684_s26, [#allocation11], %s7121_s23, %s7121_s23, %s5701_s20  }
  0x34   : > { %s738_s6 = sshll.u32 %s7149_s3, 4  ;;  %s740_s27 = sshll.u32 %s5707_s5, 4  ;;  %s739_s6 = int_to_ptr.hbm [resolvable:$true] %s738_s6  ;;  %s741_s27 = int_to_ptr.vmem [resolvable:$true] %s740_s27 }
  0x35   : > { %5029 = dma.hbm_to_vmem [thread:$0]  (!%p5890_p5), %s714_s10, 16, %s716_s29, [#allocation14]  }
  0x36   : > { %5035 = dma.hbm_to_vmem [thread:$0]  (!%p5890_p5), %s739_s6, 1536, %s741_s27, [#allocation17], %s7121_s23, %s7121_s23, %s5701_s20  }
  0x37   : > { %s5947_s24 = sadd.s32 1, %s5696_s4   ;;  %s52_s26 = sadd.s32 1, %s5692_s8 }
  0x38   : > { %s49_s21 = ssub.s32 %s5696_s4, %s5947_s24  ;;  %p60_p8 = scmp.eq.s32.totalorder %s5696_s4, 0 }
  0x39   : > { %p50_p7 = scmp.eq.s32.totalorder %s49_s21, 0  ;;  %p65_p9 = scmp.ne.s32.totalorder %s5688_s28, %s5684_s7 }
  0x3a   : > { %p5048_p10 = scmp.lt.s32.totalorder %s5696_s4, 2  ;;  %p61_p11 = por %p60_p8, %p59_p6 }
  0x3b   : > { %s5959_s17 = scalar_select %p50_p7, %s5692_s8, %s52_s26  }
  0x3c   : > { %p5963_p12 = por %p66_p1, %p65_p9  ;;  %s799_s9 = sand.u32 1, %s5692_s8  }
  0x3d   : > { %s4766_s10 = sshll.u32 %s5696_s4, 3  ;;  %s4765_s0 = sshll.u32 %s799_s9, 6 }
  0x3e   : > { %s7151_s6 = sld [smem:[#allocation24_spill]]  ;;  %s803_s5 = scalar_lea.vmem [#allocation5], %s4765_s0 }
  0x3f   : > { %s810_s27 = sshll.u32 %s803_s5, 4  ;;  %p5974_p13 = pnand %p5048_p10, %p61_p11  ;;  %s811_s27 = int_to_ptr.vmem [resolvable:$true] %s810_s27 }
  0x40   : > { %s800_s26 = scalar_lea.sflag [#allocation6], %s799_s9 }
  0x41   : > { %p5620_p2 = pneg %p5974_p13 }
  0x44   : > { %s807_s1 = scalar_lea.hbm %s7151_s6, %s4766_s10  ;;  %s5623_s19 = scalar_lea.hbm %s7151_s6, 128 }
  0x45   : > { %s808_s29 = sshll.u32 %s807_s1, 4  ;;  %s809_s29 = int_to_ptr.hbm [resolvable:$true] %s808_s29 }
  0x46   : > { %s5616_s21 = sshra.s32 %s809_s29, 4  ;;  %s5617_s21 = int_to_ptr.hbm [resolvable:$true] %s5616_s21 }
  0x47   : > { %s5618_s23 = scalar_lea.hbm %s5617_s21, 64  ;;  %p5624_p6 = scmp.lt.s32.totalorder %s5617_s21, %s7151_s6 }
  0x48   : > { %p5619_p0 = scmp.ne.s32.totalorder %s5617_s21, %s5618_s23  ;;  %p5625_p7 = scmp.lt.s32.totalorder %s5623_s19, %s5618_s23 }
  0x4a   : > { %p5621_p4 = pnand %p5620_p2, %p5619_p0  ;;  %p5626_p8 = por %p5625_p7, %p5624_p6 }
  0x4c   : > { %p5622_p5 = pneg %p5621_p4 }
  0x4e   : > { %p5627_p9 = pnand %p5626_p8, %p5622_p5 }
  0x50   : > { %5630 = shalt.err (!%p5627_p9)
}
  0x51   : > { %s5708_s9 = smov 256   ;;  %s7153_s1 = smov 128  }
  0x52   : > { %5039 = dma.hbm_to_vmem [thread:$0]  (!%p5974_p13), %s809_s29, 1024, %s811_s27, %s800_s26, %s5708_s9, %s7153_s1, %s5701_s20  }
  0x53   : > { %822 = sbr.rel (%p5879_p3) target bundleno = 4520 (0x11a8), region = 124  ;;  %s824_s5 = sand.u32 (!%p5879_p3), 1, %s5688_s28  }
  0x54   : > { %s4768_s10 = sshll.u32 (!%p5879_p3), %s824_s5, 6  ;;  %s825_s0 = scalar_lea.sflag (!%p5879_p3), [#allocation6], %s824_s5 }
  0x55   : > { %s5993_s3 = scalar_lea.vmem (!%p5879_p3), [#allocation5], %s4768_s10 }
  0x58   : > { %5663 = dma.done.wait (%p5963_p12), %s825_s0, 1024  }
  0x59   : > { %5665 = vsyncadd (%p5963_p12), %s825_s0, 4294966272 }
  0x5a   : > { %5667 = dma.done.wait (%p66_p1), [#allocation8], 3072  }
  0x5b   : > { %5669 = vsyncadd (%p66_p1), [#allocation8], 4294964224 }
  0x5c   : > { %5671 = dma.done.wait (%p66_p1), [#allocation11], 1552  }
  0x5d   : > { %5673 = vsyncadd (%p66_p1), [#allocation11], 4294965744 }
  0x5e   : > { %5675 = dma.done.wait (%p66_p1), [#allocation14], 1552  }
  0x5f   : > { %5677 = vsyncadd (%p66_p1), [#allocation14], 4294965744 }
  0x60   : > { %5679 = dma.done.wait (%p66_p1), [#allocation17], 3072  }
  0x61   : > { %5681 = vsyncadd (%p66_p1), [#allocation17], 4294964224  ;;  %v6015_v1 = vld [vmem:[#allocation9 + $0x18] sm:$0xff]  ;;  %v6017_v2 = vld [vmem:[#allocation9 + $0x10] sm:$0xff]  ;;  %vm957_vm0 = vcmask 261120   ;;  %v5709_v17 = vmov 0.0  }
  0x62   : > { %v952_v3 = vld [vmem:[#allocation7 + $0x18] sm:$0xff]  ;;  %1145 = vmatpush.msra.mxu3 %v6015_v1  ;;  %v951_v4 = vld [vmem:[#allocation7 + $0x10] sm:$0xff]  ;;  %v6020_v5 = vld [vmem:[#allocation9 + $0x8] sm:$0xff]  ;;  %s7154_s2 = sld [smem:[#allocation27_spill]]  ;;  %p937_p1 = scmp.lt.s32.totalorder %s5874_s30, 1 }
  0x63   : > { %994 = vmatpush.msra.mxu0 %v952_v3  ;;  %v950_v6 = vld [vmem:[#allocation7 + $0x8] sm:$0xff]  ;;  %v1027_v7 = vld [vmem:[#allocation7 + $0x38] sm:$0xff]  ;;  %v6023_v8 = vld [vmem:[#allocation9] sm:$0xff]  ;;  %s7155_s0 = sld [smem:[#allocation31_spill]] }
  0x64   : > { %1146 = vmatpush.msra.mxu3 %v6017_v2  ;;  %v949_v9 = vld [vmem:[#allocation7] sm:$0xff]  ;;  %1045 = vmatpush.msra.mxu1 %v1027_v7  ;;  %v1026_v10 = vld [vmem:[#allocation7 + $0x30] sm:$0xff]  ;;  %v6027_v12 = vld [vmem:[#allocation9 + $0x38] sm:$0xff]  ;;  %s7156_s21 = sld [smem:[#allocation40_spill]]  ;;  %s7168_s30 = smov (!%p937_p1, %s5874_s30), 1 }
  0x65   : > { %995 = vmatpush.msra.mxu0 %v951_v4  ;;  %v941_v11 = vld [vmem:[%s5993_s3] sm:$0xff]  ;;  %v1025_v13 = vld [vmem:[#allocation7 + $0x28] sm:$0xff]  ;;  %v6030_v14 = vld [vmem:[#allocation9 + $0x30] sm:$0xff]  ;;  %s7157_s9 = sld [smem:[#allocation35_spill]]  ;;  %s4777_s19 = sshll.u32 %s7168_s30, 3 }
  0x66   : > { %1147 = vmatpush.msra.mxu3 %v6020_v5  ;;  %1046 = vmatpush.msra.mxu1 %v1026_v10  ;;  %v1024_v15 = vld [vmem:[#allocation7 + $0x20] sm:$0xff]  ;;  %v1078_v16 = vld [vmem:[#allocation7 + $0x58] sm:$0xff]  ;;  %v6034_v18 = vld [vmem:[#allocation9 + $0x28] sm:$0xff]  ;;  %s7158_s25 = sld [smem:[#allocation37_spill]] }
  0x67   : > { %996 = vmatpush.msra.mxu0 %v950_v6  ;;  %v6036_v19 = vld [vmem:[#allocation9 + $0x58] sm:$0xff]  ;;  %v1077_v20 = vld [vmem:[#allocation7 + $0x50] sm:$0xff]  ;;  %v1076_v21 = vld [vmem:[#allocation7 + $0x48] sm:$0xff]  ;;  %1096 = vmatpush.msra.mxu2 %v1078_v16  ;;  %s7159_s10 = sld [smem:[#allocation39_spill]] }
  0x68   : > { %1148 = vmatpush.msra.mxu3 %v6023_v8  ;;  %1047 = vmatpush.msra.mxu1 %v1025_v13  ;;  %v6039_v22 = vld [vmem:[#allocation9 + $0x20] sm:$0xff]  ;;  %v6041_v23 = vld [vmem:[#allocation9 + $0x50] sm:$0xff]  ;;  %v6048_v25 = vld [vmem:[#allocation9 + $0x48] sm:$0xff]  ;;  %s7160_s29 = sld [smem:[#allocation36_spill]] }
  0x69   : > { %997 = vmatpush.msra.mxu0 %v949_v9  ;;  %1149 = vmatmul.f32.vlgmr.msra.gmra.mxu3 %v5709_v17  ;;  %v1075_v24 = vld [vmem:[#allocation7 + $0x40] sm:$0xff]  ;;  %v6093_v27 = vld [vmem:[%s7154_s2] ss:$0 sm:$0xff]  ;;  %v942_v41 = vld [vmem:[%s5993_s3 + $0x8] sm:$0xff]  ;;  %s7161_s26 = sld [smem:[#allocation38_spill]] }
  0x6a   : > { %4778 = vmatmul.msk.f32.vlgmr.msra.gmra.mxu0 %vm957_vm0, %v941_v11  ;;  %1170 = vmatpush.msrb.mxu3 %v6027_v12  ;;  %v6055_v26 = vld [vmem:[#allocation9 + $0x40] sm:$0xff]  ;;  %s7162_s1 = sld [smem:[#allocation41_spill]] }
  0x6b   : > { %1445 = vmatpush.msrb.mxu0 %v6036_v19  ;;  %1048 = vmatpush.msra.mxu1 %v1024_v15  ;;  %v6099_v32 = vld [vmem:[%s7154_s2 + $0x1] ss:$0 sm:$0xff]  ;;  %v6111_v52 = vld [vmem:[%s7154_s2 + $0x2] ss:$0 sm:$0xff] }
  0x6c   : > { %1171 = vmatpush.msrb.mxu3 %v6030_v14  ;;  %4787 = vmatmul.msk.f32.vlgmr.msra.gmra.mxu1 %vm957_vm0, %v941_v11  ;;  %v6106_v46 = vld [vmem:[#allocation10] ss:$0 sm:$0xff] }
  0x6d   : > { %1097 = vmatpush.msra.mxu2 %v1077_v20  ;;  %1446 = vmatpush.msrb.mxu0 %v6041_v23 }
  0x6e   : > { %1172 = vmatpush.msrb.mxu3 %v6034_v18  ;;  %1521 = vmatpush.msrb.mxu1 %v6015_v1 }
  0x6f   : > { %1098 = vmatpush.msra.mxu2 %v1076_v21  ;;  %1447 = vmatpush.msrb.mxu0 %v6048_v25 }
  0x70   : > { %1173 = vmatpush.msrb.mxu3 %v6039_v22  ;;  %1522 = vmatpush.msrb.mxu1 %v6017_v2 }
  0x71   : > { %1174 = vmatmul.f32.vlgmr.msrb.gmra.mxu3 %v5709_v17  ;;  %1099 = vmatpush.msra.mxu2 %v1075_v24  ;;  %v943_v24 = vld [vmem:[%s5993_s3 + $0x10] sm:$0xff] }
  0x72   : > { %1198 = vmatpush.msra.mxu3 %v6036_v19  ;;  %4796 = vmatmul.msk.f32.vlgmr.msra.gmra.mxu2 %vm957_vm0, %v941_v11 }
  0x73   : > { %1448 = vmatpush.msrb.mxu0 %v6055_v26  ;;  %1545 = vmatpush.msrb.mxu2 %v6027_v12 }
  0x74   : > { %1199 = vmatpush.msra.mxu3 %v6041_v23  ;;  %1523 = vmatpush.msrb.mxu1 %v6020_v5 }
  0x75   : > { %1546 = vmatpush.msrb.mxu2 %v6030_v14  ;;  %1645 = vmatpush.msra.mxu0 %v6015_v1 }
  0x76   : > { %1200 = vmatpush.msra.mxu3 %v6048_v25  ;;  %1524 = vmatpush.msrb.mxu1 %v6023_v8 }
  0x77   : > { %1547 = vmatpush.msrb.mxu2 %v6034_v18  ;;  %1646 = vmatpush.msra.mxu0 %v6017_v2 }
  0x78   : > { %1201 = vmatpush.msra.mxu3 %v6055_v26  ;;  %1669 = vmatpush.msra.mxu1 %v6027_v12 }
  0x79   : > { %1202 = vmatmul.f32.vlgmr.msra.gmra.mxu3 %v5709_v17  ;;  %1548 = vmatpush.msrb.mxu2 %v6039_v22 }
  0x7a   : > { %1273 = vmatpush.msrb.mxu3 %v6015_v1  ;;  %1647 = vmatpush.msra.mxu0 %v6020_v5 }
  0x7b   : > { %1693 = vmatpush.msra.mxu2 %v6036_v19  ;;  %1670 = vmatpush.msra.mxu1 %v6030_v14 }
  0x7c   : > { %1274 = vmatpush.msrb.mxu3 %v6017_v2  ;;  %1648 = vmatpush.msra.mxu0 %v6023_v8 }
  0x7d   : > { %1694 = vmatpush.msra.mxu2 %v6041_v23  ;;  %1671 = vmatpush.msra.mxu1 %v6034_v18 }
  0x7e   : > { %1275 = vmatpush.msrb.mxu3 %v6020_v5  ;;  %4779 = vmatmul.msk.f32.gmra.mxu0 %vm957_vm0, %v942_v41 }
  0x7f   : > { %1695 = vmatpush.msra.mxu2 %v6048_v25  ;;  %1672 = vmatpush.msra.mxu1 %v6039_v22 }
  0x80   : > { %1276 = vmatpush.msrb.mxu3 %v6023_v8  ;;  %4788 = vmatmul.msk.f32.gmra.mxu1 %vm957_vm0, %v942_v41 }
  0x81   : > { %1696 = vmatpush.msra.mxu2 %v6055_v26 }
  0x82   : > { %1297 = vmatpush.msra.mxu3 %v6027_v12  ;;  %4797 = vmatmul.msk.f32.gmra.mxu2 %vm957_vm0, %v942_v41 }
  0x84   : > { %1298 = vmatpush.msra.mxu3 %v6030_v14 }
  0x86   : > { %1299 = vmatpush.msra.mxu3 %v6034_v18  ;;  %4780 = vmatmul.msk.f32.gmra.mxu0 %vm957_vm0, %v943_v24 }
  0x88   : > { %1300 = vmatpush.msra.mxu3 %v6039_v22  ;;  %4789 = vmatmul.msk.f32.gmra.mxu1 %vm957_vm0, %v943_v24 }
  0x8a   : > { %4798 = vmatmul.msk.f32.gmra.mxu2 %vm957_vm0, %v943_v24 }
  0xe7   : > { %v999_v28 = vpop.f32.mrf.mxu0 }
  0xe8   : > { %v1000_v29 = vadd.f32 %v6093_v27, %v999_v28  ;;  %v944_v28 = vld [vmem:[%s5993_s3 + $0x18] sm:$0xff] }
  0xe9   : > { %v1050_v33 = vpop.f32.mrf.mxu1  ;;  %4781 = vmatmul.msk.f32.gmra.mxu0 %vm957_vm0, %v944_v28  ;;  %4790 = vmatmul.msk.f32.gmra.mxu1 %vm957_vm0, %v944_v28 }
  0xea   : > { %v1051_v35 = vadd.f32 %v6099_v32, %v1050_v33  ;;  %4799 = vmatmul.msk.f32.gmra.mxu2 %vm957_vm0, %v944_v28 }
  0xec   : > { %v1150_v30 = vpop.f32.mrf.mxu3 }
  0xed   : > { %v1206_v31 = vadd.f32 %v1150_v30, %v1000_v29  ;;  %v945_v29 = vld [vmem:[%s5993_s3 + $0x20] sm:$0xff]  ;;  %v946_v30 = vld [vmem:[%s5993_s3 + $0x28] sm:$0xff] }
  0xef   : > { %v4804_v34 = vmul.f32 -1.442695, %v1206_v31 }
  0xf1   : > { %5122 = vpow2.f32 %v4804_v34  ;;  %4782 = vmatmul.msk.f32.gmra.mxu0 %vm957_vm0, %v945_v29  ;;  %4791 = vmatmul.msk.f32.gmra.mxu1 %vm957_vm0, %v945_v29  ;;  %v947_v34 = vld [vmem:[%s5993_s3 + $0x30] sm:$0xff] }
  0xf2   : > { %4800 = vmatmul.msk.f32.gmra.mxu2 %vm957_vm0, %v945_v29 }
  0xf4   : > { %v1175_v36 = vpop.f32.mrf.mxu3 }
  0xf5   : > { %v1226_v37 = vadd.f32 %v1175_v36, %v1051_v35  ;;  %v1101_v53 = vpop.f32.mrf.mxu2 }
  0xf6   : > { %v1102_v60 = vadd.f32 %v6111_v52, %v1101_v53 }
  0xf7   : > { %v5123_v38 = vpop.eup %5122  ;;  %v4805_v39 = vmul.f32 -1.442695, %v1226_v37 }
  0xf8   : > { %v1210_v40 = vadd.f32 1.0, %v5123_v38 }
  0xf9   : > { %5124 = vpow2.f32 %v4805_v39  ;;  %4783 = vmatmul.msk.f32.gmra.mxu0 %vm957_vm0, %v946_v30  ;;  %4792 = vmatmul.msk.f32.gmra.mxu1 %vm957_vm0, %v946_v30 }
  0xfa   : > { %5126 = vrcp.f32 %v1210_v40  ;;  %v1222_v49 = vand.u32 2147483648, %v1210_v40  ;;  %v1220_v51 = vand.u32 2147483647, %v1210_v40  ;;  %vm1216_vm2 = vweird.f32 %v1210_v40  ;;  %4801 = vmatmul.msk.f32.gmra.mxu2 %vm957_vm0, %v946_v30 }
  0xfb   : > { %v1002_v31 = vpop.f32.mrf.mxu0 }
  0xfc   : > { %v1203_v48 = vpop.f32.mrf.mxu3  ;;  %v1223_v57 = vor.u32 1.1754944e-38, %v1222_v49  ;;  %vm1221_vm4 = vcmp.eq.f32.partialorder %v1220_v51, 8.507059e+37  ;;  %v1003_v33 = vadd.f32 %v6093_v27, %v1002_v31 }
  0xfd   : > { %v1204_v54 = vadd.f32 %v6106_v46, %v1203_v48  ;;  %v1053_v37 = vpop.f32.mrf.mxu1 }
  0xfe   : > { %v1054_v39 = vadd.f32 %v6099_v32, %v1053_v37 }
  0xff   : > { %v5125_v42 = vpop.eup %5124 }
 0x100   : > { %v5127_v43 = vpop.eup %5126  ;;  %v1230_v44 = vadd.f32 1.0, %v5125_v42 }
 0x101   : > { %v1212_v45 = vmul.f32 %v5127_v43, %v1210_v40  ;;  %vm1217_vm1 = vweird.f32 %v5127_v43  ;;  %4784 = vmatmul.msk.f32.gmra.mxu0 %vm957_vm0, %v947_v34  ;;  %4793 = vmatmul.msk.f32.gmra.mxu1 %vm957_vm0, %v947_v34  ;;  %v948_v40 = vld [vmem:[%s5993_s3 + $0x38] sm:$0xff] }
 0x102   : > { %5128 = vrcp.f32 %v1230_v44  ;;  %vm1218_vm3 = vmor %vm1216_vm2, %vm1217_vm1  ;;  %v1242_v0 = vand.u32 2147483648, %v1230_v44  ;;  %v1240_v4 = vand.u32 2147483647, %v1230_v44  ;;  %vm1236_vm6 = vweird.f32 %v1230_v44  ;;  %4802 = vmatmul.msk.f32.gmra.mxu2 %vm957_vm0, %v947_v34 }
 0x103   : > { %v1213_v47 = vsub.f32 1.0, %v1212_v45 }
 0x104   : > { %v1243_v9 = vor.u32 1.1754944e-38, %v1242_v0  ;;  %vm1241_vm8 = vcmp.eq.f32.partialorder %v1240_v4, 8.507059e+37 }
 0x105   : > { %v1214_v50 = vmul.f32 %v5127_v43, %v1213_v47 }
 0x107   : > { %v1215_v55 = vadd.f32 %v5127_v43, %v1214_v50 }
 0x108   : > { %v5129_v56 = vpop.eup %5128 }
 0x109   : > { %v1232_v58 = vmul.f32 %v5129_v56, %v1230_v44  ;;  %v1219_v59 = vsel %vm1218_vm3, %v5127_v43, %v1215_v55  ;;  %vm1237_vm5 = vweird.f32 %v5129_v56  ;;  %4785 = vmatmul.msk.f32.gmra.mxu0 %vm957_vm0, %v948_v40  ;;  %4794 = vmatmul.msk.f32.gmra.mxu1 %vm957_vm0, %v948_v40 }
 0x10a   : > { %v1224_v61 = vsel %vm1221_vm4, %v1223_v57, %v1219_v59  ;;  %vm1238_vm7 = vmor %vm1236_vm6, %vm1237_vm5  ;;  %4803 = vmatmul.msk.f32.gmra.mxu2 %vm957_vm0, %v948_v40 }
 0x10b   : > { %v1233_v62 = vsub.f32 1.0, %v1232_v58  ;;  %v1246_v63 = vmul.f32 %v1224_v61, %v1204_v54 }
 0x10d   : > { %v1234_v3 = vmul.f32 %v5129_v56, %v1233_v62  ;;  %v1247_v6 = vadd.f32 %v1246_v63, %v1102_v60 }
 0x10f   : > { %v1235_v7 = vadd.f32 %v5129_v56, %v1234_v3  ;;  %5130 = vtanh.f32 %v1247_v6 }
 0x111   : > { %v1239_v10 = vsel %vm1238_vm7, %v5129_v56, %v1235_v7  ;;  %v1104_v56 = vpop.f32.mrf.mxu2 }
 0x112   : > { %v1244_v11 = vsel %vm1241_vm8, %v1243_v9, %v1239_v10  ;;  %v1105_v61 = vadd.f32 %v6111_v52, %v1104_v56 }
 0x113   : > { %v1249_v13 = vsub.f32 1.0, %v1244_v11  ;;  %v1251_v20 = vmul.f32 0.0, %v1244_v11 }
 0x115   : > { %v5131_v15 = vpop.eup %5130 }
 0x116   : > { %v1250_v16 = vmul.f32 %v5131_v15, %v1249_v13 }
 0x118   : > { %v6115_v21 = vadd.f32 %v1251_v20, %v1250_v16 }
 0x11a   : > { %1253 = vst.msk [vmem:[#allocation2] sm:$0xff] %vm957_vm0, %v6115_v21  ;;  %4806 = vmatmul.msk.f32.vlgmr.msrb.gmra.mxu3 %vm957_vm0, %v6115_v21 }
 0x11b   : > { %1321 = vmatpush.msrb.mxu3 %v6036_v19 }
 0x11d   : > { %1322 = vmatpush.msrb.mxu3 %v6041_v23 }
 0x11f   : > { %1323 = vmatpush.msrb.mxu3 %v6048_v25 }
 0x121   : > { %1324 = vmatpush.msrb.mxu3 %v6055_v26 }
 0x122   : > { %4807 = vmatmul.msk.f32.vlgmr.msra.gmra.mxu3 %vm957_vm0, %v6115_v21 }
 0x123   : > { %1397 = vmatpush.msra.mxu3 %v6015_v1 }
 0x125   : > { %1398 = vmatpush.msra.mxu3 %v6017_v2 }
 0x127   : > { %1399 = vmatpush.msra.mxu3 %v6020_v5 }
 0x129   : > { %1400 = vmatpush.msra.mxu3 %v6023_v8 }
 0x12a   : > { %4808 = vmatmul.msk.f32.vlgmr.msrb.gmra.mxu3 %vm957_vm0, %v6115_v21 }
 0x12b   : > { %1421 = vmatpush.msrb.mxu3 %v6027_v12 }
 0x12d   : > { %1422 = vmatpush.msrb.mxu3 %v6030_v14 }
 0x12f   : > { %1423 = vmatpush.msrb.mxu3 %v6034_v18 }
 0x131   : > { %1424 = vmatpush.msrb.mxu3 %v6039_v22 }
 0x19d   : > { %v1278_v35 = vpop.f32.mrf.mxu3 }
 0x19e   : > { %v1329_v36 = vadd.f32 %v1278_v35, %v1003_v33  ;;  %v1056_v35 = vpop.f32.mrf.mxu1 }
 0x1a0   : > { %v4809_v38 = vmul.f32 -1.442695, %v1329_v36 }
 0x1a2   : > { %5132 = vpow2.f32 %v4809_v38 }
 0x1a5   : > { %v1302_v41 = vpop.f32.mrf.mxu3 }
 0x1a6   : > { %v1349_v42 = vadd.f32 %v1302_v41, %v1054_v39 }
 0x1a8   : > { %v5133_v43 = vpop.eup %5132  ;;  %v4810_v44 = vmul.f32 -1.442695, %v1349_v42 }
 0x1a9   : > { %v1333_v45 = vadd.f32 1.0, %v5133_v43 }
 0x1aa   : > { %5134 = vpow2.f32 %v4810_v44 }
 0x1ab   : > { %5136 = vrcp.f32 %v1333_v45  ;;  %v1345_v53 = vand.u32 2147483648, %v1333_v45  ;;  %v1343_v55 = vand.u32 2147483647, %v1333_v45  ;;  %vm1339_vm10 = vweird.f32 %v1333_v45 }
 0x1ad   : > { %v1326_v57 = vpop.f32.mrf.mxu3  ;;  %v1346_v60 = vor.u32 1.1754944e-38, %v1345_v53  ;;  %vm1344_vm12 = vcmp.eq.f32.partialorder %v1343_v55, 8.507059e+37 }
 0x1ae   : > { %v1327_v63 = vadd.f32 %v6106_v46, %v1326_v57 }
 0x1b0   : > { %v5135_v47 = vpop.eup %5134 }
 0x1b1   : > { %v5137_v48 = vpop.eup %5136  ;;  %v1353_v49 = vadd.f32 1.0, %v5135_v47 }
 0x1b2   : > { %v1335_v50 = vmul.f32 %v5137_v48, %v1333_v45  ;;  %vm1340_vm9 = vweird.f32 %v5137_v48 }
 0x1b3   : > { %5138 = vrcp.f32 %v1353_v49  ;;  %vm1341_vm11 = vmor %vm1339_vm10, %vm1340_vm9  ;;  %v1365_v7 = vand.u32 2147483648, %v1353_v49  ;;  %v1363_v10 = vand.u32 2147483647, %v1353_v49  ;;  %vm1359_vm14 = vweird.f32 %v1353_v49 }
 0x1b4   : > { %v1336_v51 = vsub.f32 1.0, %v1335_v50 }
 0x1b5   : > { %v1366_v15 = vor.u32 1.1754944e-38, %v1365_v7  ;;  %vm1364_vm1 = vcmp.eq.f32.partialorder %v1363_v10, 8.507059e+37 }
 0x1b6   : > { %v1337_v54 = vmul.f32 %v5137_v48, %v1336_v51  ;;  %v1107_v51 = vpop.f32.mrf.mxu2 }
 0x1b8   : > { %v1338_v58 = vadd.f32 %v5137_v48, %v1337_v54 }
 0x1b9   : > { %v5139_v59 = vpop.eup %5138 }
 0x1ba   : > { %v1355_v62 = vmul.f32 %v5139_v59, %v1353_v49  ;;  %v1342_v0 = vsel %vm1341_vm11, %v5137_v48, %v1338_v58  ;;  %vm1360_vm13 = vweird.f32 %v5139_v59  ;;  %v1108_v58 = vadd.f32 %v6111_v52, %v1107_v51 }
 0x1bb   : > { %v1347_v3 = vsel %vm1344_vm12, %v1346_v60, %v1342_v0  ;;  %vm1361_vm15 = vmor %vm1359_vm14, %vm1360_vm13 }
 0x1bc   : > { %v1356_v4 = vsub.f32 1.0, %v1355_v62  ;;  %v1369_v6 = vmul.f32 %v1347_v3, %v1327_v63 }
 0x1be   : > { %v1357_v9 = vmul.f32 %v5139_v59, %v1356_v4  ;;  %v1370_v11 = vadd.f32 %v1369_v6, %v1105_v61 }
 0x1c0   : > { %v1358_v13 = vadd.f32 %v5139_v59, %v1357_v9  ;;  %5140 = vtanh.f32 %v1370_v11 }
 0x1c2   : > { %v1362_v16 = vsel %vm1361_vm15, %v5139_v59, %v1358_v13 }
 0x1c3   : > { %v1367_v20 = vsel %vm1364_vm1, %v1366_v15, %v1362_v16 }
 0x1c4   : > { %v1372_v24 = vsub.f32 1.0, %v1367_v20  ;;  %v1374_v30 = vmul.f32 %v1367_v20, %v6115_v21 }
 0x1c6   : > { %v5141_v28 = vpop.eup %5140 }
 0x1c7   : > { %v1373_v29 = vmul.f32 %v5141_v28, %v1372_v24  ;;  %v1059_v24 = vpop.f32.mrf.mxu1  ;;  %v1110_v28 = vpop.f32.mrf.mxu2 }
 0x1c9   : > { %v6166_v31 = vadd.f32 %v1374_v30, %v1373_v29 }
 0x1cb   : > { %1377 = vst.msk [vmem:[#allocation2 + $0x8] sm:$0xff] %vm957_vm0, %v6166_v31  ;;  %4811 = vmatmul.msk.f32.vlgmr.msra.gmra.mxu3 %vm957_vm0, %v6166_v31  ;;  %4813 = vmatmul.msk.f32.vlgmr.msrb.gmra.mxu0 %vm957_vm0, %v6166_v31 }
 0x1cc   : > { %1569 = vmatpush.msra.mxu3 %v6036_v19  ;;  %1793 = vmatpush.msrb.mxu0 %v6027_v12  ;;  %v1005_v12 = vpop.f32.mrf.mxu0 }
 0x1ce   : > { %1570 = vmatpush.msra.mxu3 %v6041_v23  ;;  %1794 = vmatpush.msrb.mxu0 %v6030_v14 }
 0x1cf   : > { %v6217_v29 = vpop.f32.mrf.mxu1  ;;  %v6219_v30 = vpop.f32.mrf.mxu2 }
 0x1d0   : > { %1571 = vmatpush.msra.mxu3 %v6048_v25  ;;  %1795 = vmatpush.msrb.mxu0 %v6034_v18 }
 0x1d2   : > { %1572 = vmatpush.msra.mxu3 %v6055_v26  ;;  %1796 = vmatpush.msrb.mxu0 %v6039_v22  ;;  %v1006_v22 = vadd.f32 %v6093_v27, %v1005_v12 }
 0x1d3   : > { %4812 = vmatmul.msk.f32.vlgmr.msrb.gmra.mxu3 %vm957_vm0, %v6166_v31 }
 0x1d4   : > { %1769 = vmatpush.msrb.mxu3 %v6015_v1  ;;  %v6188_v14 = vpop.f32.mrf.mxu0 }
 0x1d6   : > { %1770 = vmatpush.msrb.mxu3 %v6017_v2  ;;  %v1057_v2 = vadd.f32 %v6099_v32, %v1056_v35 }
 0x1d7   : > { %v6223_v12 = vpop.f32.mrf.mxu2 }
 0x1d8   : > { %1771 = vmatpush.msrb.mxu3 %v6020_v5 }
 0x1da   : > { %1772 = vmatpush.msrb.mxu3 %v6023_v8 }
 0x1dc   : > { %v6190_v21 = vpop.f32.mrf.mxu0 }
 0x1e4   : > { %v6192_v18 = vpop.f32.mrf.mxu0 }
 0x1ec   : > { %v6195_v1 = vpop.f32.mrf.mxu0 }
 0x1f4   : > { %v6198_v40 = vpop.f32.mrf.mxu0 }
 0x248   : > { %v1450_v48 = vpop.f32.mrf.mxu0 }
 0x249   : > { %v1451_v55 = vadd.f32 %v6106_v46, %v1450_v48 }
 0x24e   : > { %v1402_v33 = vpop.f32.mrf.mxu3 }
 0x24f   : > { %v1453_v34 = vadd.f32 %v1402_v33, %v1006_v22  ;;  %v6227_v33 = vpop.f32.mrf.mxu2 }
 0x251   : > { %v4814_v36 = vmul.f32 -1.442695, %v1453_v34 }
 0x253   : > { %5142 = vpow2.f32 %v4814_v36  ;;  %v1060_v36 = vadd.f32 %v6099_v32, %v1059_v24 }
 0x256   : > { %v1426_v5 = vpop.f32.mrf.mxu3 }
 0x257   : > { %v1473_v8 = vadd.f32 %v1426_v5, %v1057_v2 }
 0x259   : > { %v5143_v37 = vpop.eup %5142  ;;  %v4815_v38 = vmul.f32 -1.442695, %v1473_v8 }
 0x25a   : > { %v1457_v39 = vadd.f32 1.0, %v5143_v37 }
 0x25b   : > { %5144 = vpow2.f32 %v4815_v38 }
 0x25c   : > { %5146 = vrcp.f32 %v1457_v39  ;;  %v1469_v47 = vand.u32 2147483648, %v1457_v39  ;;  %v1467_v50 = vand.u32 2147483647, %v1457_v39  ;;  %vm1463_vm3 = vweird.f32 %v1457_v39 }
 0x25e   : > { %v1470_v56 = vor.u32 1.1754944e-38, %v1469_v47  ;;  %vm1468_vm5 = vcmp.eq.f32.partialorder %v1467_v50, 8.507059e+37 }
 0x261   : > { %v5145_v41 = vpop.eup %5144 }
 0x262   : > { %v5147_v42 = vpop.eup %5146  ;;  %v1477_v43 = vadd.f32 1.0, %v5145_v41 }
 0x263   : > { %v1459_v44 = vmul.f32 %v5147_v42, %v1457_v39  ;;  %vm1464_vm2 = vweird.f32 %v5147_v42 }
 0x264   : > { %5148 = vrcp.f32 %v1477_v43  ;;  %vm1465_vm4 = vmor %vm1463_vm3, %vm1464_vm2  ;;  %v1489_v63 = vand.u32 2147483648, %v1477_v43  ;;  %v1487_v3 = vand.u32 2147483647, %v1477_v43  ;;  %vm1483_vm7 = vweird.f32 %v1477_v43 }
 0x265   : > { %v1460_v45 = vsub.f32 1.0, %v1459_v44 }
 0x266   : > { %v1490_v7 = vor.u32 1.1754944e-38, %v1489_v63  ;;  %vm1488_vm9 = vcmp.eq.f32.partialorder %v1487_v3, 8.507059e+37 }
 0x267   : > { %v1461_v49 = vmul.f32 %v5147_v42, %v1460_v45 }
 0x269   : > { %v1462_v53 = vadd.f32 %v5147_v42, %v1461_v49 }
 0x26a   : > { %v5149_v54 = vpop.eup %5148 }
 0x26b   : > { %v1479_v57 = vmul.f32 %v5149_v54, %v1477_v43  ;;  %v1466_v59 = vsel %vm1465_vm4, %v5147_v42, %v1462_v53  ;;  %vm1484_vm6 = vweird.f32 %v5149_v54 }
 0x26c   : > { %v1471_v60 = vsel %vm1468_vm5, %v1470_v56, %v1466_v59  ;;  %vm1485_vm8 = vmor %vm1483_vm7, %vm1484_vm6 }
 0x26d   : > { %v1480_v61 = vsub.f32 1.0, %v1479_v57  ;;  %v1493_v62 = vmul.f32 %v1471_v60, %v1451_v55  ;;  %v1111_v57 = vadd.f32 %v6111_v52, %v1110_v28 }
 0x26f   : > { %v1481_v0 = vmul.f32 %v5149_v54, %v1480_v61  ;;  %v1494_v4 = vadd.f32 %v1493_v62, %v1108_v58 }
 0x271   : > { %v1482_v6 = vadd.f32 %v5149_v54, %v1481_v0  ;;  %5150 = vtanh.f32 %v1494_v4 }
 0x273   : > { %v1486_v9 = vsel %vm1485_vm8, %v5149_v54, %v1482_v6 }
 0x274   : > { %v1491_v10 = vsel %vm1488_vm9, %v1490_v7, %v1486_v9 }
 0x275   : > { %v1496_v11 = vsub.f32 1.0, %v1491_v10  ;;  %v1498_v16 = vmul.f32 %v1491_v10, %v6166_v31  ;;  %v6221_v31 = vpop.f32.mrf.mxu1 }
 0x277   : > { %v5151_v13 = vpop.eup %5150 }
 0x278   : > { %v1497_v15 = vmul.f32 %v5151_v13, %v1496_v11 }
 0x27a   : > { %v6203_v20 = vadd.f32 %v1498_v16, %v1497_v15  ;;  %v1012_v15 = vadd.f32 %v6093_v27, %v6190_v21  ;;  %v1063_v16 = vadd.f32 %v6099_v32, %v6217_v29 }
 0x27c   : > { %1501 = vst.msk [vmem:[#allocation2 + $0x10] sm:$0xff] %vm957_vm0, %v6203_v20  ;;  %4816 = vmatmul.msk.f32.vlgmr.msrb.gmra.mxu1 %vm957_vm0, %v6203_v20  ;;  %4817 = vmatmul.msk.f32.vlgmr.msrb.gmra.mxu2 %vm957_vm0, %v6203_v20 }
 0x27d   : > { %4818 = vmatmul.msk.f32.vlgmr.msra.gmra.mxu3 %vm957_vm0, %v6203_v20  ;;  %1817 = vmatpush.msrb.mxu1 %v6036_v19  ;;  %v6225_v22 = vpop.f32.mrf.mxu1 }
 0x27f   : > { %1818 = vmatpush.msrb.mxu1 %v6041_v23  ;;  %v6231_v23 = vpop.f32.mrf.mxu2 }
 0x281   : > { %1819 = vmatpush.msrb.mxu1 %v6048_v25  ;;  %v1009_v25 = vadd.f32 %v6093_v27, %v6188_v14 }
 0x283   : > { %1820 = vmatpush.msrb.mxu1 %v6055_v26 }
 0x285   : > { %v6229_v19 = vpop.f32.mrf.mxu1 }
 0x2f9   : > { %v1526_v26 = vpop.f32.mrf.mxu1 }
 0x2fa   : > { %v1577_v34 = vadd.f32 %v1526_v26, %v1009_v25 }
 0x2fc   : > { %v4819_v35 = vmul.f32 -1.442695, %v1577_v34 }
 0x2fe   : > { %5152 = vpow2.f32 %v4819_v35 }
 0x2ff   : > { %v1550_v2 = vpop.f32.mrf.mxu2 }
 0x300   : > { %v1597_v5 = vadd.f32 %v1550_v2, %v1060_v36  ;;  %v1574_v49 = vpop.f32.mrf.mxu3 }
 0x301   : > { %v1575_v55 = vadd.f32 %v6106_v46, %v1574_v49 }
 0x302   : > { %v4820_v8 = vmul.f32 -1.442695, %v1597_v5 }
 0x304   : > { %v5153_v37 = vpop.eup %5152  ;;  %5154 = vpow2.f32 %v4820_v8 }
 0x305   : > { %v1581_v38 = vadd.f32 1.0, %v5153_v37 }
 0x307   : > { %5156 = vrcp.f32 %v1581_v38  ;;  %v1593_v14 = vand.u32 2147483648, %v1581_v38  ;;  %v1591_v47 = vand.u32 2147483647, %v1581_v38  ;;  %vm1587_vm11 = vweird.f32 %v1581_v38 }
 0x309   : > { %v1594_v53 = vor.u32 1.1754944e-38, %v1593_v14  ;;  %vm1592_vm13 = vcmp.eq.f32.partialorder %v1591_v47, 8.507059e+37 }
 0x30a   : > { %v5155_v39 = vpop.eup %5154 }
 0x30b   : > { %v1601_v41 = vadd.f32 1.0, %v5155_v39 }
 0x30d   : > { %v5157_v42 = vpop.eup %5156  ;;  %5158 = vrcp.f32 %v1601_v41  ;;  %v1613_v60 = vand.u32 2147483648, %v1601_v41  ;;  %v1611_v62 = vand.u32 2147483647, %v1601_v41  ;;  %vm1607_vm15 = vweird.f32 %v1601_v41 }
 0x30e   : > { %v1583_v43 = vmul.f32 %v5157_v42, %v1581_v38  ;;  %vm1588_vm10 = vweird.f32 %v5157_v42 }
 0x30f   : > { %vm1589_vm12 = vmor %vm1587_vm11, %vm1588_vm10  ;;  %v1614_v3 = vor.u32 1.1754944e-38, %v1613_v60  ;;  %vm1612_vm2 = vcmp.eq.f32.partialorder %v1611_v62, 8.507059e+37 }
 0x310   : > { %v1584_v44 = vsub.f32 1.0, %v1583_v43 }
 0x312   : > { %v1585_v45 = vmul.f32 %v5157_v42, %v1584_v44 }
 0x313   : > { %v5159_v48 = vpop.eup %5158 }
 0x314   : > { %v1603_v50 = vmul.f32 %v5159_v48, %v1601_v41  ;;  %v1586_v51 = vadd.f32 %v5157_v42, %v1585_v45  ;;  %vm1608_vm14 = vweird.f32 %v5159_v48 }
 0x315   : > { %vm1609_vm1 = vmor %vm1607_vm15, %vm1608_vm14 }
 0x316   : > { %v1604_v54 = vsub.f32 1.0, %v1603_v50  ;;  %v1590_v56 = vsel %vm1589_vm12, %v5157_v42, %v1586_v51 }
 0x317   : > { %v1595_v58 = vsel %vm1592_vm13, %v1594_v53, %v1590_v56  ;;  %v1114_v53 = vadd.f32 %v6111_v52, %v6219_v30  ;;  %v1066_v30 = vadd.f32 %v6099_v32, %v6221_v31  ;;  %v1902_v31 = vld [vmem:[#allocation9 + $0x28] sm:$0xff] }
 0x318   : > { %v1605_v59 = vmul.f32 %v5159_v48, %v1604_v54  ;;  %v1617_v61 = vmul.f32 %v1595_v58, %v1575_v55 }
 0x31a   : > { %v1606_v63 = vadd.f32 %v5159_v48, %v1605_v59  ;;  %v1618_v0 = vadd.f32 %v1617_v61, %v1111_v57 }
 0x31c   : > { %v1610_v4 = vsel %vm1609_vm1, %v5159_v48, %v1606_v63  ;;  %5160 = vtanh.f32 %v1618_v0 }
 0x31d   : > { %v1615_v6 = vsel %vm1612_vm2, %v1614_v3, %v1610_v4 }
 0x31e   : > { %v1620_v7 = vsub.f32 1.0, %v1615_v6  ;;  %v1622_v11 = vmul.f32 %v1615_v6, %v6203_v20 }
 0x322   : > { %v5161_v9 = vpop.eup %5160 }
 0x323   : > { %v1621_v10 = vmul.f32 %v5161_v9, %v1620_v7  ;;  %v1015_v9 = vadd.f32 %v6093_v27, %v6192_v18  ;;  %v1874_v18 = vld [vmem:[#allocation9] sm:$0xff] }
 0x325   : > { %v1623_v13 = vadd.f32 %v1622_v11, %v1621_v10  ;;  %v1877_v10 = vld [vmem:[#allocation9 + $0x18] sm:$0xff] }
 0x326   : > { %v1904_v11 = vld [vmem:[#allocation9 + $0x38] sm:$0xff]  ;;  %1893 = vmatpush.msrb.mxu2 %v1877_v10 }
 0x327   : > { %1625 = vst.msk [vmem:[#allocation2 + $0x18] sm:$0xff] %vm957_vm0, %v1623_v13  ;;  %4821 = vmatmul.msk.f32.vlgmr.msra.gmra.mxu0 %vm957_vm0, %v1623_v13  ;;  %4822 = vmatmul.msk.f32.vlgmr.msra.gmra.mxu1 %vm957_vm0, %v1623_v13 }
 0x328   : > { %4823 = vmatmul.msk.f32.vlgmr.msra.gmra.mxu2 %vm957_vm0, %v1623_v13  ;;  %1917 = vmatpush.msra.mxu3 %v1904_v11 }
 0x329   : > { %2017 = vmatpush.msra.mxu1 %v1877_v10 }
 0x3a4   : > { %v1650_v24 = vpop.f32.mrf.mxu0  ;;  %v1674_v28 = vpop.f32.mrf.mxu1 }
 0x3a5   : > { %v1701_v25 = vadd.f32 %v1650_v24, %v1012_v15  ;;  %v1721_v26 = vadd.f32 %v1674_v28, %v1063_v16  ;;  %v1876_v16 = vld [vmem:[#allocation9 + $0x10] sm:$0xff] }
 0x3a6   : > { %v1903_v24 = vld [vmem:[#allocation9 + $0x30] sm:$0xff]  ;;  %1894 = vmatpush.msrb.mxu2 %v1876_v16  ;;  %2018 = vmatpush.msra.mxu1 %v1876_v16  ;;  %v1018_v16 = vadd.f32 %v6093_v27, %v6195_v1  ;;  %v2207_v27 = vld [vmem:[#allocation12 + $0x38] sm:$0xff] }
 0x3a7   : > { %v4824_v20 = vmul.f32 -1.442695, %v1701_v25  ;;  %v4825_v34 = vmul.f32 -1.442695, %v1721_v26  ;;  %v1927_v28 = vld [vmem:[#allocation9 + $0x50] sm:$0xff]  ;;  %v1875_v26 = vld [vmem:[#allocation9 + $0x8] sm:$0xff]  ;;  %1918 = vmatpush.msra.mxu3 %v1903_v24 }
 0x3a8   : > { %1895 = vmatpush.msrb.mxu2 %v1875_v26  ;;  %2019 = vmatpush.msra.mxu1 %v1875_v26  ;;  %v2258_v1 = vld [vmem:[#allocation12 + $0x58] sm:$0xff] }
 0x3a9   : > { %5162 = vpow2.f32 %v4824_v20  ;;  %v1926_v20 = vld [vmem:[#allocation9 + $0x48] sm:$0xff]  ;;  %1919 = vmatpush.msra.mxu3 %v1902_v31 }
 0x3aa   : > { %5164 = vpow2.f32 %v4825_v34  ;;  %1896 = vmatpush.msrb.mxu2 %v1874_v18  ;;  %2020 = vmatpush.msra.mxu1 %v1874_v18 }
 0x3ab   : > { %v1698_v14 = vpop.f32.mrf.mxu2 }
 0x3ac   : > { %v1699_v48 = vadd.f32 %v6106_v46, %v1698_v14  ;;  %2041 = vmatpush.msra.mxu2 %v1904_v11  ;;  %v6290_v11 = vld [vmem:[#allocation2 + $0x18] sm:$0xff] }
 0x3ae   : > { %2042 = vmatpush.msra.mxu2 %v1903_v24  ;;  %v1069_v24 = vadd.f32 %v6099_v32, %v6225_v22  ;;  %v6309_v32 = vld [vmem:[#allocation13 + $0x10] sm:$0xff] }
 0x3af   : > { %v5163_v35 = vpop.eup %5162  ;;  %v2206_v22 = vld [vmem:[#allocation12 + $0x30] sm:$0xff] }
 0x3b0   : > { %v5165_v36 = vpop.eup %5164  ;;  %v1705_v2 = vadd.f32 1.0, %v5163_v35  ;;  %v1901_v35 = vld [vmem:[#allocation9 + $0x20] sm:$0xff]  ;;  %2043 = vmatpush.msra.mxu2 %v1902_v31 }
 0x3b1   : > { %v1725_v5 = vadd.f32 1.0, %v5165_v36  ;;  %v1925_v36 = vld [vmem:[#allocation9 + $0x40] sm:$0xff]  ;;  %1920 = vmatpush.msra.mxu3 %v1901_v35 }
 0x3b2   : > { %5166 = vrcp.f32 %v1705_v2  ;;  %v1717_v41 = vand.u32 2147483648, %v1705_v2  ;;  %v1715_v43 = vand.u32 2147483647, %v1705_v2  ;;  %vm1711_vm4 = vweird.f32 %v1705_v2  ;;  %2044 = vmatpush.msra.mxu2 %v1901_v35 }
 0x3b3   : > { %5168 = vrcp.f32 %v1725_v5  ;;  %v1737_v54 = vand.u32 2147483648, %v1725_v5  ;;  %vm1731_vm8 = vweird.f32 %v1725_v5  ;;  %v1735_v56 = vand.u32 2147483647, %v1725_v5 }
 0x3b4   : > { %v1718_v47 = vor.u32 1.1754944e-38, %v1717_v41  ;;  %vm1716_vm6 = vcmp.eq.f32.partialorder %v1715_v43, 8.507059e+37 }
 0x3b5   : > { %v1738_v59 = vor.u32 1.1754944e-38, %v1737_v54  ;;  %vm1736_vm10 = vcmp.eq.f32.partialorder %v1735_v56, 8.507059e+37 }
 0x3b8   : > { %v5167_v8 = vpop.eup %5166 }
 0x3b9   : > { %v5169_v37 = vpop.eup %5168  ;;  %v1707_v21 = vmul.f32 %v5167_v8, %v1705_v2  ;;  %vm1712_vm3 = vweird.f32 %v5167_v8 }
 0x3ba   : > { %v1727_v38 = vmul.f32 %v5169_v37, %v1725_v5  ;;  %vm1713_vm5 = vmor %vm1711_vm4, %vm1712_vm3  ;;  %vm1732_vm7 = vweird.f32 %v5169_v37 }
 0x3bb   : > { %v1708_v39 = vsub.f32 1.0, %v1707_v21  ;;  %vm1733_vm9 = vmor %vm1731_vm8, %vm1732_vm7 }
 0x3bc   : > { %v1728_v29 = vsub.f32 1.0, %v1727_v38  ;;  %v2133_v38 = vld [vmem:[#allocation12 + $0x18] sm:$0xff] }
 0x3bd   : > { %v1709_v42 = vmul.f32 %v5167_v8, %v1708_v39  ;;  %v2132_v39 = vld [vmem:[#allocation12 + $0x10] sm:$0xff] }
 0x3be   : > { %v1729_v44 = vmul.f32 %v5169_v37, %v1728_v29  ;;  %v2131_v29 = vld [vmem:[#allocation12 + $0x8] sm:$0xff] }
 0x3bf   : > { %v1710_v45 = vadd.f32 %v5167_v8, %v1709_v42  ;;  %v2130_v42 = vld [vmem:[#allocation12] sm:$0xff] }
 0x3c0   : > { %v1730_v50 = vadd.f32 %v5169_v37, %v1729_v44 }
 0x3c1   : > { %v1714_v49 = vsel %vm1713_vm5, %v5167_v8, %v1710_v45 }
 0x3c2   : > { %v1719_v51 = vsel %vm1716_vm6, %v1718_v47, %v1714_v49  ;;  %v1734_v58 = vsel %vm1733_vm9, %v5169_v37, %v1730_v50 }
 0x3c3   : > { %v1741_v55 = vmul.f32 %v1719_v51, %v1699_v48  ;;  %v1739_v60 = vsel %vm1736_vm10, %v1738_v59, %v1734_v58  ;;  %v1117_v59 = vadd.f32 %v6111_v52, %v6223_v12  ;;  %v6278_v52 = vld [vmem:[#allocation2] sm:$0xff]  ;;  %v6282_v12 = vld [vmem:[#allocation2 + $0x8] sm:$0xff] }
 0x3c4   : > { %v1744_v61 = vsub.f32 1.0, %v1739_v60  ;;  %v1746_v0 = vmul.f32 %v1739_v60, %v1623_v13  ;;  %v1928_v13 = vld [vmem:[#allocation9 + $0x58] sm:$0xff] }
 0x3c5   : > { %v1742_v57 = vadd.f32 %v1741_v55, %v1114_v53  ;;  %1941 = vmatpush.msra.mxu0 %v1928_v13 }
 0x3c7   : > { %5170 = vtanh.f32 %v1742_v57  ;;  %1942 = vmatpush.msra.mxu0 %v1927_v28 }
 0x3c9   : > { %1943 = vmatpush.msra.mxu0 %v1926_v20 }
 0x3cb   : > { %1944 = vmatpush.msra.mxu0 %v1925_v36 }
 0x3cd   : > { %v5171_v62 = vpop.eup %5170 }
 0x3ce   : > { %v1745_v63 = vmul.f32 %v5171_v62, %v1744_v61 }
 0x3d0   : > { %v6250_v3 = vadd.f32 %v1746_v0, %v1745_v63 }
 0x3d2   : > { %1749 = vst.msk [vmem:[#allocation2 + $0x20] sm:$0xff] %vm957_vm0, %v6250_v3  ;;  %4826 = vmatmul.msk.f32.vlgmr.msrb.gmra.mxu3 %vm957_vm0, %v6250_v3  ;;  %4827 = vmatmul.msk.f32.vlgmr.msrb.gmra.mxu0 %vm957_vm0, %v6250_v3 }
 0x3d3   : > { %4828 = vmatmul.msk.f32.vlgmr.msrb.gmra.mxu1 %vm957_vm0, %v6250_v3  ;;  %2065 = vmatpush.msrb.mxu3 %v1928_v13 }
 0x3d4   : > { %2174 = vmatpush.msrb.mxu0 %v2133_v38  ;;  %2225 = vmatpush.msrb.mxu1 %v2207_v27  ;;  %v2256_v38 = vld [vmem:[#allocation12 + $0x48] sm:$0xff] }
 0x3d5   : > { %2066 = vmatpush.msrb.mxu3 %v1927_v28 }
 0x3d6   : > { %2175 = vmatpush.msrb.mxu0 %v2132_v39  ;;  %2226 = vmatpush.msrb.mxu1 %v2206_v22  ;;  %v6314_v39 = vld [vmem:[#allocation13] sm:$0xff] }
 0x3d7   : > { %2067 = vmatpush.msrb.mxu3 %v1926_v20 }
 0x3d8   : > { %2176 = vmatpush.msrb.mxu0 %v2131_v29  ;;  %v2204_v29 = vld [vmem:[#allocation12 + $0x20] sm:$0xff] }
 0x3d9   : > { %2068 = vmatpush.msrb.mxu3 %v1925_v36  ;;  %v6294_v13 = vld [vmem:[#allocation2 + $0x20] sm:$0xff] }
 0x3da   : > { %2177 = vmatpush.msrb.mxu0 %v2130_v42  ;;  %v2255_v42 = vld [vmem:[#allocation12 + $0x40] sm:$0xff] }
 0x44f   : > { %v1798_v4 = vpop.f32.mrf.mxu0 }
 0x450   : > { %v1845_v6 = vadd.f32 %v1798_v4, %v1066_v30  ;;  %v1822_v51 = vpop.f32.mrf.mxu1 }
 0x451   : > { %v1823_v55 = vadd.f32 %v6106_v46, %v1822_v51 }
 0x452   : > { %v4830_v7 = vmul.f32 -1.442695, %v1845_v6 }
 0x454   : > { %5172 = vpow2.f32 %v4830_v7 }
 0x455   : > { %v1774_v15 = vpop.f32.mrf.mxu3 }
 0x456   : > { %v1825_v25 = vadd.f32 %v1774_v15, %v1015_v9 }
 0x458   : > { %v4829_v34 = vmul.f32 -1.442695, %v1825_v25 }
 0x45a   : > { %v5173_v2 = vpop.eup %5172  ;;  %5174 = vpow2.f32 %v4829_v34 }
 0x45b   : > { %v1849_v5 = vadd.f32 1.0, %v5173_v2 }
 0x45d   : > { %5176 = vrcp.f32 %v1849_v5  ;;  %v1861_v60 = vand.u32 2147483648, %v1849_v5  ;;  %vm1855_vm1 = vweird.f32 %v1849_v5  ;;  %v1859_v62 = vand.u32 2147483647, %v1849_v5 }
 0x45f   : > { %v1862_v30 = vor.u32 1.1754944e-38, %v1861_v60  ;;  %vm1860_vm3 = vcmp.eq.f32.partialorder %v1859_v62, 8.507059e+37 }
 0x460   : > { %v5175_v8 = vpop.eup %5174 }
 0x461   : > { %v1829_v37 = vadd.f32 1.0, %v5175_v8  ;;  %v2257_v8 = vld [vmem:[#allocation12 + $0x50] sm:$0xff] }
 0x463   : > { %5178 = vrcp.f32 %v1829_v37  ;;  %v5177_v21 = vpop.eup %5176  ;;  %v1841_v47 = vand.u32 2147483648, %v1829_v37  ;;  %v1839_v49 = vand.u32 2147483647, %v1829_v37  ;;  %vm1835_vm12 = vweird.f32 %v1829_v37 }
 0x464   : > { %v1851_v41 = vmul.f32 %v5177_v21, %v1849_v5  ;;  %vm1856_vm15 = vweird.f32 %v5177_v21  ;;  %v6306_v5 = vld [vmem:[#allocation13 + $0x18] sm:$0xff] }
 0x465   : > { %v1842_v54 = vor.u32 1.1754944e-38, %v1841_v47  ;;  %vm1840_vm14 = vcmp.eq.f32.partialorder %v1839_v49, 8.507059e+37  ;;  %vm1857_vm2 = vmor %vm1855_vm1, %vm1856_vm15 }
 0x466   : > { %v1852_v14 = vsub.f32 1.0, %v1851_v41 }
 0x468   : > { %v1853_v50 = vmul.f32 %v5177_v21, %v1852_v14 }
 0x469   : > { %v5179_v43 = vpop.eup %5178 }
 0x46a   : > { %v1831_v44 = vmul.f32 %v5179_v43, %v1829_v37  ;;  %vm1836_vm11 = vweird.f32 %v5179_v43  ;;  %v1854_v57 = vadd.f32 %v5177_v21, %v1853_v50  ;;  %v6311_v37 = vld [vmem:[#allocation13 + $0x8] sm:$0xff] }
 0x46b   : > { %vm1837_vm13 = vmor %vm1835_vm12, %vm1836_vm11 }
 0x46c   : > { %v1832_v45 = vsub.f32 1.0, %v1831_v44  ;;  %v1858_v0 = vsel %vm1857_vm2, %v5177_v21, %v1854_v57  ;;  %v2205_v21 = vld [vmem:[#allocation12 + $0x28] sm:$0xff] }
 0x46d   : > { %v1863_v4 = vsel %vm1860_vm3, %v1862_v30, %v1858_v0  ;;  %2227 = vmatpush.msrb.mxu1 %v2205_v21  ;;  %v6436_v21 = vld [vmem:[%s7155_s0] ss:$0 sm:$0xff] }
 0x46e   : > { %v1833_v48 = vmul.f32 %v5179_v43, %v1832_v45  ;;  %v1868_v46 = vsub.f32 1.0, %v1863_v4  ;;  %v1870_v9 = vmul.f32 %v1863_v4, %v6250_v3  ;;  %v6286_v3 = vld [vmem:[#allocation2 + $0x10] sm:$0xff] }
 0x46f   : > { %2228 = vmatpush.msrb.mxu1 %v2204_v29 }
 0x470   : > { %v1834_v53 = vadd.f32 %v5179_v43, %v1833_v48 }
 0x472   : > { %v1838_v56 = vsel %vm1837_vm13, %v5179_v43, %v1834_v53 }
 0x473   : > { %v1843_v58 = vsel %vm1840_vm14, %v1842_v54, %v1838_v56  ;;  %v6318_v56 = vld [vmem:[#allocation10] ss:$0 sm:$0xff] }
 0x474   : > { %v1865_v61 = vmul.f32 %v1843_v58, %v1823_v55 }
 0x476   : > { %v1866_v63 = vadd.f32 %v1865_v61, %v1117_v59  ;;  %v6324_v61 = vld [vmem:[%s7154_s2 + $0x2] ss:$0 sm:$0xff] }
 0x477   : > { %v1120_v62 = vadd.f32 %v6324_v61, %v6227_v33 }
 0x478   : > { %5180 = vtanh.f32 %v1866_v63 }
 0x47e   : > { %v5181_v6 = vpop.eup %5180 }
 0x47f   : > { %v1869_v7 = vmul.f32 %v5181_v6, %v1868_v46 }
 0x481   : > { %v6268_v10 = vadd.f32 %v1870_v9, %v1869_v7  ;;  %v6328_v9 = vld [vmem:[#allocation13 + $0x58] sm:$0xff] }
 0x483   : > { %1873 = vst.msk [vmem:[#allocation2 + $0x28] sm:$0xff] %vm957_vm0, %v6268_v10  ;;  %4831 = vmatmul.msk.f32.vlgmr.msrb.gmra.mxu2 %vm957_vm0, %v6268_v10  ;;  %4832 = vmatmul.msk.f32.vlgmr.msra.gmra.mxu3 %vm957_vm0, %v6268_v10 }
 0x484   : > { %4833 = vmatmul.msk.f32.vlgmr.msra.gmra.mxu0 %vm957_vm0, %v6268_v10  ;;  %2322 = vmatpush.msra.mxu3 %v6306_v5 }
 0x485   : > { %2276 = vmatpush.msrb.mxu2 %v2258_v1  ;;  %2622 = vmatpush.msra.mxu0 %v6328_v9 }
 0x486   : > { %2323 = vmatpush.msra.mxu3 %v6309_v32 }
 0x487   : > { %2277 = vmatpush.msrb.mxu2 %v2257_v8 }
 0x488   : > { %2324 = vmatpush.msra.mxu3 %v6311_v37 }
 0x489   : > { %2278 = vmatpush.msrb.mxu2 %v2256_v38 }
 0x48a   : > { %v6298_v15 = vld [vmem:[#allocation2 + $0x28] sm:$0xff]  ;;  %2325 = vmatpush.msra.mxu3 %v6314_v39 }
 0x48b   : > { %2279 = vmatpush.msrb.mxu2 %v2255_v42 }
 0x48c   : > { %4841 = vmatmul.msk.f32.vlgmr.msrb.gmra.mxu0 %vm957_vm0, %v6278_v52 }
 0x494   : > { %4842 = vmatmul.msk.f32.gmra.mxu0 %vm957_vm0, %v6282_v12 }
 0x49c   : > { %4843 = vmatmul.msk.f32.gmra.mxu0 %vm957_vm0, %v6286_v3 }
 0x4a4   : > { %4844 = vmatmul.msk.f32.gmra.mxu0 %vm957_vm0, %v6290_v11 }
 0x4ac   : > { %4845 = vmatmul.msk.f32.gmra.mxu0 %vm957_vm0, %v6294_v13 }
 0x4b4   : > { %4846 = vmatmul.msk.f32.gmra.mxu0 %vm957_vm0, %v6298_v15 }
 0x501   : > { %v1946_v51 = vpop.f32.mrf.mxu0 }
 0x502   : > { %v1947_v57 = vadd.f32 %v6318_v56, %v1946_v51 }
 0x506   : > { %v1898_v28 = vpop.f32.mrf.mxu2  ;;  %v1922_v25 = vpop.f32.mrf.mxu3 }
 0x507   : > { %v1949_v26 = vadd.f32 %v1898_v28, %v1018_v16  ;;  %v1969_v31 = vadd.f32 %v1922_v25, %v1069_v24  ;;  %v6331_v28 = vld [vmem:[#allocation13 + $0x50] sm:$0xff] }
 0x508   : > { %2623 = vmatpush.msra.mxu0 %v6331_v28 }
 0x509   : > { %v4834_v20 = vmul.f32 -1.442695, %v1949_v26  ;;  %v4835_v34 = vmul.f32 -1.442695, %v1969_v31  ;;  %v6337_v31 = vld [vmem:[#allocation13 + $0x38] sm:$0xff]  ;;  %v2179_v38 = vpop.f32.mrf.mxu0 }
 0x50b   : > { %5182 = vpow2.f32 %v4834_v20  ;;  %v6347_v20 = vld [vmem:[#allocation13 + $0x30] sm:$0xff] }
 0x50c   : > { %5184 = vpow2.f32 %v4835_v34  ;;  %v6354_v34 = vld [vmem:[#allocation13 + $0x28] sm:$0xff] }
 0x511   : > { %v5183_v18 = vpop.eup %5182 }
 0x512   : > { %v5185_v35 = vpop.eup %5184  ;;  %v1953_v36 = vadd.f32 1.0, %v5183_v18  ;;  %v6356_v18 = vld [vmem:[#allocation13 + $0x40] sm:$0xff] }
 0x513   : > { %v1973_v2 = vadd.f32 1.0, %v5185_v35 }
 0x514   : > { %5186 = vrcp.f32 %v1953_v36  ;;  %v1965_v47 = vand.u32 2147483648, %v1953_v36  ;;  %v1963_v50 = vand.u32 2147483647, %v1953_v36  ;;  %vm1959_vm5 = vweird.f32 %v1953_v36 }
 0x515   : > { %5188 = vrcp.f32 %v1973_v2  ;;  %v1985_v0 = vand.u32 2147483648, %v1973_v2  ;;  %vm1979_vm9 = vweird.f32 %v1973_v2  ;;  %v1983_v30 = vand.u32 2147483647, %v1973_v2 }
 0x516   : > { %v1966_v55 = vor.u32 1.1754944e-38, %v1965_v47  ;;  %vm1964_vm7 = vcmp.eq.f32.partialorder %v1963_v50, 8.507059e+37 }
 0x517   : > { %v1986_v6 = vor.u32 1.1754944e-38, %v1985_v0  ;;  %vm1984_vm11 = vcmp.eq.f32.partialorder %v1983_v30, 8.507059e+37 }
 0x51a   : > { %v5187_v41 = vpop.eup %5186 }
 0x51b   : > { %v5189_v43 = vpop.eup %5188  ;;  %v1955_v44 = vmul.f32 %v5187_v41, %v1953_v36  ;;  %vm1960_vm4 = vweird.f32 %v5187_v41  ;;  %v6366_v36 = vld [vmem:[#allocation13 + $0x20] sm:$0xff] }
 0x51c   : > { %v1975_v14 = vmul.f32 %v5189_v43, %v1973_v2  ;;  %vm1961_vm6 = vmor %vm1959_vm5, %vm1960_vm4  ;;  %vm1980_vm8 = vweird.f32 %v5189_v43 }
 0x51d   : > { %v1956_v45 = vsub.f32 1.0, %v1955_v44  ;;  %vm1981_vm10 = vmor %vm1979_vm9, %vm1980_vm8 }
 0x51e   : > { %v1976_v48 = vsub.f32 1.0, %v1975_v14  ;;  %v6442_v14 = vld [vmem:[%s7155_s0 + $0x1] ss:$0 sm:$0xff] }
 0x51f   : > { %v1957_v49 = vmul.f32 %v5187_v41, %v1956_v45 }
 0x520   : > { %v1977_v53 = vmul.f32 %v5189_v43, %v1976_v48 }
 0x521   : > { %v1958_v54 = vadd.f32 %v5187_v41, %v1957_v49 }
 0x522   : > { %v1978_v60 = vadd.f32 %v5189_v43, %v1977_v53 }
 0x523   : > { %v1962_v58 = vsel %vm1961_vm6, %v5187_v41, %v1958_v54  ;;  %v2180_v41 = vadd.f32 %v6436_v21, %v2179_v38 }
 0x524   : > { %v1967_v59 = vsel %vm1964_vm7, %v1966_v55, %v1962_v58  ;;  %v1982_v46 = vsel %vm1981_vm10, %v5189_v43, %v1978_v60 }
 0x525   : > { %v1989_v63 = vmul.f32 %v1967_v59, %v1947_v57  ;;  %v1987_v7 = vsel %vm1984_vm11, %v1986_v6, %v1982_v46 }
 0x526   : > { %v1992_v16 = vsub.f32 1.0, %v1987_v7  ;;  %v1994_v25 = vmul.f32 %v1987_v7, %v6268_v10  ;;  %v6349_v10 = vld [vmem:[#allocation13 + $0x48] sm:$0xff] }
 0x527   : > { %v1990_v4 = vadd.f32 %v1989_v63, %v1120_v62  ;;  %2624 = vmatpush.msra.mxu0 %v6349_v10 }
 0x529   : > { %5190 = vtanh.f32 %v1990_v4  ;;  %2625 = vmatpush.msra.mxu0 %v6356_v18 }
 0x52b   : > { %2822 = vmatpush.msrb.mxu0 %v6306_v5 }
 0x52d   : > { %2823 = vmatpush.msrb.mxu0 %v6309_v32 }
 0x52f   : > { %v5191_v24 = vpop.eup %5190  ;;  %2824 = vmatpush.msrb.mxu0 %v6311_v37 }
 0x530   : > { %v1993_v33 = vmul.f32 %v5191_v24, %v1992_v16  ;;  %v1123_v16 = vadd.f32 %v6324_v61, %v6231_v23 }
 0x531   : > { %2825 = vmatpush.msrb.mxu0 %v6314_v39 }
 0x532   : > { %v6335_v26 = vadd.f32 %v1994_v25, %v1993_v33 }
 0x534   : > { %1997 = vst.msk [vmem:[#allocation2 + $0x30] sm:$0xff] %vm957_vm0, %v6335_v26  ;;  %4836 = vmatmul.msk.f32.vlgmr.msra.gmra.mxu1 %vm957_vm0, %v6335_v26  ;;  %4837 = vmatmul.msk.f32.vlgmr.msra.gmra.mxu2 %vm957_vm0, %v6335_v26 }
 0x535   : > { %4838 = vmatmul.msk.f32.vlgmr.msrb.gmra.mxu3 %vm957_vm0, %v6335_v26  ;;  %2698 = vmatpush.msra.mxu1 %v6306_v5 }
 0x536   : > { %2347 = vmatpush.msrb.mxu3 %v6337_v31  ;;  %2722 = vmatpush.msra.mxu2 %v6337_v31 }
 0x537   : > { %2699 = vmatpush.msra.mxu1 %v6309_v32 }
 0x538   : > { %2348 = vmatpush.msrb.mxu3 %v6347_v20  ;;  %2723 = vmatpush.msra.mxu2 %v6347_v20 }
 0x539   : > { %2700 = vmatpush.msra.mxu1 %v6311_v37 }
 0x53a   : > { %2349 = vmatpush.msrb.mxu3 %v6354_v34  ;;  %2724 = vmatpush.msra.mxu2 %v6354_v34 }
 0x53b   : > { %v2128_v35 = vld [vmem:[#allocation2 + $0x30] sm:$0xff]  ;;  %2701 = vmatpush.msra.mxu1 %v6314_v39 }
 0x53c   : > { %4847 = vmatmul.msk.f32.gmra.mxu0 %vm957_vm0, %v2128_v35  ;;  %4850 = vmatmul.msk.f32.vlgmr.msrb.gmra.mxu1 %vm957_vm0, %v6278_v52 }
 0x53d   : > { %4859 = vmatmul.msk.f32.vlgmr.msrb.gmra.mxu2 %vm957_vm0, %v6278_v52  ;;  %2326 = vmatmul.f32.vlgmr.msra.gmra.mxu3 %v5709_v17  ;;  %v5366_v52 = vld [vmem:[%s7154_s2] ss:$0 sm:$0xff] }
 0x53e   : > { %2350 = vmatpush.msrb.mxu3 %v6366_v36  ;;  %2725 = vmatpush.msra.mxu2 %v6366_v36 }
 0x53f   : > { %2846 = vmatpush.msrb.mxu1 %v6337_v31 }
 0x540   : > { %2375 = vmatpush.msra.mxu3 %v6328_v9  ;;  %2870 = vmatpush.msrb.mxu2 %v6328_v9 }
 0x541   : > { %2847 = vmatpush.msrb.mxu1 %v6347_v20 }
 0x542   : > { %2376 = vmatpush.msra.mxu3 %v6331_v28  ;;  %2871 = vmatpush.msrb.mxu2 %v6331_v28 }
 0x543   : > { %2848 = vmatpush.msrb.mxu1 %v6354_v34 }
 0x544   : > { %2377 = vmatpush.msra.mxu3 %v6349_v10  ;;  %4851 = vmatmul.msk.f32.gmra.mxu1 %vm957_vm0, %v6282_v12 }
 0x545   : > { %2872 = vmatpush.msrb.mxu2 %v6349_v10  ;;  %2351 = vmatmul.f32.vlgmr.msrb.gmra.mxu3 %v5709_v17 }
 0x546   : > { %4860 = vmatmul.msk.f32.gmra.mxu2 %vm957_vm0, %v6282_v12  ;;  %2378 = vmatpush.msra.mxu3 %v6356_v18  ;;  %v1021_v12 = vadd.f32 %v5366_v52, %v6198_v40 }
 0x547   : > { %2849 = vmatpush.msrb.mxu1 %v6366_v36  ;;  %2873 = vmatpush.msrb.mxu2 %v6356_v18 }
 0x548   : > { %2450 = vmatpush.msrb.mxu3 %v6306_v5 }
 0x54a   : > { %2451 = vmatpush.msrb.mxu3 %v6309_v32 }
 0x54c   : > { %2452 = vmatpush.msrb.mxu3 %v6311_v37  ;;  %4852 = vmatmul.msk.f32.gmra.mxu1 %vm957_vm0, %v6286_v3 }
 0x54d   : > { %2379 = vmatmul.f32.vlgmr.msra.gmra.mxu3 %v5709_v17 }
 0x54e   : > { %4861 = vmatmul.msk.f32.gmra.mxu2 %vm957_vm0, %v6286_v3  ;;  %2453 = vmatpush.msrb.mxu3 %v6314_v39 }
 0x550   : > { %2474 = vmatpush.msra.mxu3 %v6337_v31 }
 0x552   : > { %2475 = vmatpush.msra.mxu3 %v6347_v20 }
 0x554   : > { %2476 = vmatpush.msra.mxu3 %v6354_v34  ;;  %4853 = vmatmul.msk.f32.gmra.mxu1 %vm957_vm0, %v6290_v11 }
 0x556   : > { %4862 = vmatmul.msk.f32.gmra.mxu2 %vm957_vm0, %v6290_v11  ;;  %2477 = vmatpush.msra.mxu3 %v6366_v36 }
 0x55c   : > { %4854 = vmatmul.msk.f32.gmra.mxu1 %vm957_vm0, %v6294_v13 }
 0x55e   : > { %4863 = vmatmul.msk.f32.gmra.mxu2 %vm957_vm0, %v6294_v13  ;;  %v5367_v13 = vld [vmem:[%s7154_s2 + $0x1] ss:$0 sm:$0xff] }
 0x55f   : > { %v1072_v27 = vadd.f32 %v5367_v13, %v6229_v19 }
 0x564   : > { %4855 = vmatmul.msk.f32.gmra.mxu1 %vm957_vm0, %v6298_v15 }
 0x566   : > { %4864 = vmatmul.msk.f32.gmra.mxu2 %vm957_vm0, %v6298_v15 }
 0x56c   : > { %4856 = vmatmul.msk.f32.gmra.mxu1 %vm957_vm0, %v2128_v35 }
 0x56e   : > { %4865 = vmatmul.msk.f32.gmra.mxu2 %vm957_vm0, %v2128_v35 }
 0x5b1   : > { %v2022_v3 = vpop.f32.mrf.mxu1 }
 0x5b2   : > { %v2073_v11 = vadd.f32 %v2022_v3, %v1021_v12 }
 0x5b4   : > { %v4839_v2 = vmul.f32 -1.442695, %v2073_v11 }
 0x5b6   : > { %5192 = vpow2.f32 %v4839_v2 }
 0x5b7   : > { %v2046_v15 = vpop.f32.mrf.mxu2 }
 0x5b8   : > { %v2093_v1 = vadd.f32 %v2046_v15, %v1072_v27  ;;  %v2070_v22 = vpop.f32.mrf.mxu3 }
 0x5b9   : > { %v2230_v47 = vpop.f32.mrf.mxu1  ;;  %v2071_v6 = vadd.f32 %v6318_v56, %v2070_v22 }
 0x5ba   : > { %v4840_v8 = vmul.f32 -1.442695, %v2093_v1  ;;  %v2231_v50 = vadd.f32 %v6442_v14, %v2230_v47  ;;  %v6448_v1 = vld [vmem:[#allocation15] ss:$0 sm:$0xff] }
 0x5bc   : > { %v5193_v40 = vpop.eup %5192  ;;  %5194 = vpow2.f32 %v4840_v8 }
 0x5bd   : > { %v2077_v29 = vadd.f32 1.0, %v5193_v40 }
 0x5bf   : > { %5196 = vrcp.f32 %v2077_v29  ;;  %v2089_v54 = vand.u32 2147483648, %v2077_v29  ;;  %v2087_v58 = vand.u32 2147483647, %v2077_v29  ;;  %vm2083_vm13 = vweird.f32 %v2077_v29 }
 0x5c0   : > { %v2327_v42 = vpop.f32.mrf.mxu3  ;;  %v2281_v47 = vpop.f32.mrf.mxu2 }
 0x5c1   : > { %v2383_v43 = vadd.f32 %v2327_v42, %v2180_v41  ;;  %v2090_v30 = vor.u32 1.1754944e-38, %v2089_v54  ;;  %vm2088_vm15 = vcmp.eq.f32.partialorder %v2087_v58, 8.507059e+37 }
 0x5c2   : > { %v5195_v19 = vpop.eup %5194 }
 0x5c3   : > { %v2097_v44 = vadd.f32 1.0, %v5195_v19  ;;  %v4867_v45 = vmul.f32 -1.442695, %v2383_v43 }
 0x5c5   : > { %v5197_v48 = vpop.eup %5196  ;;  %5198 = vrcp.f32 %v2097_v44  ;;  %v2109_v25 = vand.u32 2147483648, %v2097_v44  ;;  %v2107_v52 = vand.u32 2147483647, %v2097_v44  ;;  %vm2103_vm2 = vweird.f32 %v2097_v44 }
 0x5c6   : > { %v2079_v49 = vmul.f32 %v5197_v48, %v2077_v29  ;;  %5200 = vpow2.f32 %v4867_v45  ;;  %vm2084_vm12 = vweird.f32 %v5197_v48 }
 0x5c7   : > { %vm2085_vm14 = vmor %vm2083_vm13, %vm2084_vm12  ;;  %v2110_v2 = vor.u32 1.1754944e-38, %v2109_v25  ;;  %vm2108_vm4 = vcmp.eq.f32.partialorder %v2107_v52, 8.507059e+37  ;;  %v2182_v25 = vpop.f32.mrf.mxu0 }
 0x5c8   : > { %v2080_v51 = vsub.f32 1.0, %v2079_v49  ;;  %v2352_v53 = vpop.f32.mrf.mxu3 }
 0x5c9   : > { %v2403_v55 = vadd.f32 %v2352_v53, %v2231_v50 }
 0x5ca   : > { %v2081_v57 = vmul.f32 %v5197_v48, %v2080_v51 }
 0x5cb   : > { %v5199_v59 = vpop.eup %5198  ;;  %v4868_v60 = vmul.f32 -1.442695, %v2403_v55 }
 0x5cc   : > { %v5201_v62 = vpop.eup %5200  ;;  %v2099_v63 = vmul.f32 %v5199_v59, %v2097_v44  ;;  %v2082_v0 = vadd.f32 %v5197_v48, %v2081_v57  ;;  %vm2104_vm1 = vweird.f32 %v5199_v59  ;;  %v6454_v44 = vld [vmem:[%s7155_s0 + $0x2] ss:$0 sm:$0xff] }
 0x5cd   : > { %v2387_v4 = vadd.f32 1.0, %v5201_v62  ;;  %5202 = vpow2.f32 %v4868_v60  ;;  %vm2105_vm3 = vmor %vm2103_vm2, %vm2104_vm1  ;;  %v2282_v54 = vadd.f32 %v6454_v44, %v2281_v47  ;;  %v2284_v47 = vpop.f32.mrf.mxu2 }
 0x5ce   : > { %v2100_v46 = vsub.f32 1.0, %v2099_v63  ;;  %v2086_v7 = vsel %vm2085_vm14, %v5197_v48, %v2082_v0 }
 0x5cf   : > { %v2091_v24 = vsel %vm2088_vm15, %v2090_v30, %v2086_v7  ;;  %5204 = vrcp.f32 %v2387_v4  ;;  %v2397_v38 = vand.u32 2147483647, %v2387_v4  ;;  %v2399_v29 = vand.u32 2147483648, %v2387_v4 }
 0x5d0   : > { %v2101_v33 = vmul.f32 %v5199_v59, %v2100_v46  ;;  %v2113_v35 = vmul.f32 %v2091_v24, %v2071_v6  ;;  %v2380_v40 = vpop.f32.mrf.mxu3  ;;  %vm2393_vm6 = vweird.f32 %v2387_v4 }
 0x5d1   : > { %v2381_v49 = vadd.f32 %v6448_v1, %v2380_v40  ;;  %v2400_v51 = vor.u32 1.1754944e-38, %v2399_v29  ;;  %vm2398_vm8 = vcmp.eq.f32.partialorder %v2397_v38, 8.507059e+37 }
 0x5d2   : > { %v2102_v12 = vadd.f32 %v5199_v59, %v2101_v33  ;;  %v2114_v3 = vadd.f32 %v2113_v35, %v1123_v16  ;;  %v2183_v35 = vadd.f32 %v6436_v21, %v2182_v25 }
 0x5d3   : > { %v5203_v11 = vpop.eup %5202 }
 0x5d4   : > { %v2106_v13 = vsel %vm2105_vm3, %v5199_v59, %v2102_v12  ;;  %5206 = vtanh.f32 %v2114_v3  ;;  %v2407_v56 = vadd.f32 1.0, %v5203_v11  ;;  %v2233_v11 = vpop.f32.mrf.mxu1 }
 0x5d5   : > { %v5205_v27 = vpop.eup %5204  ;;  %v2111_v15 = vsel %vm2108_vm4, %v2110_v2, %v2106_v13  ;;  %v2234_v2 = vadd.f32 %v6442_v14, %v2233_v11 }
 0x5d6   : > { %5208 = vrcp.f32 %v2407_v56  ;;  %v2389_v23 = vmul.f32 %v5205_v27, %v2387_v4  ;;  %v2116_v61 = vsub.f32 1.0, %v2111_v15  ;;  %v2118_v42 = vmul.f32 %v2111_v15, %v6335_v26 }
 0x5d7   : > { %vm2394_vm5 = vweird.f32 %v5205_v27  ;;  %v2419_v55 = vand.u32 2147483648, %v2407_v56  ;;  %v2417_v59 = vand.u32 2147483647, %v2407_v56  ;;  %vm2413_vm10 = vweird.f32 %v2407_v56 }
 0x5d8   : > { %v2390_v22 = vsub.f32 1.0, %v2389_v23  ;;  %vm2395_vm7 = vmor %vm2393_vm6, %vm2394_vm5 }
 0x5d9   : > { %v2420_v0 = vor.u32 1.1754944e-38, %v2419_v55  ;;  %vm2418_vm12 = vcmp.eq.f32.partialorder %v2417_v59, 8.507059e+37 }
 0x5da   : > { %v5207_v8 = vpop.eup %5206  ;;  %v2391_v43 = vmul.f32 %v5205_v27, %v2390_v22 }
 0x5db   : > { %v2117_v41 = vmul.f32 %v5207_v8, %v2116_v61 }
 0x5dc   : > { %v5209_v19 = vpop.eup %5208  ;;  %v2392_v50 = vadd.f32 %v5205_v27, %v2391_v43 }
 0x5dd   : > { %v2119_v45 = vadd.f32 %v2118_v42, %v2117_v41  ;;  %v2409_v48 = vmul.f32 %v5209_v19, %v2407_v56  ;;  %vm2414_vm9 = vweird.f32 %v5209_v19 }
 0x5de   : > { %v2396_v53 = vsel %vm2395_vm7, %v5205_v27, %v2392_v50  ;;  %vm2415_vm11 = vmor %vm2413_vm10, %vm2414_vm9 }
 0x5df   : > { %2121 = vst.msk [vmem:[#allocation2 + $0x38] sm:$0xff] %vm957_vm0, %v2119_v45  ;;  %v2410_v26 = vsub.f32 1.0, %v2409_v48  ;;  %v2401_v57 = vsel %vm2398_vm8, %v2400_v51, %v2396_v53  ;;  %v2285_v53 = vadd.f32 %v6454_v44, %v2284_v47 }
 0x5e0   : > { %v2423_v60 = vmul.f32 %v2401_v57, %v2381_v49 }
 0x5e1   : > { %v2411_v58 = vmul.f32 %v5209_v19, %v2410_v26 }
 0x5e2   : > { %v2424_v63 = vadd.f32 %v2423_v60, %v2282_v54 }
 0x5e3   : > { %v2412_v62 = vadd.f32 %v5209_v19, %v2411_v58 }
 0x5e4   : > { %5210 = vtanh.f32 %v2424_v63 }
 0x5e5   : > { %v2416_v30 = vsel %vm2415_vm11, %v5209_v19, %v2412_v62 }
 0x5e6   : > { %v2421_v4 = vsel %vm2418_vm12, %v2420_v0, %v2416_v30  ;;  %v2129_v46 = vld [vmem:[#allocation2 + $0x38] sm:$0xff] }
 0x5e7   : > { %4848 = vmatmul.msk.f32.gmra.mxu0 %vm957_vm0, %v2129_v46  ;;  %4857 = vmatmul.msk.f32.gmra.mxu1 %vm957_vm0, %v2129_v46  ;;  %v2426_v6 = vsub.f32 1.0, %v2421_v4  ;;  %v2428_v24 = vmul.f32 0.0, %v2421_v4 }
 0x5e8   : > { %4866 = vmatmul.msk.f32.gmra.mxu2 %vm957_vm0, %v2129_v46 }
 0x5ea   : > { %v5211_v7 = vpop.eup %5210 }
 0x5eb   : > { %v2427_v16 = vmul.f32 %v5211_v7, %v2426_v6 }
 0x5ed   : > { %v6462_v33 = vadd.f32 %v2428_v24, %v2427_v16 }
 0x5ef   : > { %2430 = vst.msk [vmem:[#allocation3] sm:$0xff] %vm957_vm0, %v6462_v33  ;;  %4869 = vmatmul.msk.f32.vlgmr.msrb.gmra.mxu3 %vm957_vm0, %v6462_v33 }
 0x5f0   : > { %2498 = vmatpush.msrb.mxu3 %v6328_v9 }
 0x5f2   : > { %2499 = vmatpush.msrb.mxu3 %v6331_v28 }
 0x5f4   : > { %2500 = vmatpush.msrb.mxu3 %v6349_v10 }
 0x5f6   : > { %2501 = vmatpush.msrb.mxu3 %v6356_v18 }
 0x5f7   : > { %4870 = vmatmul.msk.f32.vlgmr.msra.gmra.mxu3 %vm957_vm0, %v6462_v33 }
 0x5f8   : > { %2574 = vmatpush.msra.mxu3 %v6306_v5 }
 0x5fa   : > { %2575 = vmatpush.msra.mxu3 %v6309_v32 }
 0x5fc   : > { %2576 = vmatpush.msra.mxu3 %v6311_v37 }
 0x5fe   : > { %2577 = vmatpush.msra.mxu3 %v6314_v39 }
 0x5ff   : > { %4871 = vmatmul.msk.f32.vlgmr.msrb.gmra.mxu3 %vm957_vm0, %v6462_v33 }
 0x600   : > { %2598 = vmatpush.msrb.mxu3 %v6337_v31 }
 0x602   : > { %2599 = vmatpush.msrb.mxu3 %v6347_v20 }
 0x604   : > { %2600 = vmatpush.msrb.mxu3 %v6354_v34 }
 0x606   : > { %2601 = vmatpush.msrb.mxu3 %v6366_v36 }
 0x672   : > { %v2455_v52 = vpop.f32.mrf.mxu3 }
 0x673   : > { %v2506_v12 = vadd.f32 %v2455_v52, %v2183_v35  ;;  %v2236_v52 = vpop.f32.mrf.mxu1 }
 0x675   : > { %v4872_v3 = vmul.f32 -1.442695, %v2506_v12 }
 0x677   : > { %5212 = vpow2.f32 %v4872_v3 }
 0x67a   : > { %v2479_v13 = vpop.f32.mrf.mxu3 }
 0x67b   : > { %v2526_v56 = vadd.f32 %v2479_v13, %v2234_v2 }
 0x67d   : > { %v5213_v27 = vpop.eup %5212  ;;  %v4873_v15 = vmul.f32 -1.442695, %v2526_v56 }
 0x67e   : > { %v2510_v23 = vadd.f32 1.0, %v5213_v27 }
 0x67f   : > { %5214 = vpow2.f32 %v4873_v15 }
 0x680   : > { %5216 = vrcp.f32 %v2510_v23  ;;  %v2522_v29 = vand.u32 2147483648, %v2510_v23  ;;  %v2520_v42 = vand.u32 2147483647, %v2510_v23  ;;  %vm2516_vm14 = vweird.f32 %v2510_v23 }
 0x682   : > { %v2503_v43 = vpop.f32.mrf.mxu3  ;;  %v2523_v48 = vor.u32 1.1754944e-38, %v2522_v29  ;;  %vm2521_vm1 = vcmp.eq.f32.partialorder %v2520_v42, 8.507059e+37 }
 0x683   : > { %v2504_v50 = vadd.f32 %v6448_v1, %v2503_v43 }
 0x685   : > { %v5215_v61 = vpop.eup %5214 }
 0x686   : > { %v5217_v22 = vpop.eup %5216  ;;  %v2530_v8 = vadd.f32 1.0, %v5215_v61 }
 0x687   : > { %v2512_v40 = vmul.f32 %v5217_v22, %v2510_v23  ;;  %vm2517_vm13 = vweird.f32 %v5217_v22 }
 0x688   : > { %5218 = vrcp.f32 %v2530_v8  ;;  %vm2518_vm15 = vmor %vm2516_vm14, %vm2517_vm13  ;;  %v2542_v57 = vand.u32 2147483648, %v2530_v8  ;;  %v2540_v59 = vand.u32 2147483647, %v2530_v8  ;;  %vm2536_vm3 = vweird.f32 %v2530_v8 }
 0x689   : > { %v2513_v38 = vsub.f32 1.0, %v2512_v40 }
 0x68a   : > { %v2543_v63 = vor.u32 1.1754944e-38, %v2542_v57  ;;  %vm2541_vm5 = vcmp.eq.f32.partialorder %v2540_v59, 8.507059e+37 }
 0x68b   : > { %v2514_v41 = vmul.f32 %v5217_v22, %v2513_v38 }
 0x68d   : > { %v2515_v19 = vadd.f32 %v5217_v22, %v2514_v41  ;;  %v2287_v41 = vpop.f32.mrf.mxu2 }
 0x68e   : > { %v5219_v45 = vpop.eup %5218 }
 0x68f   : > { %v2532_v49 = vmul.f32 %v5219_v45, %v2530_v8  ;;  %v2519_v51 = vsel %vm2518_vm15, %v5217_v22, %v2515_v19  ;;  %vm2537_vm2 = vweird.f32 %v5219_v45 }
 0x690   : > { %v2524_v26 = vsel %vm2521_vm1, %v2523_v48, %v2519_v51  ;;  %vm2538_vm4 = vmor %vm2536_vm3, %vm2537_vm2  ;;  %v2288_v48 = vadd.f32 %v6454_v44, %v2287_v41 }
 0x691   : > { %v2533_v54 = vsub.f32 1.0, %v2532_v49  ;;  %v2546_v55 = vmul.f32 %v2524_v26, %v2504_v50 }
 0x693   : > { %v2534_v58 = vmul.f32 %v5219_v45, %v2533_v54  ;;  %v2547_v60 = vadd.f32 %v2546_v55, %v2285_v53 }
 0x695   : > { %v2535_v62 = vadd.f32 %v5219_v45, %v2534_v58  ;;  %5220 = vtanh.f32 %v2547_v60 }
 0x697   : > { %v2539_v0 = vsel %vm2538_vm4, %v5219_v45, %v2535_v62 }
 0x698   : > { %v2544_v30 = vsel %vm2541_vm5, %v2543_v63, %v2539_v0 }
 0x699   : > { %v2549_v4 = vsub.f32 1.0, %v2544_v30  ;;  %v2551_v7 = vmul.f32 %v2544_v30, %v6462_v33 }
 0x69b   : > { %v5221_v46 = vpop.eup %5220 }
 0x69c   : > { %v2550_v6 = vmul.f32 %v5221_v46, %v2549_v4  ;;  %v2239_v4 = vpop.f32.mrf.mxu1  ;;  %v2290_v46 = vpop.f32.mrf.mxu2 }
 0x69e   : > { %v6489_v16 = vadd.f32 %v2551_v7, %v2550_v6 }
 0x6a0   : > { %2554 = vst.msk [vmem:[#allocation3 + $0x8] sm:$0xff] %vm957_vm0, %v6489_v16  ;;  %4874 = vmatmul.msk.f32.vlgmr.msra.gmra.mxu3 %vm957_vm0, %v6489_v16  ;;  %4876 = vmatmul.msk.f32.vlgmr.msra.gmra.mxu0 %vm957_vm0, %v6489_v16 }
 0x6a1   : > { %2746 = vmatpush.msra.mxu3 %v6328_v9  ;;  %2970 = vmatpush.msra.mxu0 %v6337_v31  ;;  %v2185_v31 = vpop.f32.mrf.mxu0 }
 0x6a3   : > { %2747 = vmatpush.msra.mxu3 %v6331_v28  ;;  %2971 = vmatpush.msra.mxu0 %v6347_v20 }
 0x6a4   : > { %v6540_v6 = vpop.f32.mrf.mxu1  ;;  %v6542_v7 = vpop.f32.mrf.mxu2 }
 0x6a5   : > { %2748 = vmatpush.msra.mxu3 %v6349_v10  ;;  %2972 = vmatpush.msra.mxu0 %v6354_v34  ;;  %v2186_v34 = vadd.f32 %v6436_v21, %v2185_v31 }
 0x6a7   : > { %2749 = vmatpush.msra.mxu3 %v6356_v18  ;;  %2973 = vmatpush.msra.mxu0 %v6366_v36 }
 0x6a8   : > { %4875 = vmatmul.msk.f32.vlgmr.msrb.gmra.mxu3 %vm957_vm0, %v6489_v16 }
 0x6a9   : > { %2946 = vmatpush.msrb.mxu3 %v6306_v5  ;;  %v6511_v20 = vpop.f32.mrf.mxu0  ;;  %v2237_v5 = vadd.f32 %v6442_v14, %v2236_v52  ;;  %v2240_v52 = vadd.f32 %v6442_v14, %v2239_v4 }
 0x6ab   : > { %2947 = vmatpush.msrb.mxu3 %v6309_v32 }
 0x6ac   : > { %v6546_v31 = vpop.f32.mrf.mxu2 }
 0x6ad   : > { %2948 = vmatpush.msrb.mxu3 %v6311_v37 }
 0x6af   : > { %2949 = vmatpush.msrb.mxu3 %v6314_v39 }
 0x6b1   : > { %v6513_v24 = vpop.f32.mrf.mxu0 }
 0x6b9   : > { %v6516_v25 = vpop.f32.mrf.mxu0 }
 0x6c1   : > { %v6519_v12 = vpop.f32.mrf.mxu0 }
 0x6c9   : > { %v6521_v2 = vpop.f32.mrf.mxu0 }
 0x71d   : > { %v2627_v40 = vpop.f32.mrf.mxu0 }
 0x71e   : > { %v2628_v43 = vadd.f32 %v6448_v1, %v2627_v40 }
 0x723   : > { %v2579_v33 = vpop.f32.mrf.mxu3 }
 0x724   : > { %v2630_v36 = vadd.f32 %v2579_v33, %v2186_v34  ;;  %v6550_v33 = vpop.f32.mrf.mxu2 }
 0x726   : > { %v4877_v35 = vmul.f32 -1.442695, %v2630_v36 }
 0x728   : > { %5222 = vpow2.f32 %v4877_v35 }
 0x72b   : > { %v2603_v32 = vpop.f32.mrf.mxu3 }
 0x72c   : > { %v2650_v37 = vadd.f32 %v2603_v32, %v2237_v5 }
 0x72e   : > { %v5223_v39 = vpop.eup %5222  ;;  %v4878_v3 = vmul.f32 -1.442695, %v2650_v37 }
 0x72f   : > { %v2634_v11 = vadd.f32 1.0, %v5223_v39 }
 0x730   : > { %5224 = vpow2.f32 %v4878_v3 }
 0x731   : > { %5226 = vrcp.f32 %v2634_v11  ;;  %v2646_v61 = vand.u32 2147483648, %v2634_v11  ;;  %v2644_v8 = vand.u32 2147483647, %v2634_v11  ;;  %vm2640_vm7 = vweird.f32 %v2634_v11 }
 0x733   : > { %v2647_v42 = vor.u32 1.1754944e-38, %v2646_v61  ;;  %vm2645_vm9 = vcmp.eq.f32.partialorder %v2644_v8, 8.507059e+37 }
 0x736   : > { %v5225_v13 = vpop.eup %5224 }
 0x737   : > { %v5227_v56 = vpop.eup %5226  ;;  %v2654_v27 = vadd.f32 1.0, %v5225_v13 }
 0x738   : > { %v2636_v15 = vmul.f32 %v5227_v56, %v2634_v11  ;;  %vm2641_vm6 = vweird.f32 %v5227_v56 }
 0x739   : > { %5228 = vrcp.f32 %v2654_v27  ;;  %vm2642_vm8 = vmor %vm2640_vm7, %vm2641_vm6  ;;  %v2666_v51 = vand.u32 2147483648, %v2654_v27  ;;  %v2664_v53 = vand.u32 2147483647, %v2654_v27  ;;  %vm2660_vm11 = vweird.f32 %v2654_v27 }
 0x73a   : > { %v2637_v23 = vsub.f32 1.0, %v2636_v15 }
 0x73b   : > { %v2667_v57 = vor.u32 1.1754944e-38, %v2666_v51  ;;  %vm2665_vm13 = vcmp.eq.f32.partialorder %v2664_v53, 8.507059e+37 }
 0x73c   : > { %v2638_v22 = vmul.f32 %v5227_v56, %v2637_v23 }
 0x73e   : > { %v2639_v38 = vadd.f32 %v5227_v56, %v2638_v22 }
 0x73f   : > { %v5229_v29 = vpop.eup %5228 }
 0x740   : > { %v2643_v19 = vsel %vm2642_vm8, %v5227_v56, %v2639_v38  ;;  %v2656_v45 = vmul.f32 %v5229_v29, %v2654_v27  ;;  %vm2661_vm10 = vweird.f32 %v5229_v29 }
 0x741   : > { %v2648_v47 = vsel %vm2645_vm9, %v2647_v42, %v2643_v19  ;;  %vm2662_vm12 = vmor %vm2660_vm11, %vm2661_vm10  ;;  %v2291_v19 = vadd.f32 %v6454_v44, %v2290_v46 }
 0x742   : > { %v2670_v49 = vmul.f32 %v2648_v47, %v2628_v43  ;;  %v2657_v50 = vsub.f32 1.0, %v2656_v45 }
 0x744   : > { %v2658_v26 = vmul.f32 %v5229_v29, %v2657_v50  ;;  %v2671_v54 = vadd.f32 %v2670_v49, %v2288_v48 }
 0x746   : > { %v2659_v55 = vadd.f32 %v5229_v29, %v2658_v26  ;;  %5230 = vtanh.f32 %v2671_v54 }
 0x748   : > { %v2663_v58 = vsel %vm2662_vm12, %v5229_v29, %v2659_v55 }
 0x749   : > { %v2668_v59 = vsel %vm2665_vm13, %v2667_v57, %v2663_v58 }
 0x74a   : > { %v2673_v60 = vsub.f32 1.0, %v2668_v59  ;;  %v2675_v0 = vmul.f32 %v2668_v59, %v6489_v16  ;;  %v6544_v16 = vpop.f32.mrf.mxu1 }
 0x74c   : > { %v5231_v62 = vpop.eup %5230 }
 0x74d   : > { %v2674_v63 = vmul.f32 %v5231_v62, %v2673_v60 }
 0x74f   : > { %v6526_v30 = vadd.f32 %v2675_v0, %v2674_v63  ;;  %v2192_v63 = vadd.f32 %v6436_v21, %v6513_v24  ;;  %v2243_v0 = vadd.f32 %v6442_v14, %v6540_v6 }
 0x751   : > { %2678 = vst.msk [vmem:[#allocation3 + $0x10] sm:$0xff] %vm957_vm0, %v6526_v30  ;;  %4879 = vmatmul.msk.f32.vlgmr.msra.gmra.mxu1 %vm957_vm0, %v6526_v30  ;;  %4880 = vmatmul.msk.f32.vlgmr.msra.gmra.mxu2 %vm957_vm0, %v6526_v30 }
 0x752   : > { %4881 = vmatmul.msk.f32.vlgmr.msra.gmra.mxu3 %vm957_vm0, %v6526_v30  ;;  %2994 = vmatpush.msra.mxu1 %v6328_v9  ;;  %v6548_v34 = vpop.f32.mrf.mxu1 }
 0x754   : > { %2995 = vmatpush.msra.mxu1 %v6331_v28  ;;  %v6554_v28 = vpop.f32.mrf.mxu2 }
 0x756   : > { %2996 = vmatpush.msra.mxu1 %v6349_v10  ;;  %v2189_v10 = vadd.f32 %v6436_v21, %v6511_v20 }
 0x758   : > { %2997 = vmatpush.msra.mxu1 %v6356_v18 }
 0x75a   : > { %v6552_v9 = vpop.f32.mrf.mxu1 }
 0x7ce   : > { %v2703_v18 = vpop.f32.mrf.mxu1 }
 0x7cf   : > { %v2754_v36 = vadd.f32 %v2703_v18, %v2189_v10 }
 0x7d1   : > { %v4882_v35 = vmul.f32 -1.442695, %v2754_v36 }
 0x7d3   : > { %5232 = vpow2.f32 %v4882_v35 }
 0x7d4   : > { %v2727_v5 = vpop.f32.mrf.mxu2 }
 0x7d5   : > { %v2774_v32 = vadd.f32 %v2727_v5, %v2240_v52  ;;  %v2751_v8 = vpop.f32.mrf.mxu3 }
 0x7d6   : > { %v2752_v42 = vadd.f32 %v6448_v1, %v2751_v8 }
 0x7d7   : > { %v4883_v37 = vmul.f32 -1.442695, %v2774_v32 }
 0x7d9   : > { %v5233_v39 = vpop.eup %5232  ;;  %5234 = vpow2.f32 %v4883_v37 }
 0x7da   : > { %v2758_v3 = vadd.f32 1.0, %v5233_v39 }
 0x7dc   : > { %5236 = vrcp.f32 %v2758_v3  ;;  %v2770_v20 = vand.u32 2147483648, %v2758_v3  ;;  %v2768_v61 = vand.u32 2147483647, %v2758_v3  ;;  %vm2764_vm15 = vweird.f32 %v2758_v3 }
 0x7de   : > { %v2771_v29 = vor.u32 1.1754944e-38, %v2770_v20  ;;  %vm2769_vm2 = vcmp.eq.f32.partialorder %v2768_v61, 8.507059e+37 }
 0x7df   : > { %v5235_v11 = vpop.eup %5234 }
 0x7e0   : > { %v2778_v13 = vadd.f32 1.0, %v5235_v11 }
 0x7e2   : > { %v5237_v56 = vpop.eup %5236  ;;  %5238 = vrcp.f32 %v2778_v13  ;;  %v2790_v48 = vand.u32 2147483648, %v2778_v13  ;;  %v2788_v50 = vand.u32 2147483647, %v2778_v13  ;;  %vm2784_vm4 = vweird.f32 %v2778_v13 }
 0x7e3   : > { %v2760_v27 = vmul.f32 %v5237_v56, %v2758_v3  ;;  %vm2765_vm14 = vweird.f32 %v5237_v56 }
 0x7e4   : > { %vm2766_vm1 = vmor %vm2764_vm15, %vm2765_vm14  ;;  %v2791_v53 = vor.u32 1.1754944e-38, %v2790_v48  ;;  %vm2789_vm6 = vcmp.eq.f32.partialorder %v2788_v50, 8.507059e+37 }
 0x7e5   : > { %v2761_v15 = vsub.f32 1.0, %v2760_v27 }
 0x7e7   : > { %v2762_v23 = vmul.f32 %v5237_v56, %v2761_v15 }
 0x7e8   : > { %v5239_v22 = vpop.eup %5238 }
 0x7e9   : > { %v2780_v40 = vmul.f32 %v5239_v22, %v2778_v13  ;;  %v2763_v38 = vadd.f32 %v5237_v56, %v2762_v23  ;;  %vm2785_vm3 = vweird.f32 %v5239_v22 }
 0x7ea   : > { %vm2786_vm5 = vmor %vm2784_vm4, %vm2785_vm3 }
 0x7eb   : > { %v2781_v41 = vsub.f32 1.0, %v2780_v40  ;;  %v2767_v43 = vsel %vm2766_vm1, %v5237_v56, %v2763_v38 }
 0x7ec   : > { %v2772_v45 = vsel %vm2769_vm2, %v2771_v29, %v2767_v43  ;;  %v2294_v29 = vadd.f32 %v6454_v44, %v6542_v7  ;;  %v2246_v7 = vadd.f32 %v6442_v14, %v6544_v16  ;;  %v3079_v16 = vld [vmem:[#allocation13 + $0x28] sm:$0xff] }
 0x7ed   : > { %v2782_v47 = vmul.f32 %v5239_v22, %v2781_v41  ;;  %v2794_v49 = vmul.f32 %v2772_v45, %v2752_v42 }
 0x7ef   : > { %v2783_v51 = vadd.f32 %v5239_v22, %v2782_v47  ;;  %v2795_v26 = vadd.f32 %v2794_v49, %v2291_v19 }
 0x7f1   : > { %v2787_v54 = vsel %vm2786_vm5, %v5239_v22, %v2783_v51  ;;  %5240 = vtanh.f32 %v2795_v26 }
 0x7f2   : > { %v2792_v55 = vsel %vm2789_vm6, %v2791_v53, %v2787_v54 }
 0x7f3   : > { %v2797_v57 = vsub.f32 1.0, %v2792_v55  ;;  %v2799_v60 = vmul.f32 %v2792_v55, %v6526_v30 }
 0x7f7   : > { %v5241_v58 = vpop.eup %5240 }
 0x7f8   : > { %v2798_v59 = vmul.f32 %v5241_v58, %v2797_v57  ;;  %v2195_v58 = vadd.f32 %v6436_v21, %v6516_v25  ;;  %v3051_v21 = vld [vmem:[#allocation13] sm:$0xff] }
 0x7f9   : > { %v3078_v25 = vld [vmem:[#allocation13 + $0x20] sm:$0xff] }
 0x7fa   : > { %v2800_v62 = vadd.f32 %v2799_v60, %v2798_v59  ;;  %v3054_v59 = vld [vmem:[#allocation13 + $0x18] sm:$0xff] }
 0x7fb   : > { %v3081_v60 = vld [vmem:[#allocation13 + $0x38] sm:$0xff]  ;;  %3070 = vmatpush.msra.mxu2 %v3054_v59 }
 0x7fc   : > { %2802 = vst.msk [vmem:[#allocation3 + $0x18] sm:$0xff] %vm957_vm0, %v2800_v62  ;;  %4884 = vmatmul.msk.f32.vlgmr.msrb.gmra.mxu0 %vm957_vm0, %v2800_v62  ;;  %4885 = vmatmul.msk.f32.vlgmr.msrb.gmra.mxu1 %vm957_vm0, %v2800_v62 }
 0x7fd   : > { %4886 = vmatmul.msk.f32.vlgmr.msrb.gmra.mxu2 %vm957_vm0, %v2800_v62  ;;  %3094 = vmatpush.msra.mxu3 %v3081_v60 }
 0x7fe   : > { %3194 = vmatpush.msrb.mxu1 %v3054_v59 }
 0x879   : > { %v2827_v4 = vpop.f32.mrf.mxu0  ;;  %v2851_v46 = vpop.f32.mrf.mxu1 }
 0x87a   : > { %v2878_v10 = vadd.f32 %v2827_v4, %v2192_v63  ;;  %v2898_v18 = vadd.f32 %v2851_v46, %v2243_v0  ;;  %v3053_v0 = vld [vmem:[#allocation13 + $0x10] sm:$0xff] }
 0x87b   : > { %v3080_v4 = vld [vmem:[#allocation13 + $0x30] sm:$0xff]  ;;  %3071 = vmatpush.msra.mxu2 %v3053_v0  ;;  %3195 = vmatpush.msrb.mxu1 %v3053_v0 }
 0x87c   : > { %v4887_v30 = vmul.f32 -1.442695, %v2878_v10  ;;  %v4888_v36 = vmul.f32 -1.442695, %v2898_v18  ;;  %v3104_v46 = vld [vmem:[#allocation13 + $0x50] sm:$0xff]  ;;  %v3052_v18 = vld [vmem:[#allocation13 + $0x8] sm:$0xff]  ;;  %3095 = vmatpush.msra.mxu3 %v3080_v4 }
 0x87d   : > { %3072 = vmatpush.msra.mxu2 %v3052_v18  ;;  %3196 = vmatpush.msrb.mxu1 %v3052_v18 }
 0x87e   : > { %5242 = vpow2.f32 %v4887_v30  ;;  %v3103_v30 = vld [vmem:[#allocation13 + $0x48] sm:$0xff]  ;;  %3096 = vmatpush.msra.mxu3 %v3079_v16 }
 0x87f   : > { %5244 = vpow2.f32 %v4888_v36  ;;  %3073 = vmatpush.msra.mxu2 %v3051_v21  ;;  %3197 = vmatpush.msrb.mxu1 %v3051_v21 }
 0x880   : > { %v2875_v20 = vpop.f32.mrf.mxu2  ;;  %3097 = vmatpush.msra.mxu3 %v3078_v25 }
 0x881   : > { %v2876_v22 = vadd.f32 %v6448_v1, %v2875_v20  ;;  %3218 = vmatpush.msrb.mxu2 %v3081_v60  ;;  %v6609_v60 = vld [vmem:[#allocation3 + $0x10] sm:$0xff] }
 0x883   : > { %3219 = vmatpush.msrb.mxu2 %v3080_v4  ;;  %v6628_v4 = vld [vmem:[%s7155_s0] ss:$0 sm:$0xff] }
 0x884   : > { %v5243_v35 = vpop.eup %5242 }
 0x885   : > { %v5245_v52 = vpop.eup %5244  ;;  %v2882_v5 = vadd.f32 1.0, %v5243_v35  ;;  %v3102_v35 = vld [vmem:[#allocation13 + $0x40] sm:$0xff]  ;;  %3220 = vmatpush.msrb.mxu2 %v3079_v16 }
 0x886   : > { %v2902_v32 = vadd.f32 1.0, %v5245_v52 }
 0x887   : > { %5246 = vrcp.f32 %v2882_v5  ;;  %v2894_v13 = vand.u32 2147483648, %v2882_v5  ;;  %v2892_v27 = vand.u32 2147483647, %v2882_v5  ;;  %vm2888_vm8 = vweird.f32 %v2882_v5  ;;  %3221 = vmatpush.msrb.mxu2 %v3078_v25 }
 0x888   : > { %5248 = vrcp.f32 %v2902_v32  ;;  %v2914_v41 = vand.u32 2147483648, %v2902_v32  ;;  %vm2908_vm12 = vweird.f32 %v2902_v32  ;;  %v2912_v43 = vand.u32 2147483647, %v2902_v32 }
 0x889   : > { %v2895_v61 = vor.u32 1.1754944e-38, %v2894_v13  ;;  %vm2893_vm10 = vcmp.eq.f32.partialorder %v2892_v27, 8.507059e+37  ;;  %v3307_v13 = vld [vmem:[#allocation16] sm:$0xff] }
 0x88a   : > { %v2915_v47 = vor.u32 1.1754944e-38, %v2914_v41  ;;  %vm2913_vm14 = vcmp.eq.f32.partialorder %v2912_v43, 8.507059e+37 }
 0x88d   : > { %v5247_v37 = vpop.eup %5246 }
 0x88e   : > { %v5249_v39 = vpop.eup %5248  ;;  %v2884_v24 = vmul.f32 %v5247_v37, %v2882_v5  ;;  %vm2889_vm7 = vweird.f32 %v5247_v37 }
 0x88f   : > { %v2904_v3 = vmul.f32 %v5249_v39, %v2902_v32  ;;  %vm2890_vm9 = vmor %vm2888_vm8, %vm2889_vm7  ;;  %vm2909_vm11 = vweird.f32 %v5249_v39 }
 0x890   : > { %v2885_v11 = vsub.f32 1.0, %v2884_v24  ;;  %vm2910_vm13 = vmor %vm2908_vm12, %vm2909_vm11  ;;  %v3310_v24 = vld [vmem:[#allocation16 + $0x18] sm:$0xff] }
 0x891   : > { %v2905_v6 = vsub.f32 1.0, %v2904_v3  ;;  %v3309_v3 = vld [vmem:[#allocation16 + $0x10] sm:$0xff] }
 0x892   : > { %v2886_v56 = vmul.f32 %v5247_v37, %v2885_v11  ;;  %v3308_v11 = vld [vmem:[#allocation16 + $0x8] sm:$0xff] }
 0x893   : > { %v2906_v15 = vmul.f32 %v5249_v39, %v2905_v6 }
 0x894   : > { %v2887_v23 = vadd.f32 %v5247_v37, %v2886_v56 }
 0x895   : > { %v2907_v40 = vadd.f32 %v5249_v39, %v2906_v15 }
 0x896   : > { %v2891_v8 = vsel %vm2890_vm9, %v5247_v37, %v2887_v23 }
 0x897   : > { %v2896_v38 = vsel %vm2893_vm10, %v2895_v61, %v2891_v8  ;;  %v2911_v45 = vsel %vm2910_vm13, %v5249_v39, %v2907_v40 }
 0x898   : > { %v2918_v42 = vmul.f32 %v2896_v38, %v2876_v22  ;;  %v2916_v48 = vsel %vm2913_vm14, %v2915_v47, %v2911_v45  ;;  %v2297_v45 = vadd.f32 %v6454_v44, %v6546_v31  ;;  %v6601_v31 = vld [vmem:[#allocation3] sm:$0xff] }
 0x899   : > { %v2921_v49 = vsub.f32 1.0, %v2916_v48  ;;  %v2923_v26 = vmul.f32 %v2916_v48, %v2800_v62  ;;  %v3105_v62 = vld [vmem:[#allocation13 + $0x58] sm:$0xff] }
 0x89a   : > { %v2919_v19 = vadd.f32 %v2918_v42, %v2294_v29  ;;  %3118 = vmatpush.msrb.mxu0 %v3105_v62 }
 0x89c   : > { %5250 = vtanh.f32 %v2919_v19  ;;  %3119 = vmatpush.msrb.mxu0 %v3104_v46 }
 0x89e   : > { %3120 = vmatpush.msrb.mxu0 %v3103_v30 }
 0x8a0   : > { %3121 = vmatpush.msrb.mxu0 %v3102_v35 }
 0x8a2   : > { %v5251_v50 = vpop.eup %5250 }
 0x8a3   : > { %v2922_v51 = vmul.f32 %v5251_v50, %v2921_v49 }
 0x8a5   : > { %v6573_v53 = vadd.f32 %v2923_v26, %v2922_v51 }
 0x8a7   : > { %2926 = vst.msk [vmem:[#allocation3 + $0x20] sm:$0xff] %vm957_vm0, %v6573_v53  ;;  %4889 = vmatmul.msk.f32.vlgmr.msrb.gmra.mxu3 %vm957_vm0, %v6573_v53  ;;  %4890 = vmatmul.msk.f32.vlgmr.msra.gmra.mxu0 %vm957_vm0, %v6573_v53 }
 0x8a8   : > { %4891 = vmatmul.msk.f32.vlgmr.msra.gmra.mxu1 %vm957_vm0, %v6573_v53  ;;  %3242 = vmatpush.msrb.mxu3 %v3105_v62  ;;  %v6613_v62 = vld [vmem:[#allocation3 + $0x18] sm:$0xff] }
 0x8a9   : > { %3351 = vmatpush.msra.mxu0 %v3310_v24  ;;  %v3434_v24 = vld [vmem:[#allocation16 + $0x50] sm:$0xff] }
 0x8aa   : > { %3243 = vmatpush.msrb.mxu3 %v3104_v46  ;;  %v2198_v46 = vadd.f32 %v6628_v4, %v6519_v12  ;;  %v3384_v12 = vld [vmem:[#allocation16 + $0x38] sm:$0xff] }
 0x8ab   : > { %3352 = vmatpush.msra.mxu0 %v3309_v3  ;;  %3402 = vmatpush.msra.mxu1 %v3384_v12  ;;  %v6639_v3 = vld [vmem:[#allocation18 + $0x8] sm:$0xff] }
 0x8ac   : > { %3244 = vmatpush.msrb.mxu3 %v3103_v30 }
 0x8ad   : > { %3353 = vmatpush.msra.mxu0 %v3308_v11  ;;  %v3382_v11 = vld [vmem:[#allocation16 + $0x28] sm:$0xff] }
 0x8ae   : > { %3245 = vmatpush.msrb.mxu3 %v3102_v35 }
 0x8af   : > { %3354 = vmatpush.msra.mxu0 %v3307_v13  ;;  %v6642_v13 = vld [vmem:[#allocation18] sm:$0xff] }
 0x924   : > { %v2975_v54 = vpop.f32.mrf.mxu0 }
 0x925   : > { %v3022_v55 = vadd.f32 %v2975_v54, %v2246_v7  ;;  %v2999_v40 = vpop.f32.mrf.mxu1 }
 0x926   : > { %v3000_v41 = vadd.f32 %v6448_v1, %v2999_v40 }
 0x927   : > { %v4893_v57 = vmul.f32 -1.442695, %v3022_v55 }
 0x929   : > { %5252 = vpow2.f32 %v4893_v57 }
 0x92a   : > { %v2951_v63 = vpop.f32.mrf.mxu3 }
 0x92b   : > { %v3002_v10 = vadd.f32 %v2951_v63, %v2195_v58  ;;  %v6617_v63 = vld [vmem:[#allocation3 + $0x20] sm:$0xff] }
 0x92d   : > { %v4892_v36 = vmul.f32 -1.442695, %v3002_v10  ;;  %v2249_v10 = vadd.f32 %v6442_v14, %v6548_v34  ;;  %v6637_v14 = vld [vmem:[#allocation18 + $0x10] sm:$0xff] }
 0x92e   : > { %v3383_v34 = vld [vmem:[#allocation16 + $0x30] sm:$0xff] }
 0x92f   : > { %v5253_v52 = vpop.eup %5252  ;;  %5254 = vpow2.f32 %v4892_v36  ;;  %3403 = vmatpush.msra.mxu1 %v3383_v34 }
 0x930   : > { %v3026_v5 = vadd.f32 1.0, %v5253_v52 }
 0x931   : > { %3404 = vmatpush.msra.mxu1 %v3382_v11 }
 0x932   : > { %5256 = vrcp.f32 %v3026_v5  ;;  %v3038_v47 = vand.u32 2147483648, %v3026_v5  ;;  %vm3032_vm5 = vweird.f32 %v3026_v5  ;;  %v3036_v49 = vand.u32 2147483647, %v3026_v5 }
 0x934   : > { %v3039_v26 = vor.u32 1.1754944e-38, %v3038_v47  ;;  %vm3037_vm7 = vcmp.eq.f32.partialorder %v3036_v49, 8.507059e+37 }
 0x935   : > { %v5255_v32 = vpop.eup %5254 }
 0x936   : > { %v3006_v37 = vadd.f32 1.0, %v5255_v32 }
 0x938   : > { %5258 = vrcp.f32 %v3006_v37  ;;  %v5257_v39 = vpop.eup %5256  ;;  %v3018_v23 = vand.u32 2147483648, %v3006_v37  ;;  %v3016_v22 = vand.u32 2147483647, %v3006_v37  ;;  %vm3012_vm1 = vweird.f32 %v3006_v37 }
 0x939   : > { %v3028_v6 = vmul.f32 %v5257_v39, %v3026_v5  ;;  %vm3033_vm4 = vweird.f32 %v5257_v39 }
 0x93a   : > { %v3019_v29 = vor.u32 1.1754944e-38, %v3018_v23  ;;  %vm3017_vm3 = vcmp.eq.f32.partialorder %v3016_v22, 8.507059e+37  ;;  %vm3034_vm6 = vmor %vm3032_vm5, %vm3033_vm4 }
 0x93b   : > { %v3029_v15 = vsub.f32 1.0, %v3028_v6  ;;  %v3433_v6 = vld [vmem:[#allocation16 + $0x48] sm:$0xff] }
 0x93d   : > { %v3030_v8 = vmul.f32 %v5257_v39, %v3029_v15  ;;  %v3432_v15 = vld [vmem:[#allocation16 + $0x40] sm:$0xff] }
 0x93e   : > { %v5259_v56 = vpop.eup %5258 }
 0x93f   : > { %v3008_v27 = vmul.f32 %v5259_v56, %v3006_v37  ;;  %vm3013_vm15 = vweird.f32 %v5259_v56  ;;  %v3031_v43 = vadd.f32 %v5257_v39, %v3030_v8  ;;  %v6634_v37 = vld [vmem:[#allocation18 + $0x18] sm:$0xff] }
 0x940   : > { %vm3014_vm2 = vmor %vm3012_vm1, %vm3013_vm15 }
 0x941   : > { %v3009_v20 = vsub.f32 1.0, %v3008_v27  ;;  %v3035_v51 = vsel %vm3034_vm6, %v5257_v39, %v3031_v43  ;;  %v3435_v39 = vld [vmem:[#allocation16 + $0x58] sm:$0xff] }
 0x942   : > { %v3040_v7 = vsel %vm3037_vm7, %v3039_v26, %v3035_v51 }
 0x943   : > { %v3010_v61 = vmul.f32 %v5259_v56, %v3009_v20  ;;  %v3045_v54 = vsub.f32 1.0, %v3040_v7  ;;  %v3047_v58 = vmul.f32 %v3040_v7, %v6573_v53  ;;  %v6605_v53 = vld [vmem:[#allocation3 + $0x8] sm:$0xff] }
 0x945   : > { %v3011_v38 = vadd.f32 %v5259_v56, %v3010_v61 }
 0x947   : > { %v3015_v42 = vsel %vm3014_vm2, %v5259_v56, %v3011_v38  ;;  %v3381_v56 = vld [vmem:[#allocation16 + $0x20] sm:$0xff] }
 0x948   : > { %v3020_v19 = vsel %vm3017_vm3, %v3019_v29, %v3015_v42  ;;  %3405 = vmatpush.msra.mxu1 %v3381_v56 }
 0x949   : > { %v3042_v48 = vmul.f32 %v3020_v19, %v3000_v41 }
 0x94b   : > { %v3043_v50 = vadd.f32 %v3042_v48, %v2297_v45 }
 0x94d   : > { %5260 = vtanh.f32 %v3043_v50  ;;  %v2300_v50 = vadd.f32 %v6454_v44, %v6550_v33 }
 0x953   : > { %v5261_v55 = vpop.eup %5260 }
 0x954   : > { %v3046_v57 = vmul.f32 %v5261_v55, %v3045_v54 }
 0x956   : > { %v6591_v59 = vadd.f32 %v3047_v58, %v3046_v57 }
 0x958   : > { %3050 = vst.msk [vmem:[#allocation3 + $0x28] sm:$0xff] %vm957_vm0, %v6591_v59  ;;  %4894 = vmatmul.msk.f32.vlgmr.msra.gmra.mxu2 %vm957_vm0, %v6591_v59  ;;  %4895 = vmatmul.msk.f32.vlgmr.msra.gmra.mxu3 %vm957_vm0, %v6591_v59 }
 0x959   : > { %4896 = vmatmul.msk.f32.vlgmr.msrb.gmra.mxu0 %vm957_vm0, %v6591_v59  ;;  %3499 = vmatpush.msra.mxu3 %v6634_v37 }
 0x95a   : > { %3453 = vmatpush.msra.mxu2 %v3435_v39  ;;  %v6755_v39 = vld [vmem:[%s7100_s11] ss:$0 sm:$0xff] }
 0x95b   : > { %3500 = vmatpush.msra.mxu3 %v6637_v14 }
 0x95c   : > { %3454 = vmatpush.msra.mxu2 %v3434_v24 }
 0x95d   : > { %3501 = vmatpush.msra.mxu3 %v6639_v3 }
 0x95e   : > { %3455 = vmatpush.msra.mxu2 %v3433_v6 }
 0x95f   : > { %v6621_v0 = vld [vmem:[#allocation3 + $0x28] sm:$0xff]  ;;  %3502 = vmatpush.msra.mxu3 %v6642_v13 }
 0x960   : > { %3456 = vmatpush.msra.mxu2 %v3432_v15 }
 0x961   : > { %4904 = vmatmul.msk.f32.vlgmr.msra.gmra.mxu0 %vm957_vm0, %v6601_v31 }
 0x969   : > { %4905 = vmatmul.msk.f32.gmra.mxu0 %vm957_vm0, %v6605_v53 }
 0x971   : > { %4906 = vmatmul.msk.f32.gmra.mxu0 %vm957_vm0, %v6609_v60 }
 0x979   : > { %4907 = vmatmul.msk.f32.gmra.mxu0 %vm957_vm0, %v6613_v62 }
 0x981   : > { %4908 = vmatmul.msk.f32.gmra.mxu0 %vm957_vm0, %v6617_v63 }
 0x989   : > { %4909 = vmatmul.msk.f32.gmra.mxu0 %vm957_vm0, %v6621_v0 }
 0x9d6   : > { %v3123_v41 = vpop.f32.mrf.mxu0 }
 0x9d7   : > { %v3124_v45 = vadd.f32 %v6448_v1, %v3123_v41  ;;  %v6649_v1 = vld [vmem:[#allocation18 + $0x58] sm:$0xff] }
 0x9d8   : > { %3772 = vmatpush.msrb.mxu0 %v6649_v1 }
 0x9db   : > { %v3075_v18 = vpop.f32.mrf.mxu2  ;;  %v3099_v16 = vpop.f32.mrf.mxu3 }
 0x9dc   : > { %v3126_v30 = vadd.f32 %v3075_v18, %v2198_v46  ;;  %v3146_v36 = vadd.f32 %v3099_v16, %v2249_v10  ;;  %v6652_v18 = vld [vmem:[#allocation18 + $0x50] sm:$0xff] }
 0x9dd   : > { %3773 = vmatpush.msrb.mxu0 %v6652_v18 }
 0x9de   : > { %v4897_v21 = vmul.f32 -1.442695, %v3126_v30  ;;  %v4898_v25 = vmul.f32 -1.442695, %v3146_v36  ;;  %v6658_v30 = vld [vmem:[#allocation18 + $0x38] sm:$0xff]  ;;  %v6668_v36 = vld [vmem:[#allocation18 + $0x30] sm:$0xff] }
 0x9e0   : > { %5262 = vpow2.f32 %v4897_v21  ;;  %v6675_v21 = vld [vmem:[#allocation18 + $0x28] sm:$0xff] }
 0x9e1   : > { %5264 = vpow2.f32 %v4898_v25  ;;  %v6677_v25 = vld [vmem:[#allocation18 + $0x40] sm:$0xff] }
 0x9e6   : > { %v5263_v35 = vpop.eup %5262 }
 0x9e7   : > { %v5265_v52 = vpop.eup %5264  ;;  %v3130_v5 = vadd.f32 1.0, %v5263_v35 }
 0x9e8   : > { %v3150_v32 = vadd.f32 1.0, %v5265_v52  ;;  %v6687_v52 = vld [vmem:[#allocation18 + $0x20] sm:$0xff] }
 0x9e9   : > { %5266 = vrcp.f32 %v3130_v5  ;;  %v3142_v8 = vand.u32 2147483648, %v3130_v5  ;;  %v3140_v29 = vand.u32 2147483647, %v3130_v5  ;;  %vm3136_vm9 = vweird.f32 %v3130_v5 }
 0x9ea   : > { %5268 = vrcp.f32 %v3150_v32  ;;  %v3162_v26 = vand.u32 2147483648, %v3150_v32  ;;  %vm3156_vm13 = vweird.f32 %v3150_v32  ;;  %v3160_v7 = vand.u32 2147483647, %v3150_v32 }
 0x9eb   : > { %v3143_v19 = vor.u32 1.1754944e-38, %v3142_v8  ;;  %vm3141_vm11 = vcmp.eq.f32.partialorder %v3140_v29, 8.507059e+37 }
 0x9ec   : > { %v3163_v57 = vor.u32 1.1754944e-38, %v3162_v26  ;;  %vm3161_vm15 = vcmp.eq.f32.partialorder %v3160_v7, 8.507059e+37  ;;  %v5370_v26 = vld [vmem:[#allocation15] ss:$0 sm:$0xff] }
 0x9ef   : > { %v5267_v27 = vpop.eup %5266 }
 0x9f0   : > { %v5269_v20 = vpop.eup %5268  ;;  %v3132_v23 = vmul.f32 %v5267_v27, %v3130_v5  ;;  %vm3137_vm8 = vweird.f32 %v5267_v27 }
 0x9f1   : > { %v3152_v61 = vmul.f32 %v5269_v20, %v3150_v32  ;;  %vm3138_vm10 = vmor %vm3136_vm9, %vm3137_vm8  ;;  %vm3157_vm12 = vweird.f32 %v5269_v20 }
 0x9f2   : > { %v3133_v22 = vsub.f32 1.0, %v3132_v23  ;;  %vm3158_vm14 = vmor %vm3156_vm13, %vm3157_vm12 }
 0x9f3   : > { %v3153_v40 = vsub.f32 1.0, %v3152_v61 }
 0x9f4   : > { %v3134_v38 = vmul.f32 %v5267_v27, %v3133_v22 }
 0x9f5   : > { %v3154_v42 = vmul.f32 %v5269_v20, %v3153_v40 }
 0x9f6   : > { %v3135_v43 = vadd.f32 %v5267_v27, %v3134_v38 }
 0x9f7   : > { %v3155_v49 = vadd.f32 %v5269_v20, %v3154_v42 }
 0x9f8   : > { %v3139_v47 = vsel %vm3138_vm10, %v5267_v27, %v3135_v43  ;;  %v6761_v27 = vld [vmem:[%s7100_s11 + $0x1] ss:$0 sm:$0xff] }
 0x9f9   : > { %v3144_v48 = vsel %vm3141_vm11, %v3143_v19, %v3139_v47  ;;  %v3159_v55 = vsel %vm3158_vm14, %v5269_v20, %v3155_v49 }
 0x9fa   : > { %v3166_v51 = vmul.f32 %v3144_v48, %v3124_v45  ;;  %v3164_v58 = vsel %vm3161_vm15, %v3163_v57, %v3159_v55  ;;  %v5371_v55 = vld [vmem:[%s7155_s0 + $0x2] ss:$0 sm:$0xff] }
 0x9fb   : > { %v3169_v46 = vsub.f32 1.0, %v3164_v58  ;;  %v3171_v33 = vmul.f32 %v3164_v58, %v6591_v59  ;;  %v6670_v59 = vld [vmem:[#allocation18 + $0x48] sm:$0xff]  ;;  %v2303_v57 = vadd.f32 %v5371_v55, %v6554_v28 }
 0x9fc   : > { %v3167_v54 = vadd.f32 %v3166_v51, %v2300_v50  ;;  %3774 = vmatpush.msrb.mxu0 %v6670_v59 }
 0x9fe   : > { %5270 = vtanh.f32 %v3167_v54  ;;  %3775 = vmatpush.msrb.mxu0 %v6677_v25 }
 0xa00   : > { %3952 = vmatpush.msra.mxu0 %v6634_v37 }
 0xa02   : > { %3953 = vmatpush.msra.mxu0 %v6637_v14 }
 0xa04   : > { %v5271_v10 = vpop.eup %5270  ;;  %3954 = vmatpush.msra.mxu0 %v6639_v3 }
 0xa05   : > { %v3170_v44 = vmul.f32 %v5271_v10, %v3169_v46 }
 0xa06   : > { %3955 = vmatpush.msra.mxu0 %v6642_v13 }
 0xa07   : > { %v6656_v16 = vadd.f32 %v3171_v33, %v3170_v44 }
 0xa09   : > { %3174 = vst.msk [vmem:[#allocation3 + $0x30] sm:$0xff] %vm957_vm0, %v6656_v16  ;;  %4899 = vmatmul.msk.f32.vlgmr.msrb.gmra.mxu1 %vm957_vm0, %v6656_v16  ;;  %4900 = vmatmul.msk.f32.vlgmr.msrb.gmra.mxu2 %vm957_vm0, %v6656_v16 }
 0xa0a   : > { %4901 = vmatmul.msk.f32.vlgmr.msrb.gmra.mxu3 %vm957_vm0, %v6656_v16  ;;  %3842 = vmatpush.msrb.mxu1 %v6634_v37 }
 0xa0b   : > { %3524 = vmatpush.msrb.mxu3 %v6658_v30  ;;  %3862 = vmatpush.msrb.mxu2 %v6658_v30 }
 0xa0c   : > { %3843 = vmatpush.msrb.mxu1 %v6637_v14 }
 0xa0d   : > { %3525 = vmatpush.msrb.mxu3 %v6668_v36  ;;  %3863 = vmatpush.msrb.mxu2 %v6668_v36 }
 0xa0e   : > { %3844 = vmatpush.msrb.mxu1 %v6639_v3 }
 0xa0f   : > { %3526 = vmatpush.msrb.mxu3 %v6675_v21  ;;  %3864 = vmatpush.msrb.mxu2 %v6675_v21 }
 0xa10   : > { %v3305_v35 = vld [vmem:[#allocation3 + $0x30] sm:$0xff]  ;;  %3845 = vmatpush.msrb.mxu1 %v6642_v13 }
 0xa11   : > { %4910 = vmatmul.msk.f32.gmra.mxu0 %vm957_vm0, %v3305_v35  ;;  %4913 = vmatmul.msk.f32.vlgmr.msra.gmra.mxu1 %vm957_vm0, %v6601_v31 }
 0xa12   : > { %4922 = vmatmul.msk.f32.vlgmr.msra.gmra.mxu2 %vm957_vm0, %v6601_v31  ;;  %3503 = vmatmul.f32.vlgmr.msra.gmra.mxu3 %v5709_v17 }
 0xa13   : > { %3527 = vmatpush.msrb.mxu3 %v6687_v52  ;;  %3865 = vmatpush.msrb.mxu2 %v6687_v52 }
 0xa14   : > { %3972 = vmatpush.msra.mxu1 %v6658_v30 }
 0xa15   : > { %3552 = vmatpush.msra.mxu3 %v6649_v1  ;;  %3992 = vmatpush.msra.mxu2 %v6649_v1 }
 0xa16   : > { %3973 = vmatpush.msra.mxu1 %v6668_v36 }
 0xa17   : > { %3553 = vmatpush.msra.mxu3 %v6652_v18  ;;  %3993 = vmatpush.msra.mxu2 %v6652_v18 }
 0xa18   : > { %3974 = vmatpush.msra.mxu1 %v6675_v21 }
 0xa19   : > { %3554 = vmatpush.msra.mxu3 %v6670_v59  ;;  %4914 = vmatmul.msk.f32.gmra.mxu1 %vm957_vm0, %v6605_v53 }
 0xa1a   : > { %3994 = vmatpush.msra.mxu2 %v6670_v59  ;;  %3528 = vmatmul.f32.vlgmr.msrb.gmra.mxu3 %v5709_v17 }
 0xa1b   : > { %4923 = vmatmul.msk.f32.gmra.mxu2 %vm957_vm0, %v6605_v53  ;;  %3555 = vmatpush.msra.mxu3 %v6677_v25 }
 0xa1c   : > { %3975 = vmatpush.msra.mxu1 %v6687_v52  ;;  %3995 = vmatpush.msra.mxu2 %v6677_v25 }
 0xa1d   : > { %3622 = vmatpush.msrb.mxu3 %v6634_v37 }
 0xa1f   : > { %3623 = vmatpush.msrb.mxu3 %v6637_v14 }
 0xa21   : > { %3624 = vmatpush.msrb.mxu3 %v6639_v3  ;;  %4915 = vmatmul.msk.f32.gmra.mxu1 %vm957_vm0, %v6609_v60 }
 0xa22   : > { %3556 = vmatmul.f32.vlgmr.msra.gmra.mxu3 %v5709_v17  ;;  %v2201_v17 = vadd.f32 %v6628_v4, %v6521_v2  ;;  %v3356_v4 = vpop.f32.mrf.mxu0 }
 0xa23   : > { %4924 = vmatmul.msk.f32.gmra.mxu2 %vm957_vm0, %v6609_v60  ;;  %3625 = vmatpush.msrb.mxu3 %v6642_v13  ;;  %v3357_v24 = vadd.f32 %v6755_v39, %v3356_v4 }
 0xa25   : > { %3642 = vmatpush.msra.mxu3 %v6658_v30 }
 0xa27   : > { %3643 = vmatpush.msra.mxu3 %v6668_v36 }
 0xa29   : > { %3644 = vmatpush.msra.mxu3 %v6675_v21  ;;  %4916 = vmatmul.msk.f32.gmra.mxu1 %vm957_vm0, %v6613_v62 }
 0xa2b   : > { %4925 = vmatmul.msk.f32.gmra.mxu2 %vm957_vm0, %v6613_v62  ;;  %3645 = vmatpush.msra.mxu3 %v6687_v52  ;;  %v5369_v62 = vld [vmem:[%s7155_s0 + $0x1] ss:$0 sm:$0xff] }
 0xa31   : > { %4917 = vmatmul.msk.f32.gmra.mxu1 %vm957_vm0, %v6617_v63 }
 0xa33   : > { %4926 = vmatmul.msk.f32.gmra.mxu2 %vm957_vm0, %v6617_v63  ;;  %v2252_v63 = vadd.f32 %v5369_v62, %v6552_v9 }
 0xa39   : > { %4918 = vmatmul.msk.f32.gmra.mxu1 %vm957_vm0, %v6621_v0 }
 0xa3b   : > { %4927 = vmatmul.msk.f32.gmra.mxu2 %vm957_vm0, %v6621_v0 }
 0xa41   : > { %4919 = vmatmul.msk.f32.gmra.mxu1 %vm957_vm0, %v3305_v35 }
 0xa43   : > { %4928 = vmatmul.msk.f32.gmra.mxu2 %vm957_vm0, %v3305_v35 }
 0xa86   : > { %v3199_v31 = vpop.f32.mrf.mxu1 }
 0xa87   : > { %v3250_v53 = vadd.f32 %v3199_v31, %v2201_v17 }
 0xa89   : > { %v4902_v60 = vmul.f32 -1.442695, %v3250_v53 }
 0xa8b   : > { %5272 = vpow2.f32 %v4902_v60 }
 0xa8c   : > { %v3223_v5 = vpop.f32.mrf.mxu2 }
 0xa8d   : > { %v3270_v32 = vadd.f32 %v3223_v5, %v2252_v63  ;;  %v3247_v0 = vpop.f32.mrf.mxu3 }
 0xa8e   : > { %v3407_v20 = vpop.f32.mrf.mxu1  ;;  %v3248_v7 = vadd.f32 %v5370_v26, %v3247_v0  ;;  %v6771_v0 = vld [vmem:[%s7101_s12] ss:$0 sm:$0xff] }
 0xa8f   : > { %v4903_v12 = vmul.f32 -1.442695, %v3270_v32  ;;  %v3408_v22 = vadd.f32 %v6761_v27, %v3407_v20 }
 0xa91   : > { %v5273_v2 = vpop.eup %5272  ;;  %5274 = vpow2.f32 %v4903_v12 }
 0xa92   : > { %v3254_v34 = vadd.f32 1.0, %v5273_v2 }
 0xa94   : > { %5276 = vrcp.f32 %v3254_v34  ;;  %v3266_v38 = vand.u32 2147483648, %v3254_v34  ;;  %v3264_v42 = vand.u32 2147483647, %v3254_v34  ;;  %vm3260_vm2 = vweird.f32 %v3254_v34 }
 0xa95   : > { %v3504_v11 = vpop.f32.mrf.mxu3 }
 0xa96   : > { %v3560_v6 = vadd.f32 %v3504_v11, %v3357_v24  ;;  %v3267_v49 = vor.u32 1.1754944e-38, %v3266_v38  ;;  %vm3265_vm4 = vcmp.eq.f32.partialorder %v3264_v42, 8.507059e+37 }
 0xa97   : > { %v5275_v9 = vpop.eup %5274 }
 0xa98   : > { %v3274_v56 = vadd.f32 1.0, %v5275_v9  ;;  %v4930_v15 = vmul.f32 -1.442695, %v3560_v6 }
 0xa9a   : > { %v5277_v23 = vpop.eup %5276  ;;  %5278 = vrcp.f32 %v3274_v56  ;;  %v3286_v10 = vand.u32 2147483648, %v3274_v56  ;;  %v3284_v33 = vand.u32 2147483647, %v3274_v56  ;;  %vm3280_vm6 = vweird.f32 %v3274_v56 }
 0xa9b   : > { %v3256_v61 = vmul.f32 %v5277_v23, %v3254_v34  ;;  %5280 = vpow2.f32 %v4930_v15  ;;  %vm3261_vm1 = vweird.f32 %v5277_v23  ;;  %v6777_v15 = vld [vmem:[%s7100_s11 + $0x2] ss:$0 sm:$0xff] }
 0xa9c   : > { %vm3262_vm3 = vmor %vm3260_vm2, %vm3261_vm1  ;;  %v3287_v53 = vor.u32 1.1754944e-38, %v3286_v10  ;;  %vm3285_vm8 = vcmp.eq.f32.partialorder %v3284_v33, 8.507059e+37 }
 0xa9d   : > { %v3257_v8 = vsub.f32 1.0, %v3256_v61  ;;  %v3529_v40 = vpop.f32.mrf.mxu3 }
 0xa9e   : > { %v3580_v29 = vadd.f32 %v3529_v40, %v3408_v22 }
 0xa9f   : > { %v3258_v41 = vmul.f32 %v5277_v23, %v3257_v8 }
 0xaa0   : > { %v5279_v43 = vpop.eup %5278  ;;  %v4931_v19 = vmul.f32 -1.442695, %v3580_v29 }
 0xaa1   : > { %v5281_v45 = vpop.eup %5280  ;;  %v3276_v47 = vmul.f32 %v5279_v43, %v3274_v56  ;;  %v3259_v48 = vadd.f32 %v5277_v23, %v3258_v41  ;;  %vm3281_vm5 = vweird.f32 %v5279_v43 }
 0xaa2   : > { %v3564_v50 = vadd.f32 1.0, %v5281_v45  ;;  %5282 = vpow2.f32 %v4931_v19  ;;  %vm3282_vm7 = vmor %vm3280_vm6, %vm3281_vm5 }
 0xaa3   : > { %v3277_v51 = vsub.f32 1.0, %v3276_v47  ;;  %v3263_v54 = vsel %vm3262_vm3, %v5277_v23, %v3259_v48  ;;  %v3458_v23 = vpop.f32.mrf.mxu2 }
 0xaa4   : > { %v3268_v58 = vsel %vm3265_vm4, %v3267_v49, %v3263_v54  ;;  %5284 = vrcp.f32 %v3564_v50  ;;  %v3574_v34 = vand.u32 2147483647, %v3564_v50  ;;  %v3576_v24 = vand.u32 2147483648, %v3564_v50 }
 0xaa5   : > { %v3278_v46 = vmul.f32 %v5279_v43, %v3277_v51  ;;  %v3290_v44 = vmul.f32 %v3268_v58, %v3248_v7  ;;  %v3557_v4 = vpop.f32.mrf.mxu3  ;;  %vm3570_vm10 = vweird.f32 %v3564_v50  ;;  %v3459_v29 = vadd.f32 %v6777_v15, %v3458_v23 }
 0xaa6   : > { %v3558_v22 = vadd.f32 %v6771_v0, %v3557_v4  ;;  %v3577_v40 = vor.u32 1.1754944e-38, %v3576_v24  ;;  %vm3575_vm12 = vcmp.eq.f32.partialorder %v3574_v34, 8.507059e+37 }
 0xaa7   : > { %v3279_v35 = vadd.f32 %v5279_v43, %v3278_v46  ;;  %v3291_v17 = vadd.f32 %v3290_v44, %v2303_v57  ;;  %v3359_v46 = vpop.f32.mrf.mxu0 }
 0xaa8   : > { %v5283_v31 = vpop.eup %5282  ;;  %v3360_v10 = vadd.f32 %v6755_v39, %v3359_v46 }
 0xaa9   : > { %v3283_v60 = vsel %vm3282_vm7, %v5279_v43, %v3279_v35  ;;  %5286 = vtanh.f32 %v3291_v17  ;;  %v3584_v62 = vadd.f32 1.0, %v5283_v31  ;;  %v3410_v17 = vpop.f32.mrf.mxu1 }
 0xaaa   : > { %v5285_v63 = vpop.eup %5284  ;;  %v3288_v5 = vsel %vm3285_vm8, %v3287_v53, %v3283_v60  ;;  %v3411_v31 = vadd.f32 %v6761_v27, %v3410_v17 }
 0xaab   : > { %5288 = vrcp.f32 %v3584_v62  ;;  %v3566_v28 = vmul.f32 %v5285_v63, %v3564_v50  ;;  %v3293_v32 = vsub.f32 1.0, %v3288_v5  ;;  %v3295_v6 = vmul.f32 %v3288_v5, %v6656_v16 }
 0xaac   : > { %vm3571_vm9 = vweird.f32 %v5285_v63  ;;  %v3596_v41 = vand.u32 2147483648, %v3584_v62  ;;  %v3594_v19 = vand.u32 2147483647, %v3584_v62  ;;  %vm3590_vm14 = vweird.f32 %v3584_v62 }
 0xaad   : > { %v3567_v12 = vsub.f32 1.0, %v3566_v28  ;;  %vm3572_vm11 = vmor %vm3570_vm10, %vm3571_vm9 }
 0xaae   : > { %v3597_v49 = vor.u32 1.1754944e-38, %v3596_v41  ;;  %vm3595_vm1 = vcmp.eq.f32.partialorder %v3594_v19, 8.507059e+37 }
 0xaaf   : > { %v5287_v2 = vpop.eup %5286  ;;  %v3568_v9 = vmul.f32 %v5285_v63, %v3567_v12 }
 0xab0   : > { %v3294_v11 = vmul.f32 %v5287_v2, %v3293_v32 }
 0xab1   : > { %v5289_v56 = vpop.eup %5288  ;;  %v3569_v8 = vadd.f32 %v5285_v63, %v3568_v9  ;;  %v3413_v17 = vpop.f32.mrf.mxu1 }
 0xab2   : > { %v3296_v20 = vadd.f32 %v3295_v6, %v3294_v11  ;;  %v3586_v61 = vmul.f32 %v5289_v56, %v3584_v62  ;;  %vm3591_vm13 = vweird.f32 %v5289_v56 }
 0xab3   : > { %v3573_v38 = vsel %vm3572_vm11, %v5285_v63, %v3569_v8  ;;  %vm3592_vm15 = vmor %vm3590_vm14, %vm3591_vm13 }
 0xab4   : > { %3298 = vst.msk [vmem:[#allocation3 + $0x38] sm:$0xff] %vm957_vm0, %v3296_v20  ;;  %v3587_v16 = vsub.f32 1.0, %v3586_v61  ;;  %v3578_v42 = vsel %vm3575_vm12, %v3577_v40, %v3573_v38  ;;  %v3461_v20 = vpop.f32.mrf.mxu2 }
 0xab5   : > { %v3600_v45 = vmul.f32 %v3578_v42, %v3558_v22 }
 0xab6   : > { %v3588_v43 = vmul.f32 %v5289_v56, %v3587_v16  ;;  %v3462_v16 = vadd.f32 %v6777_v15, %v3461_v20 }
 0xab7   : > { %v3601_v48 = vadd.f32 %v3600_v45, %v3459_v29 }
 0xab8   : > { %v3589_v47 = vadd.f32 %v5289_v56, %v3588_v43 }
 0xab9   : > { %5290 = vtanh.f32 %v3601_v48 }
 0xaba   : > { %v3593_v50 = vsel %vm3592_vm15, %v5289_v56, %v3589_v47 }
 0xabb   : > { %v3598_v51 = vsel %vm3595_vm1, %v3597_v49, %v3593_v50  ;;  %v3306_v26 = vld [vmem:[#allocation3 + $0x38] sm:$0xff] }
 0xabc   : > { %4911 = vmatmul.msk.f32.gmra.mxu0 %vm957_vm0, %v3306_v26  ;;  %4920 = vmatmul.msk.f32.gmra.mxu1 %vm957_vm0, %v3306_v26  ;;  %v3603_v7 = vsub.f32 1.0, %v3598_v51  ;;  %v3605_v57 = vmul.f32 0.0, %v3598_v51 }
 0xabd   : > { %4929 = vmatmul.msk.f32.gmra.mxu2 %vm957_vm0, %v3306_v26 }
 0xabf   : > { %v5291_v54 = vpop.eup %5290 }
 0xac0   : > { %v3604_v55 = vmul.f32 %v5291_v54, %v3603_v7 }
 0xac2   : > { %v6785_v58 = vadd.f32 %v3605_v57, %v3604_v55  ;;  %v3362_v55 = vpop.f32.mrf.mxu0 }
 0xac3   : > { %v3363_v46 = vadd.f32 %v6755_v39, %v3362_v55 }
 0xac4   : > { %4932 = vmatmul.msk.f32.vlgmr.msrb.gmra.mxu3 %vm957_vm0, %v6785_v58 }
 0xac5   : > { %3662 = vmatpush.msrb.mxu3 %v6649_v1 }
 0xac7   : > { %3663 = vmatpush.msrb.mxu3 %v6652_v18 }
 0xac9   : > { %3664 = vmatpush.msrb.mxu3 %v6670_v59 }
 0xaca   : > { %v6830_v57 = vpop.f32.mrf.mxu0 }
 0xacb   : > { %3665 = vmatpush.msrb.mxu3 %v6677_v25 }
 0xacc   : > { %4933 = vmatmul.msk.f32.vlgmr.msra.gmra.mxu3 %vm957_vm0, %v6785_v58 }
 0xacd   : > { %3732 = vmatpush.msra.mxu3 %v6634_v37 }
 0xacf   : > { %3733 = vmatpush.msra.mxu3 %v6637_v14 }
 0xad1   : > { %3734 = vmatpush.msra.mxu3 %v6639_v3 }
 0xad3   : > { %3735 = vmatpush.msra.mxu3 %v6642_v13 }
 0xad4   : > { %4934 = vmatmul.msk.f32.vlgmr.msrb.gmra.mxu3 %vm957_vm0, %v6785_v58 }
 0xad5   : > { %3752 = vmatpush.msrb.mxu3 %v6658_v30 }
 0xad7   : > { %3753 = vmatpush.msrb.mxu3 %v6668_v36 }
 0xad9   : > { %3754 = vmatpush.msrb.mxu3 %v6675_v21 }
 0xadb   : > { %3755 = vmatpush.msrb.mxu3 %v6687_v52 }
 0xb47   : > { %v3627_v44 = vpop.f32.mrf.mxu3 }
 0xb48   : > { %v3670_v33 = vadd.f32 %v3627_v44, %v3360_v10 }
 0xb4a   : > { %v4935_v35 = vmul.f32 -1.442695, %v3670_v33 }
 0xb4c   : > { %5292 = vpow2.f32 %v4935_v35 }
 0xb4f   : > { %v3647_v53 = vpop.f32.mrf.mxu3 }
 0xb50   : > { %v3690_v60 = vadd.f32 %v3647_v53, %v3411_v31  ;;  %v3414_v31 = vadd.f32 %v6761_v27, %v3413_v17 }
 0xb52   : > { %v5293_v62 = vpop.eup %5292  ;;  %v4936_v63 = vmul.f32 -1.442695, %v3690_v60 }
 0xb53   : > { %v3674_v5 = vadd.f32 1.0, %v5293_v62 }
 0xb54   : > { %5294 = vpow2.f32 %v4936_v63 }
 0xb55   : > { %5296 = vrcp.f32 %v3674_v5  ;;  %v3686_v34 = vand.u32 2147483648, %v3674_v5  ;;  %v3684_v11 = vand.u32 2147483647, %v3674_v5  ;;  %vm3680_vm3 = vweird.f32 %v3674_v5 }
 0xb57   : > { %v3667_v6 = vpop.f32.mrf.mxu3  ;;  %v3687_v23 = vor.u32 1.1754944e-38, %v3686_v34  ;;  %vm3685_vm5 = vcmp.eq.f32.partialorder %v3684_v11, 8.507059e+37 }
 0xb58   : > { %v3668_v22 = vadd.f32 %v6771_v0, %v3667_v6 }
 0xb5a   : > { %v5295_v28 = vpop.eup %5294 }
 0xb5b   : > { %v5297_v32 = vpop.eup %5296  ;;  %v3694_v12 = vadd.f32 1.0, %v5295_v28 }
 0xb5c   : > { %v3676_v2 = vmul.f32 %v5297_v32, %v3674_v5  ;;  %vm3681_vm2 = vweird.f32 %v5297_v32 }
 0xb5d   : > { %5298 = vrcp.f32 %v3694_v12  ;;  %vm3682_vm4 = vmor %vm3680_vm3, %vm3681_vm2  ;;  %v3706_v41 = vand.u32 2147483648, %v3694_v12  ;;  %v3704_v43 = vand.u32 2147483647, %v3694_v12  ;;  %vm3700_vm7 = vweird.f32 %v3694_v12 }
 0xb5e   : > { %v3677_v4 = vsub.f32 1.0, %v3676_v2 }
 0xb5f   : > { %v3707_v47 = vor.u32 1.1754944e-38, %v3706_v41  ;;  %vm3705_vm9 = vcmp.eq.f32.partialorder %v3704_v43, 8.507059e+37 }
 0xb60   : > { %v3678_v24 = vmul.f32 %v5297_v32, %v3677_v4 }
 0xb62   : > { %v3679_v9 = vadd.f32 %v5297_v32, %v3678_v24 }
 0xb63   : > { %v5299_v56 = vpop.eup %5298 }
 0xb64   : > { %v3696_v61 = vmul.f32 %v5299_v56, %v3694_v12  ;;  %v3683_v8 = vsel %vm3682_vm4, %v5297_v32, %v3679_v9  ;;  %vm3701_vm6 = vweird.f32 %v5299_v56 }
 0xb65   : > { %v3688_v40 = vsel %vm3685_vm5, %v3687_v23, %v3683_v8  ;;  %vm3702_vm8 = vmor %vm3700_vm7, %vm3701_vm6 }
 0xb66   : > { %v3697_v38 = vsub.f32 1.0, %v3696_v61  ;;  %v3710_v29 = vmul.f32 %v3688_v40, %v3668_v22  ;;  %v3464_v61 = vpop.f32.mrf.mxu2 }
 0xb68   : > { %v3698_v42 = vmul.f32 %v5299_v56, %v3697_v38  ;;  %v3711_v19 = vadd.f32 %v3710_v29, %v3462_v16  ;;  %v3465_v29 = vadd.f32 %v6777_v15, %v3464_v61 }
 0xb6a   : > { %v3699_v45 = vadd.f32 %v5299_v56, %v3698_v42  ;;  %5300 = vtanh.f32 %v3711_v19 }
 0xb6c   : > { %v3703_v48 = vsel %vm3702_vm8, %v5299_v56, %v3699_v45 }
 0xb6d   : > { %v3708_v49 = vsel %vm3705_vm9, %v3707_v47, %v3703_v48 }
 0xb6e   : > { %v3713_v50 = vsub.f32 1.0, %v3708_v49  ;;  %v3715_v7 = vmul.f32 %v3708_v49, %v6785_v58  ;;  %v6832_v58 = vpop.f32.mrf.mxu0 }
 0xb70   : > { %v5301_v51 = vpop.eup %5300 }
 0xb71   : > { %v3714_v26 = vmul.f32 %v5301_v51, %v3713_v50 }
 0xb73   : > { %v6810_v54 = vadd.f32 %v3715_v7, %v3714_v26 }
 0xb75   : > { %4937 = vmatmul.msk.f32.vlgmr.msra.gmra.mxu3 %vm957_vm0, %v6810_v54  ;;  %4939 = vmatmul.msk.f32.vlgmr.msrb.gmra.mxu0 %vm957_vm0, %v6810_v54 }
 0xb76   : > { %3882 = vmatpush.msra.mxu3 %v6649_v1  ;;  %4082 = vmatpush.msrb.mxu0 %v6658_v30  ;;  %v6835_v33 = vpop.f32.mrf.mxu0 }
 0xb78   : > { %3883 = vmatpush.msra.mxu3 %v6652_v18  ;;  %4083 = vmatpush.msrb.mxu0 %v6668_v36 }
 0xb7a   : > { %3884 = vmatpush.msra.mxu3 %v6670_v59  ;;  %4084 = vmatpush.msrb.mxu0 %v6675_v21 }
 0xb7c   : > { %3885 = vmatpush.msra.mxu3 %v6677_v25  ;;  %4085 = vmatpush.msrb.mxu0 %v6687_v52 }
 0xb7d   : > { %4938 = vmatmul.msk.f32.vlgmr.msrb.gmra.mxu3 %vm957_vm0, %v6810_v54 }
 0xb7e   : > { %4062 = vmatpush.msrb.mxu3 %v6634_v37  ;;  %v6838_v62 = vpop.f32.mrf.mxu0 }
 0xb80   : > { %4063 = vmatpush.msrb.mxu3 %v6637_v14 }
 0xb82   : > { %4064 = vmatpush.msrb.mxu3 %v6639_v3 }
 0xb84   : > { %4065 = vmatpush.msrb.mxu3 %v6642_v13 }
 0xb86   : > { %v6840_v32 = vpop.f32.mrf.mxu0 }
 0xbf2   : > { %v3777_v56 = vpop.f32.mrf.mxu0 }
 0xbf3   : > { %v3778_v8 = vadd.f32 %v6771_v0, %v3777_v56 }
 0xbf8   : > { %v3737_v10 = vpop.f32.mrf.mxu3 }
 0xbf9   : > { %v3780_v44 = vadd.f32 %v3737_v10, %v3363_v46 }
 0xbfb   : > { %v4940_v35 = vmul.f32 -1.442695, %v3780_v44  ;;  %v3467_v44 = vpop.f32.mrf.mxu2 }
 0xbfd   : > { %5302 = vpow2.f32 %v4940_v35 }
 0xc00   : > { %v3757_v53 = vpop.f32.mrf.mxu3 }
 0xc01   : > { %v3800_v60 = vadd.f32 %v3757_v53, %v3414_v31 }
 0xc03   : > { %v5303_v63 = vpop.eup %5302  ;;  %v4941_v5 = vmul.f32 -1.442695, %v3800_v60  ;;  %v6867_v17 = vpop.f32.mrf.mxu2 }
 0xc04   : > { %v3784_v28 = vadd.f32 1.0, %v5303_v63 }
 0xc05   : > { %5304 = vpow2.f32 %v4941_v5 }
 0xc06   : > { %5306 = vrcp.f32 %v3784_v28  ;;  %v3796_v11 = vand.u32 2147483648, %v3784_v28  ;;  %v3794_v9 = vand.u32 2147483647, %v3784_v28  ;;  %vm3790_vm11 = vweird.f32 %v3784_v28 }
 0xc08   : > { %v3797_v22 = vor.u32 1.1754944e-38, %v3796_v11  ;;  %vm3795_vm13 = vcmp.eq.f32.partialorder %v3794_v9, 8.507059e+37 }
 0xc0b   : > { %v5305_v12 = vpop.eup %5304  ;;  %v6871_v53 = vpop.f32.mrf.mxu2 }
 0xc0c   : > { %v5307_v2 = vpop.eup %5306  ;;  %v3804_v4 = vadd.f32 1.0, %v5305_v12  ;;  %v3366_v12 = vadd.f32 %v6755_v39, %v6830_v57 }
 0xc0d   : > { %v3786_v34 = vmul.f32 %v5307_v2, %v3784_v28  ;;  %vm3791_vm10 = vweird.f32 %v5307_v2 }
 0xc0e   : > { %5308 = vrcp.f32 %v3804_v4  ;;  %vm3792_vm12 = vmor %vm3790_vm11, %vm3791_vm10  ;;  %v3816_v43 = vand.u32 2147483648, %v3804_v4  ;;  %v3814_v47 = vand.u32 2147483647, %v3804_v4  ;;  %vm3810_vm15 = vweird.f32 %v3804_v4 }
 0xc0f   : > { %v3787_v24 = vsub.f32 1.0, %v3786_v34 }
 0xc10   : > { %v3817_v49 = vor.u32 1.1754944e-38, %v3816_v43  ;;  %vm3815_vm2 = vcmp.eq.f32.partialorder %v3814_v47, 8.507059e+37 }
 0xc11   : > { %v3788_v6 = vmul.f32 %v5307_v2, %v3787_v24 }
 0xc13   : > { %v3789_v20 = vadd.f32 %v5307_v2, %v3788_v6  ;;  %v6875_v63 = vpop.f32.mrf.mxu2 }
 0xc14   : > { %v5309_v23 = vpop.eup %5308 }
 0xc15   : > { %v3793_v40 = vsel %vm3792_vm12, %v5307_v2, %v3789_v20  ;;  %v3806_v16 = vmul.f32 %v5309_v23, %v3804_v4  ;;  %vm3811_vm14 = vweird.f32 %v5309_v23 }
 0xc16   : > { %v3798_v38 = vsel %vm3795_vm13, %v3797_v22, %v3793_v40  ;;  %vm3812_vm1 = vmor %vm3810_vm15, %vm3811_vm14 }
 0xc17   : > { %v3820_v41 = vmul.f32 %v3798_v38, %v3778_v8  ;;  %v3807_v42 = vsub.f32 1.0, %v3806_v16 }
 0xc19   : > { %v3821_v19 = vadd.f32 %v3820_v41, %v3465_v29  ;;  %v3808_v45 = vmul.f32 %v5309_v23, %v3807_v42 }
 0xc1b   : > { %5310 = vtanh.f32 %v3821_v19  ;;  %v3809_v48 = vadd.f32 %v5309_v23, %v3808_v45  ;;  %v6879_v28 = vpop.f32.mrf.mxu2 }
 0xc1d   : > { %v3813_v50 = vsel %vm3812_vm1, %v5309_v23, %v3809_v48 }
 0xc1e   : > { %v3818_v51 = vsel %vm3815_vm2, %v3817_v49, %v3813_v50  ;;  %v3468_v49 = vadd.f32 %v6777_v15, %v3467_v44 }
 0xc1f   : > { %v3823_v26 = vsub.f32 1.0, %v3818_v51  ;;  %v3825_v46 = vmul.f32 %v3818_v51, %v6810_v54  ;;  %v3416_v54 = vpop.f32.mrf.mxu1 }
 0xc20   : > { %v3417_v24 = vadd.f32 %v6761_v27, %v3416_v54 }
 0xc21   : > { %v5311_v7 = vpop.eup %5310 }
 0xc22   : > { %v3824_v55 = vmul.f32 %v5311_v7, %v3823_v26 }
 0xc24   : > { %v6845_v10 = vadd.f32 %v3825_v46, %v3824_v55 }
 0xc26   : > { %4942 = vmatmul.msk.f32.vlgmr.msrb.gmra.mxu1 %vm957_vm0, %v6845_v10  ;;  %4943 = vmatmul.msk.f32.vlgmr.msrb.gmra.mxu2 %vm957_vm0, %v6845_v10 }
 0xc27   : > { %4944 = vmatmul.msk.f32.vlgmr.msra.gmra.mxu3 %vm957_vm0, %v6845_v10  ;;  %4102 = vmatpush.msrb.mxu1 %v6649_v1  ;;  %v6865_v35 = vpop.f32.mrf.mxu1 }
 0xc28   : > { %4172 = vmatpush.msrb.mxu2 %v6634_v37  ;;  %4192 = vmatpush.msra.mxu3 %v6658_v30 }
 0xc29   : > { %4103 = vmatpush.msrb.mxu1 %v6652_v18 }
 0xc2a   : > { %4173 = vmatpush.msrb.mxu2 %v6637_v14  ;;  %4193 = vmatpush.msra.mxu3 %v6668_v36 }
 0xc2b   : > { %4104 = vmatpush.msrb.mxu1 %v6670_v59 }
 0xc2c   : > { %4174 = vmatpush.msrb.mxu2 %v6639_v3  ;;  %4194 = vmatpush.msra.mxu3 %v6675_v21 }
 0xc2d   : > { %4105 = vmatpush.msrb.mxu1 %v6677_v25 }
 0xc2e   : > { %4175 = vmatpush.msrb.mxu2 %v6642_v13  ;;  %4195 = vmatpush.msra.mxu3 %v6687_v52 }
 0xc2f   : > { %v6869_v31 = vpop.f32.mrf.mxu1 }
 0xc37   : > { %v6873_v60 = vpop.f32.mrf.mxu1 }
 0xc3f   : > { %v6877_v5 = vpop.f32.mrf.mxu1 }
 0xca3   : > { %v3847_v2 = vpop.f32.mrf.mxu1 }
 0xca4   : > { %v3890_v4 = vadd.f32 %v3847_v2, %v3366_v12 }
 0xca6   : > { %v4945_v34 = vmul.f32 -1.442695, %v3890_v4 }
 0xca8   : > { %5312 = vpow2.f32 %v4945_v34 }
 0xca9   : > { %v3867_v11 = vpop.f32.mrf.mxu2 }
 0xcaa   : > { %v3910_v6 = vadd.f32 %v3867_v11, %v3417_v24  ;;  %v3887_v41 = vpop.f32.mrf.mxu3 }
 0xcab   : > { %v3888_v47 = vadd.f32 %v6771_v0, %v3887_v41 }
 0xcac   : > { %v4946_v9 = vmul.f32 -1.442695, %v3910_v6 }
 0xcae   : > { %v5313_v56 = vpop.eup %5312  ;;  %5314 = vpow2.f32 %v4946_v9 }
 0xcaf   : > { %v3894_v20 = vadd.f32 1.0, %v5313_v56 }
 0xcb1   : > { %5316 = vrcp.f32 %v3894_v20  ;;  %v3906_v57 = vand.u32 2147483648, %v3894_v20  ;;  %v3904_v38 = vand.u32 2147483647, %v3894_v20  ;;  %vm3900_vm4 = vweird.f32 %v3894_v20 }
 0xcb3   : > { %v3907_v19 = vor.u32 1.1754944e-38, %v3906_v57  ;;  %vm3905_vm6 = vcmp.eq.f32.partialorder %v3904_v38, 8.507059e+37 }
 0xcb4   : > { %v5315_v23 = vpop.eup %5314 }
 0xcb5   : > { %v3914_v61 = vadd.f32 1.0, %v5315_v23 }
 0xcb7   : > { %v5317_v22 = vpop.eup %5316  ;;  %5318 = vrcp.f32 %v3914_v61  ;;  %v3926_v26 = vand.u32 2147483648, %v3914_v61  ;;  %v3924_v55 = vand.u32 2147483647, %v3914_v61  ;;  %vm3920_vm8 = vweird.f32 %v3914_v61 }
 0xcb8   : > { %v3896_v8 = vmul.f32 %v5317_v22, %v3894_v20  ;;  %vm3901_vm3 = vweird.f32 %v5317_v22 }
 0xcb9   : > { %vm3902_vm5 = vmor %vm3900_vm4, %vm3901_vm3  ;;  %v3927_v12 = vor.u32 1.1754944e-38, %v3926_v26  ;;  %vm3925_vm10 = vcmp.eq.f32.partialorder %v3924_v55, 8.507059e+37 }
 0xcba   : > { %v3897_v40 = vsub.f32 1.0, %v3896_v8 }
 0xcbc   : > { %v3898_v16 = vmul.f32 %v5317_v22, %v3897_v40 }
 0xcbd   : > { %v5319_v29 = vpop.eup %5318 }
 0xcbe   : > { %v3916_v42 = vmul.f32 %v5319_v29, %v3914_v61  ;;  %v3899_v43 = vadd.f32 %v5317_v22, %v3898_v16  ;;  %vm3921_vm7 = vweird.f32 %v5319_v29 }
 0xcbf   : > { %vm3922_vm9 = vmor %vm3920_vm8, %vm3921_vm7 }
 0xcc0   : > { %v3917_v45 = vsub.f32 1.0, %v3916_v42  ;;  %v3903_v48 = vsel %vm3902_vm5, %v5317_v22, %v3899_v43 }
 0xcc1   : > { %v3908_v50 = vsel %vm3905_vm6, %v3907_v19, %v3903_v48  ;;  %v3471_v48 = vadd.f32 %v6777_v15, %v6867_v17  ;;  %v3423_v17 = vadd.f32 %v6761_v27, %v6869_v31 }
 0xcc2   : > { %v3918_v51 = vmul.f32 %v5319_v29, %v3917_v45  ;;  %v3930_v7 = vmul.f32 %v3908_v50, %v3888_v47 }
 0xcc4   : > { %v3919_v46 = vadd.f32 %v5319_v29, %v3918_v51  ;;  %v3931_v54 = vadd.f32 %v3930_v7, %v3468_v49 }
 0xcc6   : > { %v3923_v2 = vsel %vm3922_vm9, %v5319_v29, %v3919_v46  ;;  %5320 = vtanh.f32 %v3931_v54 }
 0xcc7   : > { %v3928_v4 = vsel %vm3925_vm10, %v3927_v12, %v3923_v2 }
 0xcc8   : > { %v3933_v34 = vsub.f32 1.0, %v3928_v4  ;;  %v3935_v44 = vmul.f32 %v3928_v4, %v6845_v10 }
 0xccc   : > { %v5321_v24 = vpop.eup %5320 }
 0xccd   : > { %v3934_v11 = vmul.f32 %v5321_v24, %v3933_v34 }
 0xccf   : > { %v6887_v6 = vadd.f32 %v3935_v44, %v3934_v11 }
 0xcd1   : > { %4947 = vmatmul.msk.f32.vlgmr.msra.gmra.mxu0 %vm957_vm0, %v6887_v6  ;;  %4948 = vmatmul.msk.f32.vlgmr.msra.gmra.mxu1 %vm957_vm0, %v6887_v6 }
 0xcd2   : > { %4949 = vmatmul.msk.f32.vlgmr.msra.gmra.mxu2 %vm957_vm0, %v6887_v6  ;;  %4212 = vmatpush.msra.mxu0 %v6649_v1 }
 0xcd3   : > { %4282 = vmatpush.msra.mxu1 %v6634_v37  ;;  %4302 = vmatpush.msra.mxu2 %v6658_v30  ;;  %v3369_v37 = vadd.f32 %v6755_v39, %v6832_v58 }
 0xcd4   : > { %4213 = vmatpush.msra.mxu0 %v6652_v18 }
 0xcd5   : > { %4283 = vmatpush.msra.mxu1 %v6637_v14  ;;  %4303 = vmatpush.msra.mxu2 %v6668_v36  ;;  %v3420_v14 = vadd.f32 %v6761_v27, %v6865_v35 }
 0xcd6   : > { %4214 = vmatpush.msra.mxu0 %v6670_v59 }
 0xcd7   : > { %4284 = vmatpush.msra.mxu1 %v6639_v3  ;;  %4304 = vmatpush.msra.mxu2 %v6675_v21 }
 0xcd8   : > { %4215 = vmatpush.msra.mxu0 %v6677_v25 }
 0xcd9   : > { %4285 = vmatpush.msra.mxu1 %v6642_v13  ;;  %4305 = vmatpush.msra.mxu2 %v6687_v52 }
 0xd4e   : > { %v3957_v30 = vpop.f32.mrf.mxu0  ;;  %v3977_v36 = vpop.f32.mrf.mxu1 }
 0xd4f   : > { %v4000_v10 = vadd.f32 %v3957_v30, %v3369_v37  ;;  %v4020_v9 = vadd.f32 %v3977_v36, %v3420_v14 }
 0xd51   : > { %v4950_v56 = vmul.f32 -1.442695, %v4000_v10  ;;  %v4951_v3 = vmul.f32 -1.442695, %v4020_v9 }
 0xd53   : > { %5322 = vpow2.f32 %v4950_v56 }
 0xd54   : > { %5324 = vpow2.f32 %v4951_v3 }
 0xd55   : > { %v3997_v29 = vpop.f32.mrf.mxu2 }
 0xd56   : > { %v3998_v43 = vadd.f32 %v6771_v0, %v3997_v29 }
 0xd59   : > { %v5323_v21 = vpop.eup %5322 }
 0xd5a   : > { %v5325_v20 = vpop.eup %5324  ;;  %v4004_v23 = vadd.f32 1.0, %v5323_v21 }
 0xd5b   : > { %v4024_v13 = vadd.f32 1.0, %v5325_v20 }
 0xd5c   : > { %5326 = vrcp.f32 %v4004_v23  ;;  %v4016_v40 = vand.u32 2147483648, %v4004_v23  ;;  %v4014_v16 = vand.u32 2147483647, %v4004_v23  ;;  %vm4010_vm12 = vweird.f32 %v4004_v23 }
 0xd5d   : > { %5328 = vrcp.f32 %v4024_v13  ;;  %v4036_v49 = vand.u32 2147483648, %v4024_v13  ;;  %vm4030_vm1 = vweird.f32 %v4024_v13  ;;  %v4034_v51 = vand.u32 2147483647, %v4024_v13 }
 0xd5e   : > { %v4017_v42 = vor.u32 1.1754944e-38, %v4016_v40  ;;  %vm4015_vm14 = vcmp.eq.f32.partialorder %v4014_v16, 8.507059e+37  ;;  %v3474_v40 = vadd.f32 %v6777_v15, %v6871_v53  ;;  %v3375_v53 = vadd.f32 %v6755_v39, %v6838_v62  ;;  %v4380_v62 = vld [vmem:[%s7102_s13 + $0x8] sm:$0xff] }
 0xd5f   : > { %v4037_v55 = vor.u32 1.1754944e-38, %v4036_v49  ;;  %vm4035_vm3 = vcmp.eq.f32.partialorder %v4034_v51, 8.507059e+37 }
 0xd62   : > { %v5327_v52 = vpop.eup %5326 }
 0xd63   : > { %v5329_v61 = vpop.eup %5328  ;;  %v4006_v58 = vmul.f32 %v5327_v52, %v4004_v23  ;;  %vm4011_vm11 = vweird.f32 %v5327_v52 }
 0xd64   : > { %v4026_v22 = vmul.f32 %v5329_v61, %v4024_v13  ;;  %vm4012_vm13 = vmor %vm4010_vm12, %vm4011_vm11  ;;  %vm4031_vm15 = vweird.f32 %v5329_v61 }
 0xd65   : > { %v4007_v8 = vsub.f32 1.0, %v4006_v58  ;;  %vm4032_vm2 = vmor %vm4030_vm1, %vm4031_vm15 }
 0xd66   : > { %v4027_v35 = vsub.f32 1.0, %v4026_v22 }
 0xd67   : > { %v4008_v57 = vmul.f32 %v5327_v52, %v4007_v8 }
 0xd68   : > { %v4028_v38 = vmul.f32 %v5329_v61, %v4027_v35 }
 0xd69   : > { %v4009_v41 = vadd.f32 %v5327_v52, %v4008_v57 }
 0xd6a   : > { %v4029_v45 = vadd.f32 %v5329_v61, %v4028_v38 }
 0xd6b   : > { %v4013_v19 = vsel %vm4012_vm13, %v5327_v52, %v4009_v41 }
 0xd6c   : > { %v4018_v47 = vsel %vm4015_vm14, %v4017_v42, %v4013_v19  ;;  %v4033_v7 = vsel %vm4032_vm2, %v5329_v61, %v4029_v45 }
 0xd6d   : > { %v4040_v50 = vmul.f32 %v4018_v47, %v3998_v43  ;;  %v4038_v46 = vsel %vm4035_vm3, %v4037_v55, %v4033_v7 }
 0xd6e   : > { %v4043_v54 = vsub.f32 1.0, %v4038_v46  ;;  %v4045_v4 = vmul.f32 %v4038_v46, %v6887_v6  ;;  %v3372_v6 = vadd.f32 %v6755_v39, %v6835_v33  ;;  %v4382_v39 = vld [vmem:[%s7102_s13 + $0x18] sm:$0xff] }
 0xd6f   : > { %v4041_v26 = vadd.f32 %v4040_v50, %v3471_v48  ;;  %v3426_v50 = vadd.f32 %v6761_v27, %v6873_v60  ;;  %v4381_v27 = vld [vmem:[%s7102_s13 + $0x10] sm:$0xff]  ;;  %v4379_v60 = vld [vmem:[%s7102_s13] sm:$0xff] }
 0xd71   : > { %5330 = vtanh.f32 %v4041_v26 }
 0xd77   : > { %v5331_v12 = vpop.eup %5330 }
 0xd78   : > { %v4044_v2 = vmul.f32 %v5331_v12, %v4043_v54 }
 0xd7a   : > { %v4046_v34 = vadd.f32 %v4045_v4, %v4044_v2 }
 0xd7c   : > { %4952 = vmatmul.msk.f32.vlgmr.msrb.gmra.mxu3 %vm957_vm0, %v4046_v34  ;;  %4953 = vmatmul.msk.f32.vlgmr.msrb.gmra.mxu0 %vm957_vm0, %v4046_v34 }
 0xd7d   : > { %4954 = vmatmul.msk.f32.vlgmr.msrb.gmra.mxu1 %vm957_vm0, %v4046_v34  ;;  %4322 = vmatpush.msrb.mxu3 %v6649_v1 }
 0xd7e   : > { %4402 = vmatpush.msrb.mxu0 %v4382_v39 }
 0xd7f   : > { %4323 = vmatpush.msrb.mxu3 %v6652_v18 }
 0xd80   : > { %4403 = vmatpush.msrb.mxu0 %v4381_v27 }
 0xd81   : > { %4324 = vmatpush.msrb.mxu3 %v6670_v59 }
 0xd82   : > { %4404 = vmatpush.msrb.mxu0 %v4380_v62 }
 0xd83   : > { %4325 = vmatpush.msrb.mxu3 %v6677_v25 }
 0xd84   : > { %4405 = vmatpush.msrb.mxu0 %v4379_v60 }
 0xdf9   : > { %v4087_v24 = vpop.f32.mrf.mxu0 }
 0xdfa   : > { %v4130_v11 = vadd.f32 %v4087_v24, %v3423_v17  ;;  %v4107_v13 = vpop.f32.mrf.mxu1  ;;  %v4967_v24 = vld [vmem:[%s5993_s3 + $0x38] sm:$0xff]  ;;  %s940_s3 = scalar_lea.vmem %s7162_s1, %s4777_s19 }
 0xdfb   : > { %v4108_v58 = vadd.f32 %v6771_v0, %v4107_v13 }
 0xdfc   : > { %v4956_v44 = vmul.f32 -1.442695, %v4130_v11 }
 0xdfe   : > { %5332 = vpow2.f32 %v4956_v44 }
 0xdff   : > { %v4067_v37 = vpop.f32.mrf.mxu3 }
 0xe00   : > { %v4110_v14 = vadd.f32 %v4067_v37, %v3372_v6 }
 0xe02   : > { %v4955_v30 = vmul.f32 -1.442695, %v4110_v14 }
 0xe04   : > { %v5333_v1 = vpop.eup %5332  ;;  %5334 = vpow2.f32 %v4955_v30 }
 0xe05   : > { %v4134_v18 = vadd.f32 1.0, %v5333_v1 }
 0xe07   : > { %5336 = vrcp.f32 %v4134_v18  ;;  %v4146_v57 = vand.u32 2147483648, %v4134_v18  ;;  %vm4140_vm9 = vweird.f32 %v4134_v18  ;;  %v4144_v38 = vand.u32 2147483647, %v4134_v18 }
 0xe09   : > { %v4147_v42 = vor.u32 1.1754944e-38, %v4146_v57  ;;  %vm4145_vm11 = vcmp.eq.f32.partialorder %v4144_v38, 8.507059e+37 }
 0xe0a   : > { %v5335_v59 = vpop.eup %5334 }
 0xe0b   : > { %v4114_v36 = vadd.f32 1.0, %v5335_v59 }
 0xe0d   : > { %5338 = vrcp.f32 %v4114_v36  ;;  %v5337_v25 = vpop.eup %5336  ;;  %v4126_v21 = vand.u32 2147483648, %v4114_v36  ;;  %v4124_v33 = vand.u32 2147483647, %v4114_v36  ;;  %vm4120_vm5 = vweird.f32 %v4114_v36 }
 0xe0e   : > { %v4136_v10 = vmul.f32 %v5337_v25, %v4134_v18  ;;  %vm4141_vm8 = vweird.f32 %v5337_v25 }
 0xe0f   : > { %v4127_v61 = vor.u32 1.1754944e-38, %v4126_v21  ;;  %vm4125_vm7 = vcmp.eq.f32.partialorder %v4124_v33, 8.507059e+37  ;;  %vm4142_vm10 = vmor %vm4140_vm9, %vm4141_vm8  ;;  %v3477_v21 = vadd.f32 %v6777_v15, %v6875_v63  ;;  %v5372_v15 = vld [vmem:[%s7100_s11] ss:$0 sm:$0xff] }
 0xe10   : > { %v4137_v56 = vsub.f32 1.0, %v4136_v10  ;;  %v3378_v63 = vadd.f32 %v5372_v15, %v6840_v32  ;;  %v4413_v32 = vld [vmem:[%s7104_s15 + $0x10] sm:$0xff]  ;;  %v4565_v15 = vld [vmem:[%s7156_s21 + $0x18] sm:$0xff] }
 0xe12   : > { %v4138_v23 = vmul.f32 %v5337_v25, %v4137_v56 }
 0xe13   : > { %v5339_v31 = vpop.eup %5338 }
 0xe14   : > { %v4116_v9 = vmul.f32 %v5339_v31, %v4114_v36  ;;  %vm4121_vm4 = vweird.f32 %v5339_v31  ;;  %v4139_v8 = vadd.f32 %v5337_v25, %v4138_v23 }
 0xe15   : > { %vm4122_vm6 = vmor %vm4120_vm5, %vm4121_vm4  ;;  %vm4417_vm5 = vcmask 130048  }
 0xe16   : > { %v4117_v3 = vsub.f32 1.0, %v4116_v9  ;;  %v4143_v41 = vsel %vm4142_vm10, %v5337_v25, %v4139_v8 }
 0xe17   : > { %v4148_v43 = vsel %vm4145_vm11, %v4147_v42, %v4143_v41 }
 0xe18   : > { %v4118_v20 = vmul.f32 %v5339_v31, %v4117_v3  ;;  %v4153_v19 = vsub.f32 1.0, %v4148_v43  ;;  %v4155_v48 = vmul.f32 %v4148_v43, %v4046_v34 }
 0xe1a   : > { %v4119_v52 = vadd.f32 %v5339_v31, %v4118_v20 }
 0xe1c   : > { %v4123_v22 = vsel %vm4122_vm6, %v5339_v31, %v4119_v52 }
 0xe1d   : > { %v4128_v35 = vsel %vm4125_vm7, %v4127_v61, %v4123_v22 }
 0xe1e   : > { %v4150_v16 = vmul.f32 %v4128_v35, %v4108_v58 }
 0xe20   : > { %v4151_v29 = vadd.f32 %v4150_v16, %v3474_v40 }
 0xe22   : > { %5340 = vtanh.f32 %v4151_v29  ;;  %v5373_v29 = vld [vmem:[%s7100_s11 + $0x1] ss:$0 sm:$0xff] }
 0xe23   : > { %v3429_v41 = vadd.f32 %v5373_v29, %v6877_v5  ;;  %v4412_v5 = vld [vmem:[%s7104_s15 + $0x8] sm:$0xff] }
 0xe28   : > { %v5341_v45 = vpop.eup %5340 }
 0xe29   : > { %v4154_v47 = vmul.f32 %v5341_v45, %v4153_v19  ;;  %v4414_v19 = vld [vmem:[%s7104_s15 + $0x18] sm:$0xff] }
 0xe2b   : > { %v6929_v49 = vadd.f32 %v4155_v48, %v4154_v47 }
 0xe2d   : > { %4957 = vmatmul.msk.f32.vlgmr.msrb.gmra.mxu2 %vm957_vm0, %v6929_v49  ;;  %4958 = vmatmul.msk.f32.vlgmr.msra.gmra.mxu3 %vm957_vm0, %v6929_v49 }
 0xe2e   : > { %4959 = vmatmul.msk.f32.vlgmr.msra.gmra.mxu0 %vm957_vm0, %v6929_v49  ;;  %4456 = vmatpush.msrb.mxu2 %v4414_v19  ;;  %v4505_v19 = vld [vmem:[%s7158_s25 + $0x18] sm:$0xff] }
 0xe2f   : > { %4525 = vmatpush.msra.mxu0 %v4505_v19 }
 0xe30   : > { %4457 = vmatpush.msrb.mxu2 %v4413_v32  ;;  %v4504_v32 = vld [vmem:[%s7158_s25 + $0x10] sm:$0xff] }
 0xe31   : > { %4526 = vmatpush.msra.mxu0 %v4504_v32 }
 0xe32   : > { %4458 = vmatpush.msrb.mxu2 %v4412_v5  ;;  %v4502_v5 = vld [vmem:[%s7158_s25] sm:$0xff] }
 0xe36   : > { %4968 = vmatmul.msk.f32.vlgmr.msrb.gmra.mxu0 %vm957_vm0, %v4967_v24 }
 0xeab   : > { %v4217_v59 = vpop.f32.mrf.mxu0 }
 0xeac   : > { %v4218_v31 = vadd.f32 %v6771_v0, %v4217_v59 }
 0xeb0   : > { %v4177_v51 = vpop.f32.mrf.mxu2  ;;  %v4197_v26 = vpop.f32.mrf.mxu3 }
 0xeb1   : > { %v4220_v7 = vadd.f32 %v4177_v51, %v3375_v53  ;;  %v4240_v55 = vadd.f32 %v4197_v26, %v3426_v50  ;;  %v4411_v53 = vld [vmem:[%s7104_s15] sm:$0xff] }
 0xeb2   : > { %4459 = vmatpush.msrb.mxu2 %v4411_v53  ;;  %v5116_v50 = vld [vmem:[%s7103_s14] ss:$0 sm:$0xff] }
 0xeb3   : > { %v4960_v46 = vmul.f32 -1.442695, %v4220_v7  ;;  %v4961_v54 = vmul.f32 -1.442695, %v4240_v55  ;;  %v4407_v51 = vpop.f32.mrf.mxu0  ;;  %v4415_v26 = vld [vmem:[%s7105_s16] sm:$0xff]  ;;  %v4473_v7 = vld [vmem:[%s7107_s18 + $0x18] sm:$0xff] }
 0xeb4   : > { %v4408_v55 = vadd.f32 %v5116_v50, %v4407_v51  ;;  %4493 = vmatpush.msra.mxu3 %v4473_v7  ;;  %v5119_v51 = vld [vmem:[%s7160_s29] ss:$0 sm:$0xff] }
 0xeb5   : > { %5342 = vpow2.f32 %v4960_v46 }
 0xeb6   : > { %5344 = vpow2.f32 %v4961_v54 }
 0xebb   : > { %v5343_v12 = vpop.eup %5342 }
 0xebc   : > { %v5345_v2 = vpop.eup %5344  ;;  %v4224_v4 = vadd.f32 1.0, %v5343_v12  ;;  %v4410_v12 = vmax.f32 %v4408_v55, 0.0 }
 0xebd   : > { %v4244_v34 = vadd.f32 1.0, %v5345_v2 }
 0xebe   : > { %5346 = vrcp.f32 %v4224_v4  ;;  %v4236_v14 = vand.u32 2147483648, %v4224_v4  ;;  %v4234_v18 = vand.u32 2147483647, %v4224_v4  ;;  %vm4230_vm13 = vweird.f32 %v4224_v4 }
 0xebf   : > { %5348 = vrcp.f32 %v4244_v34  ;;  %v4256_v33 = vand.u32 2147483648, %v4244_v34  ;;  %vm4250_vm2 = vweird.f32 %v4244_v34  ;;  %v4254_v23 = vand.u32 2147483647, %v4244_v34 }
 0xec0   : > { %v4237_v10 = vor.u32 1.1754944e-38, %v4236_v14  ;;  %vm4235_vm15 = vcmp.eq.f32.partialorder %v4234_v18, 8.507059e+37 }
 0xec1   : > { %v4257_v61 = vor.u32 1.1754944e-38, %v4256_v33  ;;  %vm4255_vm4 = vcmp.eq.f32.partialorder %v4254_v23, 8.507059e+37 }
 0xec4   : > { %v5347_v17 = vpop.eup %5346 }
 0xec5   : > { %v5349_v11 = vpop.eup %5348  ;;  %v4226_v44 = vmul.f32 %v5347_v17, %v4224_v4  ;;  %vm4231_vm12 = vweird.f32 %v5347_v17 }
 0xec6   : > { %v4246_v6 = vmul.f32 %v5349_v11, %v4244_v34  ;;  %vm4232_vm14 = vmor %vm4230_vm13, %vm4231_vm12  ;;  %vm4251_vm1 = vweird.f32 %v5349_v11 }
 0xec7   : > { %v4227_v37 = vsub.f32 1.0, %v4226_v44  ;;  %vm4252_vm3 = vmor %vm4250_vm2, %vm4251_vm1 }
 0xec8   : > { %v4247_v30 = vsub.f32 1.0, %v4246_v6 }
 0xec9   : > { %v4228_v1 = vmul.f32 %v5347_v17, %v4227_v37  ;;  %v5374_v37 = vld [vmem:[%s7101_s12] ss:$0 sm:$0xff] }
 0xeca   : > { %v4248_v36 = vmul.f32 %v5349_v11, %v4247_v30 }
 0xecb   : > { %v4229_v25 = vadd.f32 %v5347_v17, %v4228_v1  ;;  %v5375_v1 = vld [vmem:[%s7100_s11 + $0x2] ss:$0 sm:$0xff] }
 0xecc   : > { %v4249_v3 = vadd.f32 %v5349_v11, %v4248_v36  ;;  %v3480_v18 = vadd.f32 %v5375_v1, %v6879_v28 }
 0xecd   : > { %v4233_v9 = vsel %vm4232_vm14, %v5347_v17, %v4229_v25  ;;  %vm4599_vm14 = vcmask 64512  }
 0xece   : > { %v4238_v56 = vsel %vm4235_vm15, %v4237_v10, %v4233_v9  ;;  %v4253_v52 = vsel %vm4252_vm3, %v5349_v11, %v4249_v3 }
 0xecf   : > { %v4260_v20 = vmul.f32 %v4238_v56, %v4218_v31  ;;  %v4258_v58 = vsel %vm4255_vm4, %v4257_v61, %v4253_v52  ;;  %v4536_v61 = vld [vmem:[%s7111_s22 + $0x18] sm:$0xff] }
 0xed0   : > { %v4263_v0 = vsub.f32 1.0, %v4258_v58  ;;  %v4265_v35 = vmul.f32 %v4258_v58, %v6929_v49  ;;  %v4416_v49 = vld [vmem:[%s7105_s16 + $0x8] sm:$0xff]  ;;  %v4472_v58 = vld [vmem:[%s7107_s18 + $0x10] sm:$0xff] }
 0xed1   : > { %v4261_v13 = vadd.f32 %v4260_v20, %v3477_v21  ;;  %4435 = vmatpush.msrb.mxu1 %v4416_v49  ;;  %4494 = vmatpush.msra.mxu3 %v4472_v58 }
 0xed3   : > { %5350 = vtanh.f32 %v4261_v13  ;;  %4436 = vmatpush.msrb.mxu1 %v4415_v26 }
 0xed9   : > { %v5351_v22 = vpop.eup %5350 }
 0xeda   : > { %v4264_v8 = vmul.f32 %v5351_v22, %v4263_v0  ;;  %v4535_v0 = vld [vmem:[%s7111_s22 + $0x10] sm:$0xff]  ;;  %v4471_v22 = vld [vmem:[%s7107_s18 + $0x8] sm:$0xff] }
 0xedb   : > { %4495 = vmatpush.msra.mxu3 %v4471_v22 }
 0xedc   : > { %v6959_v40 = vadd.f32 %v4265_v35, %v4264_v8  ;;  %v4534_v8 = vld [vmem:[%s7111_s22 + $0x8] sm:$0xff]  ;;  %v4470_v35 = vld [vmem:[%s7107_s18] sm:$0xff] }
 0xedd   : > { %4496 = vmatpush.msra.mxu3 %v4470_v35 }
 0xede   : > { %4962 = vmatmul.msk.f32.vlgmr.msra.gmra.mxu1 %vm957_vm0, %v6959_v40  ;;  %4963 = vmatmul.msk.f32.vlgmr.msra.gmra.mxu2 %vm957_vm0, %v6959_v40 }
 0xedf   : > { %4964 = vmatmul.msk.f32.vlgmr.msrb.gmra.mxu3 %vm957_vm0, %v6959_v40  ;;  %4553 = vmatpush.msra.mxu1 %v4536_v61 }
 0xee0   : > { %4585 = vmatpush.msra.mxu2 %v4565_v15 }
 0xee1   : > { %4554 = vmatpush.msra.mxu1 %v4535_v0 }
 0xee3   : > { %4555 = vmatpush.msra.mxu1 %v4534_v8 }
 0xee6   : > { %4969 = vmatmul.msk.f32.vlgmr.msrb.gmra.mxu1 %vm4417_vm5, %v4410_v12 }
 0xf5b   : > { %v4287_v57 = vpop.f32.mrf.mxu1 }
 0xf5c   : > { %v4330_v16 = vadd.f32 %v4287_v57, %v3378_v63  ;;  %v5117_v57 = vld [vmem:[%s7157_s9] ss:$0 sm:$0xff] }
 0xf5e   : > { %v4965_v38 = vmul.f32 -1.442695, %v4330_v16 }
 0xf60   : > { %5352 = vpow2.f32 %v4965_v38 }
 0xf61   : > { %v4307_v42 = vpop.f32.mrf.mxu2 }
 0xf62   : > { %v4350_v43 = vadd.f32 %v4307_v42, %v3429_v41  ;;  %v4327_v17 = vpop.f32.mrf.mxu3  ;;  %v4564_v42 = vld [vmem:[%s7156_s21 + $0x10] sm:$0xff] }
 0xf63   : > { %v4328_v14 = vadd.f32 %v5374_v37, %v4327_v17  ;;  %v4438_v63 = vpop.f32.mrf.mxu1  ;;  %4586 = vmatpush.msra.mxu2 %v4564_v42 }
 0xf64   : > { %v4966_v45 = vmul.f32 -1.442695, %v4350_v43  ;;  %v4563_v43 = vld [vmem:[%s7156_s21 + $0x8] sm:$0xff] }
 0xf65   : > { %4587 = vmatpush.msra.mxu2 %v4563_v43 }
 0xf66   : > { %v5353_v47 = vpop.eup %5352  ;;  %5354 = vpow2.f32 %v4966_v45  ;;  %v4562_v45 = vld [vmem:[%s7156_s21] sm:$0xff] }
 0xf67   : > { %v4334_v48 = vadd.f32 1.0, %v5353_v47  ;;  %4588 = vmatpush.msra.mxu2 %v4562_v45  ;;  %v4503_v47 = vld [vmem:[%s7158_s25 + $0x8] sm:$0xff] }
 0xf68   : > { %4527 = vmatpush.msra.mxu0 %v4503_v47 }
 0xf69   : > { %5356 = vrcp.f32 %v4334_v48  ;;  %v4346_v39 = vand.u32 2147483648, %v4334_v48  ;;  %v4344_v62 = vand.u32 2147483647, %v4334_v48  ;;  %vm4340_vm7 = vweird.f32 %v4334_v48 }
 0xf6a   : > { %4528 = vmatpush.msra.mxu0 %v4502_v5 }
 0xf6b   : > { %v4347_v44 = vor.u32 1.1754944e-38, %v4346_v39  ;;  %vm4345_vm9 = vcmp.eq.f32.partialorder %v4344_v62, 8.507059e+37  ;;  %v5711_v62 = vmov 8.0  }
 0xf6c   : > { %v5355_v46 = vpop.eup %5354 }
 0xf6d   : > { %v4354_v54 = vadd.f32 1.0, %v5355_v46  ;;  %v5710_v46 = vmov 0  }
 0xf6e   : > { %5103 = vset.pattern.permute.xlu0 %v5710_v46 }
 0xf6f   : > { %v5357_v2 = vpop.eup %5356  ;;  %5358 = vrcp.f32 %v4354_v54  ;;  %v4366_v25 = vand.u32 2147483648, %v4354_v54  ;;  %v4364_v31 = vand.u32 2147483647, %v4354_v54  ;;  %vm4360_vm11 = vweird.f32 %v4354_v54 }
 0xf70   : > { %v4336_v4 = vmul.f32 %v5357_v2, %v4334_v48  ;;  %vm4341_vm6 = vweird.f32 %v5357_v2  ;;  %v5118_v48 = vld [vmem:[%s7159_s10] ss:$0 sm:$0xff] }
 0xf71   : > { %vm4342_vm8 = vmor %vm4340_vm7, %vm4341_vm6  ;;  %v4367_v3 = vor.u32 1.1754944e-38, %v4366_v25  ;;  %vm4365_vm13 = vcmp.eq.f32.partialorder %v4364_v31, 8.507059e+37 }
 0xf72   : > { %v4337_v34 = vsub.f32 1.0, %v4336_v4 }
 0xf74   : > { %v4338_v27 = vmul.f32 %v5357_v2, %v4337_v34  ;;  %v5121_v34 = vld [vmem:[#allocation4] ss:$0 sm:$0xff] }
 0xf75   : > { %v5359_v60 = vpop.eup %5358 }
 0xf76   : > { %v4356_v24 = vmul.f32 %v5359_v60, %v4354_v54  ;;  %v4339_v11 = vadd.f32 %v5357_v2, %v4338_v27  ;;  %vm4361_vm10 = vweird.f32 %v5359_v60  ;;  %v5120_v54 = vld [vmem:[%s7161_s26] ss:$0 sm:$0xff] }
 0xf77   : > { %vm4362_vm12 = vmor %vm4360_vm11, %vm4361_vm10 }
 0xf78   : > { %v4357_v6 = vsub.f32 1.0, %v4356_v24  ;;  %v4343_v30 = vsel %vm4342_vm8, %v5357_v2, %v4339_v11 }
 0xf79   : > { %v4348_v59 = vsel %vm4345_vm9, %v4347_v44, %v4343_v30 }
 0xf7a   : > { %v4358_v36 = vmul.f32 %v5359_v60, %v4357_v6  ;;  %v4370_v10 = vmul.f32 %v4348_v59, %v4328_v14 }
 0xf7c   : > { %v4359_v9 = vadd.f32 %v5359_v60, %v4358_v36  ;;  %v4371_v56 = vadd.f32 %v4370_v10, %v3480_v18 }
 0xf7e   : > { %v4363_v21 = vsel %vm4362_vm12, %v5359_v60, %v4359_v9  ;;  %5360 = vtanh.f32 %v4371_v56 }
 0xf7f   : > { %v4368_v20 = vsel %vm4365_vm13, %v4367_v3, %v4363_v21  ;;  %5362 = vrcp.f32 %v5711_v62 }
 0xf80   : > { %v4373_v33 = vsub.f32 1.0, %v4368_v20  ;;  %v4375_v28 = vmul.f32 %v4368_v20, %v6959_v40  ;;  %v4533_v40 = vld [vmem:[%s7111_s22] sm:$0xff] }
 0xf81   : > { %4556 = vmatpush.msra.mxu1 %v4533_v40 }
 0xf84   : > { %v5361_v23 = vpop.eup %5360 }
 0xf85   : > { %v4374_v13 = vmul.f32 %v5361_v23, %v4373_v33  ;;  %v5363_v60 = vpop.eup %5362 }
 0xf86   : > { %v4604_v17 = vmul.f32 8.0, %v5363_v60 }
 0xf87   : > { %v4376_v52 = vadd.f32 %v4375_v28, %v4374_v13 }
 0xf88   : > { %v4605_v24 = vsub.f32 1.0, %v4604_v17 }
 0xf89   : > { %4970 = vmatmul.msk.f32.vlgmr.msrb.gmra.mxu2 %vm957_vm0, %v4376_v52 }
 0xf8a   : > { %v4606_v11 = vmul.f32 %v5363_v60, %v4605_v24 }
 0xf8c   : > { %v4607_v6 = vadd.f32 %v5363_v60, %v4606_v11 }
0x100c   : > { %v4461_v16 = vpop.f32.mrf.mxu2 }
0x100d   : > { %v4462_v38 = vadd.f32 %v4461_v16, %v4438_v63 }
0x100f   : > { %v4468_v29 = vadd.f32 %v5117_v57, %v4462_v38 }
0x1011   : > { %v4469_v41 = vmax.f32 %v4468_v29, 0.0 }
0x1013   : > { %4971 = vmatmul.msk.f32.vlgmr.msra.gmra.mxu3 %vm957_vm0, %v4469_v41  ;;  %4973 = vmatmul.msk.f32.vlgmr.msra.gmra.mxu1 %vm957_vm0, %v4469_v41 }
0x1090   : > { %v4558_v49 = vpop.f32.mrf.mxu1 }
0x1091   : > { %v4559_v53 = vadd.f32 %v5118_v48, %v4558_v49 }
0x1093   : > { %v4561_v50 = vmax.f32 %v4559_v53, 0.0 }
0x1095   : > { %4974 = vmatmul.msk.f32.vlgmr.msra.gmra.mxu2 %vm957_vm0, %v4561_v50 }
0x1096   : > { %v4498_v26 = vpop.f32.mrf.mxu3 }
0x1097   : > { %v4499_v7 = vadd.f32 %v5119_v51, %v4498_v26 }
0x1099   : > { %v4501_v55 = vmax.f32 %v4499_v7, 0.0 }
0x109b   : > { %4972 = vmatmul.msk.f32.vlgmr.msra.gmra.mxu0 %vm957_vm0, %v4501_v55  ;;  %vm4608_vm0 = vweird.f32 %v5363_v60 }
0x109c   : > { %v4609_v37 = vsel %vm4608_vm0, %v5363_v60, %v4607_v6 }
0x1118   : > { %v4530_v12 = vpop.f32.mrf.mxu0  ;;  %v4590_v39 = vpop.f32.mrf.mxu2 }
0x1119   : > { %v4531_v2 = vadd.f32 %v5120_v54, %v4530_v12  ;;  %v4591_v27 = vadd.f32 %v5121_v34, %v4590_v39 }
0x111b   : > { %v4600_v4 = vsel %vm4599_vm14, %v4531_v2, 0.0 }
0x111c   : > { %4601 = vadd.xlane.f32.xlu0 %v4600_v4 }
0x1130   : > { %4595 = vperm.xlu0 %5103, %v4591_v27  }
0x118f   : > { %v4602_v44 = vpop.xlane.xlu0 %4601 }
0x1190   : > { %v4610_v30 = vmul.f32 %v4609_v37, %v4602_v44 }
0x11a2   : > { %v4596_v14 = vpop.permute.xlu0 %4595 }
0x11a3   : > { %v4598_v1 = vadd.f32 %v4596_v14, %v4531_v2 }
0x11a5   : > { %v4611_v18 = vsub.f32 %v4598_v1, %v4610_v30 }
0x11a7   : > { %4612 = vst.msk [vmem:[%s940_s3] sm:$0xff] %vm4599_vm14, %v4611_v18 }
0x11a8 PF: > { %p42_p3 = scmp.ge.s32.totalorder %s5947_s24, 4   ;;  %s7163_s7 = smov %s5688_s28 }
0x11a9   : > { %s7164_s28 = smov %s5692_s8  ;;  %s7165_s8 = smov %s5959_s17 }
0x11aa   : > { %s7166_s4 = smov %s5947_s24  ;;  %44 = sbr.rel (!%p42_p3) target bundleno = 26 (0x1a), region = 229 }
0x11af   :  { %4632 = vsyncpa [#allocation6], 1 }
0x11b0   :  { %4634 = vsyncpa [#allocation6 + $0x1], 1 }
0x11b1   :  { %4635 = vsyncpa [#allocation8], 1 }
0x11b2   :  { %4636 = vsyncpa [#allocation11], 1 }
0x11b3   :  { %4637 = vsyncpa [#allocation14], 1 }
0x11b4   :  { %4638 = vsyncpa [#allocation17], 1 }

</bundles_post_ra>
